<compile_context>
chip_gen: v5e
topology: v5e:2x2
jax: 0.10.0
libtpu: 0.0.40
codegen_flags: <defaults>
</compile_context>

<pallas_src>
import functools

import jax
import jax.numpy as jnp
from jax import lax
from jax.experimental import pallas as pl
from jax.experimental.pallas import tpu as pltpu

EPS = 1e-5
LANE = 128
TM = 512                               # M tile for matmul / elementwise passes
_VMEM_LIMIT = 48 * 1024 * 1024         # stays inside v7x's 64 MiB physical VMEM


# ---------------------------------------------------------------------------
# small helpers
# ---------------------------------------------------------------------------
def _rup(x, m):
    return ((x + m - 1) // m) * m


def _pad_last(x, c_pad):
    c = x.shape[-1]
    if c == c_pad:
        return x
    return jnp.pad(x, [(0, 0)] * (x.ndim - 1) + [(0, c_pad - c)])


def _pad_2d(w, k_pad, c_pad):
    return jnp.pad(w, ((0, k_pad - w.shape[0]), (0, c_pad - w.shape[1])))


def _pad_vec(v, c_pad):
    v = v.astype(jnp.float32).reshape(-1)
    return jnp.pad(v, (0, c_pad - v.shape[0]))


# ---------------------------------------------------------------------------
# Kernel A: 1x1 conv as a tiled matmul with resident weight + BN stats.
#   Optional fused input affine + ReLU (used for conv3: bn2+relu on the LHS).
# ---------------------------------------------------------------------------
def _mm_stats_kernel(x_ref, w_ref, y_ref, s1_ref, s2_ref):
    y = jnp.dot(x_ref[...], w_ref[...], preferred_element_type=jnp.float32)
    y_ref[...] = y.astype(y_ref.dtype)
    s1_ref[0] = jnp.sum(y, axis=0, keepdims=True)
    s2_ref[0] = jnp.sum(y * y, axis=0, keepdims=True)


def _mm_affine_stats_kernel(x_ref, sc_ref, sh_ref, w_ref, y_ref, s1_ref, s2_ref,
                            *, n_valid, tm):
    v = x_ref[...].astype(jnp.float32) * sc_ref[...] + sh_ref[...]
    v = jnp.maximum(v, 0.0)
    if n_valid is not None:
        # zero out M-padding rows so they do not pollute the BN statistics
        rows = pl.program_id(0) * tm + lax.broadcasted_iota(jnp.int32, v.shape, 0)
        v = jnp.where(rows < n_valid, v, 0.0)
    y = jnp.dot(v.astype(jnp.bfloat16), w_ref[...],
                preferred_element_type=jnp.float32)
    y_ref[...] = y.astype(y_ref.dtype)
    s1_ref[0] = jnp.sum(y, axis=0, keepdims=True)
    s2_ref[0] = jnp.sum(y * y, axis=0, keepdims=True)


def matmul_bn_stats(x2d, w, sc=None, sh=None):
    """x2d:(M,K) bf16 [, sc/sh:(1,K) f32 -> relu(x*sc+sh) fused before the dot],
    w:(K,C) bf16 held resident. Returns y:(M,C) bf16, col_sum, col_sumsq."""
    M, K = x2d.shape
    C = w.shape[1]
    assert K % LANE == 0 and C % LANE == 0
    tm = TM if M >= TM else _rup(M, 8)
    m_pad = _rup(M, tm)
    if m_pad != M:
        x2d = jnp.pad(x2d, ((0, m_pad - M), (0, 0)))
    grid = (m_pad // tm,)

    x_spec = pl.BlockSpec((tm, K), lambda i: (i, 0))
    w_spec = pl.BlockSpec((K, C), lambda i: (0, 0))        # resident weight
    vec_spec = pl.BlockSpec((1, K), lambda i: (0, 0))
    if sc is not None:
        kernel = functools.partial(_mm_affine_stats_kernel,
                                   n_valid=(M if m_pad != M else None), tm=tm)
        in_specs = [x_spec, vec_spec, vec_spec, w_spec]
        args = (x2d, sc, sh, w)
    else:
        kernel = _mm_stats_kernel
        in_specs = [x_spec, w_spec]
        args = (x2d, w)

    y, s1, s2 = pl.pallas_call(
        kernel,
        out_shape=(jax.ShapeDtypeStruct((m_pad, C), jnp.bfloat16),
                   jax.ShapeDtypeStruct((grid[0], 1, C), jnp.float32),
                   jax.ShapeDtypeStruct((grid[0], 1, C), jnp.float32)),
        grid_spec=pltpu.PrefetchScalarGridSpec(
            num_scalar_prefetch=0,
            grid=grid,
            in_specs=in_specs,
            out_specs=[pl.BlockSpec((tm, C), lambda i: (i, 0)),
                       pl.BlockSpec((1, 1, C), lambda i: (i, 0, 0)),
                       pl.BlockSpec((1, 1, C), lambda i: (i, 0, 0))]),
        compiler_params=pltpu.CompilerParams(
            dimension_semantics=("parallel",),
            vmem_limit_bytes=_VMEM_LIMIT),
    )(*args)
    return y[:M], jnp.sum(s1[:, 0, :], axis=0), jnp.sum(s2[:, 0, :], axis=0)


# ---------------------------------------------------------------------------
# Kernel B: 3x3 conv with the dx taps folded into the contracting dim (K=3C),
#           dy handled as 3 fat accumulated dots, + exact BN stats.
# ---------------------------------------------------------------------------
def _conv3x3_kernel(x3_ref, w_ref, y_ref, s1_ref, s2_ref, acc_ref,
                    *, s, ho, wo, k3):
    for dy in range(3):
        patch = x3_ref[0, dy % s, pl.ds(dy // s, ho)]         # (ho, wo, 3C)
        patch = patch.reshape(ho * wo, k3)
        c = jnp.dot(patch, w_ref[dy], preferred_element_type=jnp.float32)
        if dy == 0:
            acc_ref[...] = c                                  # no zero-init pass
        else:
            acc_ref[...] += c
    acc = acc_ref[...]
    y_ref[0] = acc.astype(y_ref.dtype)
    s1_ref[0] = jnp.sum(acc, axis=0, keepdims=True)
    s2_ref[0] = jnp.sum(acc * acc, axis=0, keepdims=True)


def conv3x3_bn_stats(y1_nhwc, sc1, sh1, w2f, stride):
    """y1:(N,H,W,C) raw conv1 output bf16, sc1/sh1:(1,C) BN1 affine,
    w2f:(3, 3C, P) bf16.  Returns y2:(N*Ho*Wo,P) bf16, BN partial sums, Ho, Wo."""
    N, H, W, C = y1_nhwc.shape
    P = w2f.shape[2]
    K3 = 3 * C
    s = stride
    Ho = (H - 1) // s + 1
    Wo = (W - 1) // s + 1
    Hph = Ho + 2 // s

    # bn1 affine + ReLU folded into the XLA pass that builds the dx-folded
    # input (padding must happen after the affine, so it cannot live inside
    # the conv kernel); XLA fuses affine+pad+gather into one HBM pass.
    out1 = jnp.maximum(
        y1_nhwc.astype(jnp.float32) * sc1.reshape(1, 1, 1, C)
        + sh1.reshape(1, 1, 1, C), 0.0).astype(jnp.bfloat16)
    xp = jnp.pad(out1, ((0, 0), (1, 1), (1, 1), (0, 0)))       # (N,H+2,W+2,C)
    rows_needed = (s - 1) + (Hph - 1) * s + 1
    if rows_needed > H + 2:
        xp = jnp.pad(xp, ((0, 0), (0, rows_needed - (H + 2)), (0, 0), (0, 0)))

    # x3ph[n, a, i, wo, dx*C + c] = xp[n, i*s + a, wo*s + dx, c]
    phases = []
    for a in range(s):
        groups = []
        for dx in range(3):
            g = lax.slice(xp, (0, a, dx, 0),
                          (N, a + (Hph - 1) * s + 1,
                           dx + (Wo - 1) * s + 1, C),
                          (1, s, s, 1))
            groups.append(g)
        phases.append(jnp.concatenate(groups, axis=-1))
    x3ph = phases[0][:, None] if s == 1 else jnp.stack(phases, axis=1)

    kern = functools.partial(_conv3x3_kernel, s=s, ho=Ho, wo=Wo, k3=K3)
    y, s1, s2 = pl.pallas_call(
        kern,
        out_shape=(jax.ShapeDtypeStruct((N, Ho * Wo, P), jnp.bfloat16),
                   jax.ShapeDtypeStruct((N, 1, P), jnp.float32),
                   jax.ShapeDtypeStruct((N, 1, P), jnp.float32)),
        grid_spec=pltpu.PrefetchScalarGridSpec(
            num_scalar_prefetch=0,
            grid=(N,),
            in_specs=[pl.BlockSpec((1, s, Hph, Wo, K3),
                                   lambda n: (n, 0, 0, 0, 0)),
                      pl.BlockSpec((3, K3, P), lambda n: (0, 0, 0))],
            out_specs=[pl.BlockSpec((1, Ho * Wo, P), lambda n: (n, 0, 0)),
                       pl.BlockSpec((1, 1, P), lambda n: (n, 0, 0)),
                       pl.BlockSpec((1, 1, P), lambda n: (n, 0, 0))],
            scratch_shapes=[pltpu.VMEM((Ho * Wo, P), jnp.float32)]),
        compiler_params=pltpu.CompilerParams(
            dimension_semantics=("parallel",),
            vmem_limit_bytes=_VMEM_LIMIT),
    )(x3ph, w2f)
    # TODO(synk): add an Ho row-block grid axis (parallel) for v7x-class VMEM
    # (64 MiB) and finer megacore granularity on 56x56-scale layers.
    return (y.reshape(N * Ho * Wo, P),
            jnp.sum(s1[:, 0, :], axis=0),
            jnp.sum(s2[:, 0, :], axis=0),
            Ho, Wo)


# ---------------------------------------------------------------------------
# Kernel C: strided 1x1 projection shortcut — the stride-s subsample is folded
#           into the BlockSpec (rows) and a free reshape + zero-padded weight
#           (columns).  No HBM gather of x.
# ---------------------------------------------------------------------------
def _shortcut_proj_kernel(x_ref, w_ref, y_ref, s1_ref, s2_ref, *, ho, wo, k):
    v = x_ref[0, :, 0].reshape(ho * wo, k)                    # (Ho*Wo, s*Cp)
    y = jnp.dot(v, w_ref[...], preferred_element_type=jnp.float32)
    y_ref[0] = y.astype(y_ref.dtype)
    s1_ref[0] = jnp.sum(y, axis=0, keepdims=True)
    s2_ref[0] = jnp.sum(y * y, axis=0, keepdims=True)


def shortcut_proj_bn_stats(x_b, ws_big, stride):
    """x_b:(N,H,W,Cp) bf16 with H%s==0 and W%s==0; ws_big:(s*Cp,Ce) bf16 with
    only the first Cp rows non-zero (picks the dx=0 column phase)."""
    N, H, W, Cp = x_b.shape
    s = stride
    Ho, Wo = H // s, W // s
    K = s * Cp
    Ce = ws_big.shape[1]
    xv = x_b.reshape(N, Ho, s, Wo, K)                         # free reshape
    kern = functools.partial(_shortcut_proj_kernel, ho=Ho, wo=Wo, k=K)
    y, s1, s2 = pl.pallas_call(
        kern,
        out_shape=(jax.ShapeDtypeStruct((N, Ho * Wo, Ce), jnp.bfloat16),
                   jax.ShapeDtypeStruct((N, 1, Ce), jnp.float32),
                   jax.ShapeDtypeStruct((N, 1, Ce), jnp.float32)),
        grid_spec=pltpu.PrefetchScalarGridSpec(
            num_scalar_prefetch=0,
            grid=(N,),
            in_specs=[pl.BlockSpec((1, Ho, 1, Wo, K),
                                   lambda n: (n, 0, 0, 0, 0)),
                      pl.BlockSpec((K, Ce), lambda n: (0, 0))],
            out_specs=[pl.BlockSpec((1, Ho * Wo, Ce), lambda n: (n, 0, 0)),
                       pl.BlockSpec((1, 1, Ce), lambda n: (n, 0, 0)),
                       pl.BlockSpec((1, 1, Ce), lambda n: (n, 0, 0))]),
        compiler_params=pltpu.CompilerParams(
            dimension_semantics=("parallel",),
            vmem_limit_bytes=_VMEM_LIMIT),
    )(xv, ws_big)
    return (y.reshape(N * Ho * Wo, Ce),
            jnp.sum(s1[:, 0, :], axis=0),
            jnp.sum(s2[:, 0, :], axis=0))


# ---------------------------------------------------------------------------
# Final combine: bn3 affine + residual (optionally its own bn affine) + ReLU
# ---------------------------------------------------------------------------
def _combine_kernel(y_ref, sc_ref, sh_ref, r_ref, o_ref):
    main = y_ref[...].astype(jnp.float32) * sc_ref[...] + sh_ref[...]
    o_ref[...] = jnp.maximum(main + r_ref[...].astype(jnp.float32),
                             0.0).astype(o_ref.dtype)


def _combine_affine_kernel(y_ref, sc_ref, sh_ref, r_ref, rsc_ref, rsh_ref, o_ref):
    main = y_ref[...].astype(jnp.float32) * sc_ref[...] + sh_ref[...]
    res = r_ref[...].astype(jnp.float32) * rsc_ref[...] + rsh_ref[...]
    o_ref[...] = jnp.maximum(main + res, 0.0).astype(o_ref.dtype)


def combine_residual_relu(y, sc, sh, res, rsc=None, rsh=None,
                          out_dtype=jnp.float32):
    M, C = y.shape
    tm = TM if M >= TM else _rup(M, 8)
    m_pad = _rup(M, tm)
    if m_pad != M:
        y = jnp.pad(y, ((0, m_pad - M), (0, 0)))
        res = jnp.pad(res, ((0, m_pad - M), (0, 0)))
    tile = pl.BlockSpec((tm, C), lambda i: (i, 0))
    vec = pl.BlockSpec((1, C), lambda i: (0, 0))
    if rsc is not None:
        kernel, in_specs = _combine_affine_kernel, [tile, vec, vec, tile, vec, vec]
        args = (y, sc, sh, res, rsc, rsh)
    else:
        kernel, in_specs = _combine_kernel, [tile, vec, vec, tile]
        args = (y, sc, sh, res)
    out = pl.pallas_call(
        kernel,
        out_shape=jax.ShapeDtypeStruct((m_pad, C), out_dtype),
        grid_spec=pltpu.PrefetchScalarGridSpec(
            num_scalar_prefetch=0,
            grid=(m_pad // tm,),
            in_specs=in_specs,
            out_specs=tile),
        compiler_params=pltpu.CompilerParams(
            dimension_semantics=("parallel",),
            vmem_limit_bytes=_VMEM_LIMIT),
    )(*args)
    return out[:M]


def bn_scale_shift(col_sum, col_sumsq, count, gamma, beta):
    """Fold exact batch statistics + gamma/beta into per-channel scale/shift."""
    c_pad = col_sum.shape[0]
    g = _pad_vec(gamma, c_pad)        # padded channels: gamma=0 -> stay 0
    b = _pad_vec(beta, c_pad)
    mean = col_sum / count
    var = jnp.maximum(col_sumsq / count - mean * mean, 0.0)
    scale = g * lax.rsqrt(var + EPS)
    shift = b - mean * scale
    return scale.reshape(1, c_pad), shift.reshape(1, c_pad)


# ---------------------------------------------------------------------------
# Bottleneck forward (NCHW in / NCHW out, like the PyTorch module)
# ---------------------------------------------------------------------------
def bottleneck_forward(x_nchw, params, stride):
    x = jnp.transpose(x_nchw, (0, 2, 3, 1))                    # -> NHWC
    N, H, W, Cin = x.shape
    planes = params["w1"].shape[0]
    Cexp = 4 * planes
    cin_p, pln_p, ce_p = _rup(Cin, LANE), _rup(planes, LANE), _rup(Cexp, LANE)

    x_b = _pad_last(x, cin_p).astype(jnp.bfloat16)             # lane-dense bf16
    M1 = N * H * W

    # conv1 (1x1): raw bf16 output + exact f32 BN stats
    w1 = _pad_2d(params["w1"][:, :, 0, 0].T, cin_p, pln_p).astype(jnp.bfloat16)
    y1, s1, q1 = matmul_bn_stats(x_b.reshape(M1, cin_p), w1)
    sc1, sh1 = bn_scale_shift(s1, q1, M1, params["g1"], params["b1"])

    # conv2 (3x3, stride, pad=1): bn1+relu folded into its input build
    w2t = jnp.transpose(params["w2"], (2, 3, 1, 0))            # (3,3,I,O)
    w2t = jnp.pad(w2t, ((0, 0), (0, 0),
                        (0, pln_p - planes), (0, pln_p - planes)))
    w2f = w2t.reshape(3, 3 * pln_p, pln_p).astype(jnp.bfloat16)
    y2, s2, q2, Ho, Wo = conv3x3_bn_stats(
        y1.reshape(N, H, W, pln_p), sc1, sh1, w2f, stride)
    M2 = N * Ho * Wo
    sc2, sh2 = bn_scale_shift(s2, q2, M2, params["g2"], params["b2"])

    # conv3 (1x1): bn2+relu fused into the LHS load of this matmul
    w3 = _pad_2d(params["w3"][:, :, 0, 0].T, pln_p, ce_p).astype(jnp.bfloat16)
    y3, s3, q3 = matmul_bn_stats(y2, w3, sc=sc2, sh=sh2)
    sc3, sh3 = bn_scale_shift(s3, q3, M2, params["g3"], params["b3"])

    # shortcut branch
    if stride != 1 or Cin != Cexp:
        ws2d = params["ws"][:, :, 0, 0].T                      # (Cin, Cexp)
        if stride == 1:
            ws = _pad_2d(ws2d, cin_p, ce_p).astype(jnp.bfloat16)
            ys, ss_, qs = matmul_bn_stats(x_b.reshape(M1, cin_p), ws)
        elif H % stride == 0 and W % stride == 0:
            ws_big = jnp.zeros((stride * cin_p, ce_p), jnp.float32)
            ws_big = ws_big.at[:Cin, :Cexp].set(ws2d).astype(jnp.bfloat16)
            ys, ss_, qs = shortcut_proj_bn_stats(x_b, ws_big, stride)
        else:
            # TODO(synk): odd spatial dims with stride>1 fall back to a gather.
            xs = x_b[:, ::stride, ::stride, :].reshape(M2, cin_p)
            ws = _pad_2d(ws2d, cin_p, ce_p).astype(jnp.bfloat16)
            ys, ss_, qs = matmul_bn_stats(xs, ws)
        scs, shs = bn_scale_shift(ss_, qs, M2, params["gs"], params["bs"])
        out = combine_residual_relu(y3, sc3, sh3, ys, scs, shs)
    else:
        res = x_b.reshape(M2, ce_p)                            # reuse bf16 x
        out = combine_residual_relu(y3, sc3, sh3, res)

    # TODO(synk): for chained blocks keep NHWC / bf16 here and skip this
    # slice + transpose round trip.
    out = out.reshape(N, Ho, Wo, ce_p)[..., :Cexp]
    return jnp.transpose(out, (0, 3, 1, 2))                    # -> NCHW


# ---------------------------------------------------------------------------
# Pure-JAX reference (sanity check)
# ---------------------------------------------------------------------------
def _ref_conv(x_nhwc, w_oihw, stride, pad):
    return lax.conv_general_dilated(
        x_nhwc, jnp.transpose(w_oihw, (2, 3, 1, 0)),
        window_strides=(stride, stride), padding=[(pad, pad), (pad, pad)],
        dimension_numbers=("NHWC", "HWIO", "NHWC"))


def _ref_bn(y, g, b):
    mean = jnp.mean(y, axis=(0, 1, 2), keepdims=True)
    var = jnp.mean((y - mean) ** 2, axis=(0, 1, 2), keepdims=True)
    return ((y - mean) * lax.rsqrt(var + EPS) * g.reshape(1, 1, 1, -1)
            + b.reshape(1, 1, 1, -1))


def bottleneck_reference(x_nchw, params, stride):
    x = jnp.transpose(x_nchw, (0, 2, 3, 1)).astype(jnp.float32)
    Cin = x.shape[-1]
    planes = params["w1"].shape[0]
    Cexp = 4 * planes
    o = jax.nn.relu(_ref_bn(_ref_conv(x, params["w1"], 1, 0),
                            params["g1"], params["b1"]))
    o = jax.nn.relu(_ref_bn(_ref_conv(o, params["w2"], stride, 1),
                            params["g2"], params["b2"]))
    o = _ref_bn(_ref_conv(o, params["w3"], 1, 0), params["g3"], params["b3"])
    if stride != 1 or Cin != Cexp:
        s = _ref_bn(_ref_conv(x, params["ws"], stride, 0),
                    params["gs"], params["bs"])
    else:
        s = x
    return jnp.transpose(jax.nn.relu(o + s), (0, 3, 1, 2))


# ---------------------------------------------------------------------------
def _make_params(key, in_planes, planes):
    cexp = 4 * planes
    ks = jax.random.split(key, 12)
    n = jax.random.normal
    return {
        "w1": 0.3 * n(ks[0], (planes, in_planes, 1, 1), jnp.float32),
        "g1": 1.0 + 0.1 * n(ks[1], (planes,), jnp.float32),
        "b1": 0.1 * n(ks[2], (planes,), jnp.float32),
        "w2": 0.3 * n(ks[3], (planes, planes, 3, 3), jnp.float32),
        "g2": 1.0 + 0.1 * n(ks[4], (planes,), jnp.float32),
        "b2": 0.1 * n(ks[5], (planes,), jnp.float32),
        "w3": 0.3 * n(ks[6], (cexp, planes, 1, 1), jnp.float32),
        "g3": 1.0 + 0.1 * n(ks[7], (cexp,), jnp.float32),
        "b3": 0.1 * n(ks[8], (cexp,), jnp.float32),
        "ws": 0.3 * n(ks[9], (cexp, in_planes, 1, 1), jnp.float32),
        "gs": 1.0 + 0.1 * n(ks[10], (cexp,), jnp.float32),
        "bs": 0.1 * n(ks[11], (cexp,), jnp.float32),
    }


if __name__ == "__main__":
    N, H, W = 2, 16, 16
    # bf16 MXU inputs + bf16 intermediate writeback (intentional perf choice)
    # vs. a pure-f32 reference -> loose tolerances.
    ATOL, RTOL = 6e-2, 3e-2

    # Case 1: projection shortcut (stride=2, in_planes != 4*planes)
    in_planes, planes, stride = 4, 4, 2
    params = _make_params(jax.random.PRNGKey(0), in_planes, planes)
    x = jax.random.normal(jax.random.PRNGKey(42), (N, in_planes, H, W),
                          jnp.float32)
    fwd = jax.jit(functools.partial(bottleneck_forward, stride=stride))
    out = jax.block_until_ready(fwd(x, params))
    ref = jax.block_until_ready(bottleneck_reference(x, params, stride))
    assert out.shape == (N, 4 * planes, H // stride, W // stride), out.shape
    err = float(jnp.max(jnp.abs(out - ref)))
    assert jnp.allclose(out, ref, atol=ATOL, rtol=RTOL), err

    # Case 2: identity shortcut (stride=1, in_planes == 4*planes)
    in_planes2, planes2, stride2 = 16, 4, 1
    params2 = _make_params(jax.random.PRNGKey(1), in_planes2, planes2)
    x2 = jax.random.normal(jax.random.PRNGKey(7), (N, in_planes2, H, W),
                           jnp.float32)
    fwd2 = jax.jit(functools.partial(bottleneck_forward, stride=stride2))
    out2 = jax.block_until_ready(fwd2(x2, params2))
    ref2 = jax.block_until_ready(bottleneck_reference(x2, params2, stride2))
    err2 = float(jnp.max(jnp.abs(out2 - ref2)))
    assert out2.shape == (N, 4 * planes2, H, W), out2.shape
    assert jnp.allclose(out2, ref2, atol=ATOL, rtol=RTOL), err2

    print("KERNEL_OK")
</pallas_src>

<mosaic_0001>
module attributes {stable_mosaic.version = 11 : i64} {
  func.func @_mm_stats_kernel(%arg0: i32, %arg1: memref<512x128xbf16, #tpu.memory_space<vmem>>, %arg2: memref<128x128xbf16, #tpu.memory_space<vmem>>, %arg3: memref<512x128xbf16, #tpu.memory_space<vmem>>, %arg4: memref<1x1x128xf32, #tpu.memory_space<vmem>>, %arg5: memref<1x1x128xf32, #tpu.memory_space<vmem>>) attributes {dimension_semantics = [#tpu.dimension_semantics<parallel>], iteration_bounds = array<i64: 1>, scalar_prefetch = 0 : i64, scratch_operands = 0 : i64, tpu.core_type = #tpu.core_type<tc>, window_params = [{transform_indices = @transform_0, window_bounds = array<i64: 512, 128>}, {pipeline_mode = #tpu.pipeline_mode<synchronous>, transform_indices = @transform_1, window_bounds = array<i64: 128, 128>}, {transform_indices = @transform_2, window_bounds = array<i64: 512, 128>}, {transform_indices = @transform_3, window_bounds = array<i64: 1, 1, 128>}, {transform_indices = @transform_4, window_bounds = array<i64: 1, 1, 128>}]} {
    %c0 = arith.constant 0 : index
    %c0_0 = arith.constant 0 : index
    %0 = vector.load %arg1[%c0, %c0_0] : memref<512x128xbf16, #tpu.memory_space<vmem>>, vector<512x128xbf16>
    %c0_1 = arith.constant 0 : index
    %c0_2 = arith.constant 0 : index
    %1 = vector.load %arg2[%c0_1, %c0_2] : memref<128x128xbf16, #tpu.memory_space<vmem>>, vector<128x128xbf16>
    %cst = arith.constant dense<0.000000e+00> : vector<512x128xf32>
    %2 = tpu.matmul %0, %1, %cst {dimension_numbers = #tpu.dot_dimension_numbers<[1], [0], [0], [1], [0, 0, 1, 1], [], []>} : vector<512x128xbf16>, vector<128x128xbf16>, vector<512x128xf32> -> vector<512x128xf32>
    %3 = arith.truncf %2 : vector<512x128xf32> to vector<512x128xbf16>
    %c0_3 = arith.constant 0 : index
    %c0_4 = arith.constant 0 : index
    %4 = vector.load %arg3[%c0_3, %c0_4] : memref<512x128xbf16, #tpu.memory_space<vmem>>, vector<512x128xbf16>
    tpu.vector_store %arg3[%c0_3, %c0_4], %3 {strides = array<i32>} : memref<512x128xbf16, #tpu.memory_space<vmem>>, vector<512x128xbf16>,
    %cst_5 = arith.constant dense<0.000000e+00> : vector<128xf32>
    %5 = vector.multi_reduction <add>, %2, %cst_5 [0] : vector<512x128xf32> to vector<128xf32>
    %6 = vector.shape_cast %5 : vector<128xf32> to vector<1x128xf32>
    %c0_6 = arith.constant 0 : index
    %c0_7 = arith.constant 0 : index
    %c0_8 = arith.constant 0 : index
    %7 = vector.load %arg4[%c0_6, %c0_7, %c0_8] : memref<1x1x128xf32, #tpu.memory_space<vmem>>, vector<1x1x128xf32>
    %8 = vector.shape_cast %7 : vector<1x1x128xf32> to vector<1x128xf32>
    %9 = vector.shape_cast %6 : vector<1x128xf32> to vector<1x1x128xf32>
    tpu.vector_store %arg4[%c0_6, %c0_7, %c0_8], %9 {strides = array<i32>} : memref<1x1x128xf32, #tpu.memory_space<vmem>>, vector<1x1x128xf32>,
    %10 = arith.mulf %2, %2 : vector<512x128xf32>
    %cst_9 = arith.constant dense<0.000000e+00> : vector<128xf32>
    %11 = vector.multi_reduction <add>, %10, %cst_9 [0] : vector<512x128xf32> to vector<128xf32>
    %12 = vector.shape_cast %11 : vector<128xf32> to vector<1x128xf32>
    %c0_10 = arith.constant 0 : index
    %c0_11 = arith.constant 0 : index
    %c0_12 = arith.constant 0 : index
    %13 = vector.load %arg5[%c0_10, %c0_11, %c0_12] : memref<1x1x128xf32, #tpu.memory_space<vmem>>, vector<1x1x128xf32>
    %14 = vector.shape_cast %13 : vector<1x1x128xf32> to vector<1x128xf32>
    %15 = vector.shape_cast %12 : vector<1x128xf32> to vector<1x1x128xf32>
    tpu.vector_store %arg5[%c0_10, %c0_11, %c0_12], %15 {strides = array<i32>} : memref<1x1x128xf32, #tpu.memory_space<vmem>>, vector<1x1x128xf32>,
    return
  }
  func.func @transform_0(%arg0: i32) -> (i32, i32) {
    %c0_i32 = arith.constant 0 : i32
    %c0_i32_0 = arith.constant 0 : i32
    return %arg0, %c0_i32 : i32, i32
  }
  func.func @transform_1(%arg0: i32) -> (i32, i32) {
    %c0_i32 = arith.constant 0 : i32
    %c0_i32_0 = arith.constant 0 : i32
    %c0_i32_1 = arith.constant 0 : i32
    return %c0_i32, %c0_i32_0 : i32, i32
  }
  func.func @transform_2(%arg0: i32) -> (i32, i32) {
    %c0_i32 = arith.constant 0 : i32
    %c0_i32_0 = arith.constant 0 : i32
    return %arg0, %c0_i32 : i32, i32
  }
  func.func @transform_3(%arg0: i32) -> (i32, i32, i32) {
    %c0_i32 = arith.constant 0 : i32
    %c0_i32_0 = arith.constant 0 : i32
    %c0_i32_1 = arith.constant 0 : i32
    return %arg0, %c0_i32, %c0_i32_0 : i32, i32, i32
  }
  func.func @transform_4(%arg0: i32) -> (i32, i32, i32) {
    %c0_i32 = arith.constant 0 : i32
    %c0_i32_0 = arith.constant 0 : i32
    %c0_i32_1 = arith.constant 0 : i32
    return %arg0, %c0_i32, %c0_i32_0 : i32, i32, i32
  }
}

module attributes {stable_mosaic.version = 11 : i64} {
  func.func @_shortcut_proj_kernel(%arg0: i32, %arg1: memref<1x8x1x8x256xbf16, #tpu.memory_space<vmem>>, %arg2: memref<256x128xbf16, #tpu.memory_space<vmem>>, %arg3: memref<1x64x128xbf16, #tpu.memory_space<vmem>>, %arg4: memref<1x1x128xf32, #tpu.memory_space<vmem>>, %arg5: memref<1x1x128xf32, #tpu.memory_space<vmem>>) attributes {dimension_semantics = [#tpu.dimension_semantics<parallel>], iteration_bounds = array<i64: 2>, scalar_prefetch = 0 : i64, scratch_operands = 0 : i64, tpu.core_type = #tpu.core_type<tc>, window_params = [{transform_indices = @transform_0, window_bounds = array<i64: 1, 8, 1, 8, 256>}, {pipeline_mode = #tpu.pipeline_mode<synchronous>, transform_indices = @transform_1, window_bounds = array<i64: 256, 128>}, {transform_indices = @transform_2, window_bounds = array<i64: 1, 64, 128>}, {transform_indices = @transform_3, window_bounds = array<i64: 1, 1, 128>}, {transform_indices = @transform_4, window_bounds = array<i64: 1, 1, 128>}]} {
    %c0 = arith.constant 0 : index
    %c0_0 = arith.constant 0 : index
    %c0_1 = arith.constant 0 : index
    %c0_2 = arith.constant 0 : index
    %c0_3 = arith.constant 0 : index
    %0 = vector.load %arg1[%c0, %c0_0, %c0_1, %c0_2, %c0_3] : memref<1x8x1x8x256xbf16, #tpu.memory_space<vmem>>, vector<1x8x1x8x256xbf16>
    %1 = vector.shape_cast %0 : vector<1x8x1x8x256xbf16> to vector<8x8x256xbf16>
    %2 = vector.shape_cast %1 : vector<8x8x256xbf16> to vector<64x256xbf16>
    %c0_4 = arith.constant 0 : index
    %c0_5 = arith.constant 0 : index
    %3 = vector.load %arg2[%c0_4, %c0_5] : memref<256x128xbf16, #tpu.memory_space<vmem>>, vector<256x128xbf16>
    %cst = arith.constant dense<0.000000e+00> : vector<64x128xf32>
    %4 = tpu.matmul %2, %3, %cst {dimension_numbers = #tpu.dot_dimension_numbers<[1], [0], [0], [1], [0, 0, 1, 1], [], []>} : vector<64x256xbf16>, vector<256x128xbf16>, vector<64x128xf32> -> vector<64x128xf32>
    %5 = arith.truncf %4 : vector<64x128xf32> to vector<64x128xbf16>
    %c0_6 = arith.constant 0 : index
    %c0_7 = arith.constant 0 : index
    %c0_8 = arith.constant 0 : index
    %6 = vector.load %arg3[%c0_6, %c0_7, %c0_8] : memref<1x64x128xbf16, #tpu.memory_space<vmem>>, vector<1x64x128xbf16>
    %7 = vector.shape_cast %6 : vector<1x64x128xbf16> to vector<64x128xbf16>
    %8 = vector.shape_cast %5 : vector<64x128xbf16> to vector<1x64x128xbf16>
    tpu.vector_store %arg3[%c0_6, %c0_7, %c0_8], %8 {strides = array<i32>} : memref<1x64x128xbf16, #tpu.memory_space<vmem>>, vector<1x64x128xbf16>,
    %cst_9 = arith.constant dense<0.000000e+00> : vector<128xf32>
    %9 = vector.multi_reduction <add>, %4, %cst_9 [0] : vector<64x128xf32> to vector<128xf32>
    %10 = vector.shape_cast %9 : vector<128xf32> to vector<1x128xf32>
    %c0_10 = arith.constant 0 : index
    %c0_11 = arith.constant 0 : index
    %c0_12 = arith.constant 0 : index
    %11 = vector.load %arg4[%c0_10, %c0_11, %c0_12] : memref<1x1x128xf32, #tpu.memory_space<vmem>>, vector<1x1x128xf32>
    %12 = vector.shape_cast %11 : vector<1x1x128xf32> to vector<1x128xf32>
    %13 = vector.shape_cast %10 : vector<1x128xf32> to vector<1x1x128xf32>
    tpu.vector_store %arg4[%c0_10, %c0_11, %c0_12], %13 {strides = array<i32>} : memref<1x1x128xf32, #tpu.memory_space<vmem>>, vector<1x1x128xf32>,
    %14 = arith.mulf %4, %4 : vector<64x128xf32>
    %cst_13 = arith.constant dense<0.000000e+00> : vector<128xf32>
    %15 = vector.multi_reduction <add>, %14, %cst_13 [0] : vector<64x128xf32> to vector<128xf32>
    %16 = vector.shape_cast %15 : vector<128xf32> to vector<1x128xf32>
    %c0_14 = arith.constant 0 : index
    %c0_15 = arith.constant 0 : index
    %c0_16 = arith.constant 0 : index
    %17 = vector.load %arg5[%c0_14, %c0_15, %c0_16] : memref<1x1x128xf32, #tpu.memory_space<vmem>>, vector<1x1x128xf32>
    %18 = vector.shape_cast %17 : vector<1x1x128xf32> to vector<1x128xf32>
    %19 = vector.shape_cast %16 : vector<1x128xf32> to vector<1x1x128xf32>
    tpu.vector_store %arg5[%c0_14, %c0_15, %c0_16], %19 {strides = array<i32>} : memref<1x1x128xf32, #tpu.memory_space<vmem>>, vector<1x1x128xf32>,
    return
  }
  func.func @transform_0(%arg0: i32) -> (i32, i32, i32, i32, i32) {
    %c0_i32 = arith.constant 0 : i32
    %c0_i32_0 = arith.constant 0 : i32
    %c0_i32_1 = arith.constant 0 : i32
    %c0_i32_2 = arith.constant 0 : i32
    %c0_i32_3 = arith.constant 0 : i32
    return %arg0, %c0_i32, %c0_i32_0, %c0_i32_1, %c0_i32_2 : i32, i32, i32, i32, i32
  }
  func.func @transform_1(%arg0: i32) -> (i32, i32) {
    %c0_i32 = arith.constant 0 : i32
    %c0_i32_0 = arith.constant 0 : i32
    %c0_i32_1 = arith.constant 0 : i32
    return %c0_i32, %c0_i32_0 : i32, i32
  }
  func.func @transform_2(%arg0: i32) -> (i32, i32, i32) {
    %c0_i32 = arith.constant 0 : i32
    %c0_i32_0 = arith.constant 0 : i32
    %c0_i32_1 = arith.constant 0 : i32
    return %arg0, %c0_i32, %c0_i32_0 : i32, i32, i32
  }
  func.func @transform_3(%arg0: i32) -> (i32, i32, i32) {
    %c0_i32 = arith.constant 0 : i32
    %c0_i32_0 = arith.constant 0 : i32
    %c0_i32_1 = arith.constant 0 : i32
    return %arg0, %c0_i32, %c0_i32_0 : i32, i32, i32
  }
  func.func @transform_4(%arg0: i32) -> (i32, i32, i32) {
    %c0_i32 = arith.constant 0 : i32
    %c0_i32_0 = arith.constant 0 : i32
    %c0_i32_1 = arith.constant 0 : i32
    return %arg0, %c0_i32, %c0_i32_0 : i32, i32, i32
  }
}

module attributes {stable_mosaic.version = 11 : i64} {
  func.func @_conv3x3_kernel(%arg0: i32, %arg1: memref<1x2x9x8x384xbf16, #tpu.memory_space<vmem>>, %arg2: memref<3x384x128xbf16, #tpu.memory_space<vmem>>, %arg3: memref<1x64x128xbf16, #tpu.memory_space<vmem>>, %arg4: memref<1x1x128xf32, #tpu.memory_space<vmem>>, %arg5: memref<1x1x128xf32, #tpu.memory_space<vmem>>, %arg6: memref<64x128xf32, #tpu.memory_space<vmem>>) attributes {dimension_semantics = [#tpu.dimension_semantics<parallel>], iteration_bounds = array<i64: 2>, scalar_prefetch = 0 : i64, scratch_operands = 1 : i64, tpu.core_type = #tpu.core_type<tc>, window_params = [{transform_indices = @transform_0, window_bounds = array<i64: 1, 2, 9, 8, 384>}, {pipeline_mode = #tpu.pipeline_mode<synchronous>, transform_indices = @transform_1, window_bounds = array<i64: 3, 384, 128>}, {transform_indices = @transform_2, window_bounds = array<i64: 1, 64, 128>}, {transform_indices = @transform_3, window_bounds = array<i64: 1, 1, 128>}, {transform_indices = @transform_4, window_bounds = array<i64: 1, 1, 128>}]} {
    %c0 = arith.constant 0 : index
    %c0_0 = arith.constant 0 : index
    %c0_1 = arith.constant 0 : index
    %c0_2 = arith.constant 0 : index
    %c0_3 = arith.constant 0 : index
    %0 = vector.load %arg1[%c0, %c0_0, %c0_1, %c0_2, %c0_3] : memref<1x2x9x8x384xbf16, #tpu.memory_space<vmem>>, vector<1x1x8x8x384xbf16>
    %1 = vector.shape_cast %0 : vector<1x1x8x8x384xbf16> to vector<8x8x384xbf16>
    %2 = vector.shape_cast %1 : vector<8x8x384xbf16> to vector<64x384xbf16>
    %c0_4 = arith.constant 0 : index
    %c0_5 = arith.constant 0 : index
    %c0_6 = arith.constant 0 : index
    %3 = vector.load %arg2[%c0_4, %c0_5, %c0_6] : memref<3x384x128xbf16, #tpu.memory_space<vmem>>, vector<1x384x128xbf16>
    %4 = vector.shape_cast %3 : vector<1x384x128xbf16> to vector<384x128xbf16>
    %cst = arith.constant dense<0.000000e+00> : vector<64x128xf32>
    %5 = tpu.matmul %2, %4, %cst {dimension_numbers = #tpu.dot_dimension_numbers<[1], [0], [0], [1], [0, 0, 1, 1], [], []>} : vector<64x384xbf16>, vector<384x128xbf16>, vector<64x128xf32> -> vector<64x128xf32>
    %c0_7 = arith.constant 0 : index
    %c0_8 = arith.constant 0 : index
    %6 = vector.load %arg6[%c0_7, %c0_8] : memref<64x128xf32, #tpu.memory_space<vmem>>, vector<64x128xf32>
    tpu.vector_store %arg6[%c0_7, %c0_8], %5 {strides = array<i32>} : memref<64x128xf32, #tpu.memory_space<vmem>>, vector<64x128xf32>,
    %c0_9 = arith.constant 0 : index
    %c1 = arith.constant 1 : index
    %c0_10 = arith.constant 0 : index
    %c0_11 = arith.constant 0 : index
    %c0_12 = arith.constant 0 : index
    %7 = vector.load %arg1[%c0_9, %c1, %c0_10, %c0_11, %c0_12] : memref<1x2x9x8x384xbf16, #tpu.memory_space<vmem>>, vector<1x1x8x8x384xbf16>
    %8 = vector.shape_cast %7 : vector<1x1x8x8x384xbf16> to vector<8x8x384xbf16>
    %9 = vector.shape_cast %8 : vector<8x8x384xbf16> to vector<64x384xbf16>
    %c1_13 = arith.constant 1 : index
    %c0_14 = arith.constant 0 : index
    %c0_15 = arith.constant 0 : index
    %10 = vector.load %arg2[%c1_13, %c0_14, %c0_15] : memref<3x384x128xbf16, #tpu.memory_space<vmem>>, vector<1x384x128xbf16>
    %11 = vector.shape_cast %10 : vector<1x384x128xbf16> to vector<384x128xbf16>
    %cst_16 = arith.constant dense<0.000000e+00> : vector<64x128xf32>
    %12 = tpu.matmul %9, %11, %cst_16 {dimension_numbers = #tpu.dot_dimension_numbers<[1], [0], [0], [1], [0, 0, 1, 1], [], []>} : vector<64x384xbf16>, vector<384x128xbf16>, vector<64x128xf32> -> vector<64x128xf32>
    %c0_17 = arith.constant 0 : index
    %c0_18 = arith.constant 0 : index
    %13 = vector.load %arg6[%c0_17, %c0_18] : memref<64x128xf32, #tpu.memory_space<vmem>>, vector<64x128xf32>
    %14 = arith.addf %13, %12 : vector<64x128xf32>
    %c0_19 = arith.constant 0 : index
    %c0_20 = arith.constant 0 : index
    %15 = vector.load %arg6[%c0_19, %c0_20] : memref<64x128xf32, #tpu.memory_space<vmem>>, vector<64x128xf32>
    tpu.vector_store %arg6[%c0_19, %c0_20], %14 {strides = array<i32>} : memref<64x128xf32, #tpu.memory_space<vmem>>, vector<64x128xf32>,
    %c0_21 = arith.constant 0 : index
    %c0_22 = arith.constant 0 : index
    %c1_23 = arith.constant 1 : index
    %c0_24 = arith.constant 0 : index
    %c0_25 = arith.constant 0 : index
    %16 = vector.load %arg1[%c0_21, %c0_22, %c1_23, %c0_24, %c0_25] : memref<1x2x9x8x384xbf16, #tpu.memory_space<vmem>>, vector<1x1x8x8x384xbf16>
    %17 = vector.shape_cast %16 : vector<1x1x8x8x384xbf16> to vector<8x8x384xbf16>
    %18 = vector.shape_cast %17 : vector<8x8x384xbf16> to vector<64x384xbf16>
    %c2 = arith.constant 2 : index
    %c0_26 = arith.constant 0 : index
    %c0_27 = arith.constant 0 : index
    %19 = vector.load %arg2[%c2, %c0_26, %c0_27] : memref<3x384x128xbf16, #tpu.memory_space<vmem>>, vector<1x384x128xbf16>
    %20 = vector.shape_cast %19 : vector<1x384x128xbf16> to vector<384x128xbf16>
    %cst_28 = arith.constant dense<0.000000e+00> : vector<64x128xf32>
    %21 = tpu.matmul %18, %20, %cst_28 {dimension_numbers = #tpu.dot_dimension_numbers<[1], [0], [0], [1], [0, 0, 1, 1], [], []>} : vector<64x384xbf16>, vector<384x128xbf16>, vector<64x128xf32> -> vector<64x128xf32>
    %c0_29 = arith.constant 0 : index
    %c0_30 = arith.constant 0 : index
    %22 = vector.load %arg6[%c0_29, %c0_30] : memref<64x128xf32, #tpu.memory_space<vmem>>, vector<64x128xf32>
    %23 = arith.addf %22, %21 : vector<64x128xf32>
    %c0_31 = arith.constant 0 : index
    %c0_32 = arith.constant 0 : index
    %24 = vector.load %arg6[%c0_31, %c0_32] : memref<64x128xf32, #tpu.memory_space<vmem>>, vector<64x128xf32>
    tpu.vector_store %arg6[%c0_31, %c0_32], %23 {strides = array<i32>} : memref<64x128xf32, #tpu.memory_space<vmem>>, vector<64x128xf32>,
    %c0_33 = arith.constant 0 : index
    %c0_34 = arith.constant 0 : index
    %25 = vector.load %arg6[%c0_33, %c0_34] : memref<64x128xf32, #tpu.memory_space<vmem>>, vector<64x128xf32>
    %26 = arith.truncf %25 : vector<64x128xf32> to vector<64x128xbf16>
    %c0_35 = arith.constant 0 : index
    %c0_36 = arith.constant 0 : index
    %c0_37 = arith.constant 0 : index
    %27 = vector.load %arg3[%c0_35, %c0_36, %c0_37] : memref<1x64x128xbf16, #tpu.memory_space<vmem>>, vector<1x64x128xbf16>
    %28 = vector.shape_cast %27 : vector<1x64x128xbf16> to vector<64x128xbf16>
    %29 = vector.shape_cast %26 : vector<64x128xbf16> to vector<1x64x128xbf16>
    tpu.vector_store %arg3[%c0_35, %c0_36, %c0_37], %29 {strides = array<i32>} : memref<1x64x128xbf16, #tpu.memory_space<vmem>>, vector<1x64x128xbf16>,
    %cst_38 = arith.constant dense<0.000000e+00> : vector<128xf32>
    %30 = vector.multi_reduction <add>, %25, %cst_38 [0] : vector<64x128xf32> to vector<128xf32>
    %31 = vector.shape_cast %30 : vector<128xf32> to vector<1x128xf32>
    %c0_39 = arith.constant 0 : index
    %c0_40 = arith.constant 0 : index
    %c0_41 = arith.constant 0 : index
    %32 = vector.load %arg4[%c0_39, %c0_40, %c0_41] : memref<1x1x128xf32, #tpu.memory_space<vmem>>, vector<1x1x128xf32>
    %33 = vector.shape_cast %32 : vector<1x1x128xf32> to vector<1x128xf32>
    %34 = vector.shape_cast %31 : vector<1x128xf32> to vector<1x1x128xf32>
    tpu.vector_store %arg4[%c0_39, %c0_40, %c0_41], %34 {strides = array<i32>} : memref<1x1x128xf32, #tpu.memory_space<vmem>>, vector<1x1x128xf32>,
    %35 = arith.mulf %25, %25 : vector<64x128xf32>
    %cst_42 = arith.constant dense<0.000000e+00> : vector<128xf32>
    %36 = vector.multi_reduction <add>, %35, %cst_42 [0] : vector<64x128xf32> to vector<128xf32>
    %37 = vector.shape_cast %36 : vector<128xf32> to vector<1x128xf32>
    %c0_43 = arith.constant 0 : index
    %c0_44 = arith.constant 0 : index
    %c0_45 = arith.constant 0 : index
    %38 = vector.load %arg5[%c0_43, %c0_44, %c0_45] : memref<1x1x128xf32, #tpu.memory_space<vmem>>, vector<1x1x128xf32>
    %39 = vector.shape_cast %38 : vector<1x1x128xf32> to vector<1x128xf32>
    %40 = vector.shape_cast %37 : vector<1x128xf32> to vector<1x1x128xf32>
    tpu.vector_store %arg5[%c0_43, %c0_44, %c0_45], %40 {strides = array<i32>} : memref<1x1x128xf32, #tpu.memory_space<vmem>>, vector<1x1x128xf32>,
    return
  }
  func.func @transform_0(%arg0: i32) -> (i32, i32, i32, i32, i32) {
    %c0_i32 = arith.constant 0 : i32
    %c0_i32_0 = arith.constant 0 : i32
    %c0_i32_1 = arith.constant 0 : i32
    %c0_i32_2 = arith.constant 0 : i32
    %c0_i32_3 = arith.constant 0 : i32
    return %arg0, %c0_i32, %c0_i32_0, %c0_i32_1, %c0_i32_2 : i32, i32, i32, i32, i32
  }
  func.func @transform_1(%arg0: i32) -> (i32, i32, i32) {
    %c0_i32 = arith.constant 0 : i32
    %c0_i32_0 = arith.constant 0 : i32
    %c0_i32_1 = arith.constant 0 : i32
    %c0_i32_2 = arith.constant 0 : i32
    return %c0_i32, %c0_i32_0, %c0_i32_1 : i32, i32, i32
  }
  func.func @transform_2(%arg0: i32) -> (i32, i32, i32) {
    %c0_i32 = arith.constant 0 : i32
    %c0_i32_0 = arith.constant 0 : i32
    %c0_i32_1 = arith.constant 0 : i32
    return %arg0, %c0_i32, %c0_i32_0 : i32, i32, i32
  }
  func.func @transform_3(%arg0: i32) -> (i32, i32, i32) {
    %c0_i32 = arith.constant 0 : i32
    %c0_i32_0 = arith.constant 0 : i32
    %c0_i32_1 = arith.constant 0 : i32
    return %arg0, %c0_i32, %c0_i32_0 : i32, i32, i32
  }
  func.func @transform_4(%arg0: i32) -> (i32, i32, i32) {
    %c0_i32 = arith.constant 0 : i32
    %c0_i32_0 = arith.constant 0 : i32
    %c0_i32_1 = arith.constant 0 : i32
    return %arg0, %c0_i32, %c0_i32_0 : i32, i32, i32
  }
}

module attributes {stable_mosaic.version = 11 : i64} {
  func.func @_mm_affine_stats_kernel(%arg0: i32, %arg1: memref<128x128xbf16, #tpu.memory_space<vmem>>, %arg2: memref<1x128xf32, #tpu.memory_space<vmem>>, %arg3: memref<1x128xf32, #tpu.memory_space<vmem>>, %arg4: memref<128x128xbf16, #tpu.memory_space<vmem>>, %arg5: memref<128x128xbf16, #tpu.memory_space<vmem>>, %arg6: memref<1x1x128xf32, #tpu.memory_space<vmem>>, %arg7: memref<1x1x128xf32, #tpu.memory_space<vmem>>) attributes {dimension_semantics = [#tpu.dimension_semantics<parallel>], iteration_bounds = array<i64: 1>, scalar_prefetch = 0 : i64, scratch_operands = 0 : i64, tpu.core_type = #tpu.core_type<tc>, window_params = [{transform_indices = @transform_0, window_bounds = array<i64: 128, 128>}, {pipeline_mode = #tpu.pipeline_mode<synchronous>, transform_indices = @transform_1, window_bounds = array<i64: 1, 128>}, {pipeline_mode = #tpu.pipeline_mode<synchronous>, transform_indices = @transform_2, window_bounds = array<i64: 1, 128>}, {pipeline_mode = #tpu.pipeline_mode<synchronous>, transform_indices = @transform_3, window_bounds = array<i64: 128, 128>}, {transform_indices = @transform_4, window_bounds = array<i64: 128, 128>}, {transform_indices = @transform_5, window_bounds = array<i64: 1, 1, 128>}, {transform_indices = @transform_6, window_bounds = array<i64: 1, 1, 128>}]} {
    %c0 = arith.constant 0 : index
    %c0_0 = arith.constant 0 : index
    %0 = vector.load %arg1[%c0, %c0_0] : memref<128x128xbf16, #tpu.memory_space<vmem>>, vector<128x128xbf16>
    %1 = arith.extf %0 : vector<128x128xbf16> to vector<128x128xf32>
    %c0_1 = arith.constant 0 : index
    %c0_2 = arith.constant 0 : index
    %2 = vector.load %arg2[%c0_1, %c0_2] : memref<1x128xf32, #tpu.memory_space<vmem>>, vector<1x128xf32>
    %3 = vector.broadcast %2 : vector<1x128xf32> to vector<128x128xf32>
    %4 = arith.mulf %1, %3 : vector<128x128xf32>
    %c0_3 = arith.constant 0 : index
    %c0_4 = arith.constant 0 : index
    %5 = vector.load %arg3[%c0_3, %c0_4] : memref<1x128xf32, #tpu.memory_space<vmem>>, vector<1x128xf32>
    %6 = vector.broadcast %5 : vector<1x128xf32> to vector<128x128xf32>
    %7 = arith.addf %4, %6 : vector<128x128xf32>
    %cst = arith.constant 0.000000e+00 : f32
    %8 = vector.broadcast %cst : f32 to vector<128x128xf32>
    %9 = arith.maximumf %7, %8 : vector<128x128xf32>
    %10 = arith.truncf %9 : vector<128x128xf32> to vector<128x128xbf16>
    %c0_5 = arith.constant 0 : index
    %c0_6 = arith.constant 0 : index
    %11 = vector.load %arg4[%c0_5, %c0_6] : memref<128x128xbf16, #tpu.memory_space<vmem>>, vector<128x128xbf16>
    %cst_7 = arith.constant dense<0.000000e+00> : vector<128x128xf32>
    %12 = tpu.matmul %10, %11, %cst_7 {dimension_numbers = #tpu.dot_dimension_numbers<[1], [0], [0], [1], [0, 0, 1, 1], [], []>} : vector<128x128xbf16>, vector<128x128xbf16>, vector<128x128xf32> -> vector<128x128xf32>
    %13 = arith.truncf %12 : vector<128x128xf32> to vector<128x128xbf16>
    %c0_8 = arith.constant 0 : index
    %c0_9 = arith.constant 0 : index
    %14 = vector.load %arg5[%c0_8, %c0_9] : memref<128x128xbf16, #tpu.memory_space<vmem>>, vector<128x128xbf16>
    tpu.vector_store %arg5[%c0_8, %c0_9], %13 {strides = array<i32>} : memref<128x128xbf16, #tpu.memory_space<vmem>>, vector<128x128xbf16>,
    %cst_10 = arith.constant dense<0.000000e+00> : vector<128xf32>
    %15 = vector.multi_reduction <add>, %12, %cst_10 [0] : vector<128x128xf32> to vector<128xf32>
    %16 = vector.shape_cast %15 : vector<128xf32> to vector<1x128xf32>
    %c0_11 = arith.constant 0 : index
    %c0_12 = arith.constant 0 : index
    %c0_13 = arith.constant 0 : index
    %17 = vector.load %arg6[%c0_11, %c0_12, %c0_13] : memref<1x1x128xf32, #tpu.memory_space<vmem>>, vector<1x1x128xf32>
    %18 = vector.shape_cast %17 : vector<1x1x128xf32> to vector<1x128xf32>
    %19 = vector.shape_cast %16 : vector<1x128xf32> to vector<1x1x128xf32>
    tpu.vector_store %arg6[%c0_11, %c0_12, %c0_13], %19 {strides = array<i32>} : memref<1x1x128xf32, #tpu.memory_space<vmem>>, vector<1x1x128xf32>,
    %20 = arith.mulf %12, %12 : vector<128x128xf32>
    %cst_14 = arith.constant dense<0.000000e+00> : vector<128xf32>
    %21 = vector.multi_reduction <add>, %20, %cst_14 [0] : vector<128x128xf32> to vector<128xf32>
    %22 = vector.shape_cast %21 : vector<128xf32> to vector<1x128xf32>
    %c0_15 = arith.constant 0 : index
    %c0_16 = arith.constant 0 : index
    %c0_17 = arith.constant 0 : index
    %23 = vector.load %arg7[%c0_15, %c0_16, %c0_17] : memref<1x1x128xf32, #tpu.memory_space<vmem>>, vector<1x1x128xf32>
    %24 = vector.shape_cast %23 : vector<1x1x128xf32> to vector<1x128xf32>
    %25 = vector.shape_cast %22 : vector<1x128xf32> to vector<1x1x128xf32>
    tpu.vector_store %arg7[%c0_15, %c0_16, %c0_17], %25 {strides = array<i32>} : memref<1x1x128xf32, #tpu.memory_space<vmem>>, vector<1x1x128xf32>,
    return
  }
  func.func @transform_0(%arg0: i32) -> (i32, i32) {
    %c0_i32 = arith.constant 0 : i32
    %c0_i32_0 = arith.constant 0 : i32
    return %arg0, %c0_i32 : i32, i32
  }
  func.func @transform_1(%arg0: i32) -> (i32, i32) {
    %c0_i32 = arith.constant 0 : i32
    %c0_i32_0 = arith.constant 0 : i32
    %c0_i32_1 = arith.constant 0 : i32
    return %c0_i32, %c0_i32_0 : i32, i32
  }
  func.func @transform_2(%arg0: i32) -> (i32, i32) {
    %c0_i32 = arith.constant 0 : i32
    %c0_i32_0 = arith.constant 0 : i32
    %c0_i32_1 = arith.constant 0 : i32
    return %c0_i32, %c0_i32_0 : i32, i32
  }
  func.func @transform_3(%arg0: i32) -> (i32, i32) {
    %c0_i32 = arith.constant 0 : i32
    %c0_i32_0 = arith.constant 0 : i32
    %c0_i32_1 = arith.constant 0 : i32
    return %c0_i32, %c0_i32_0 : i32, i32
  }
  func.func @transform_4(%arg0: i32) -> (i32, i32) {
    %c0_i32 = arith.constant 0 : i32
    %c0_i32_0 = arith.constant 0 : i32
    return %arg0, %c0_i32 : i32, i32
  }
  func.func @transform_5(%arg0: i32) -> (i32, i32, i32) {
    %c0_i32 = arith.constant 0 : i32
    %c0_i32_0 = arith.constant 0 : i32
    %c0_i32_1 = arith.constant 0 : i32
    return %arg0, %c0_i32, %c0_i32_0 : i32, i32, i32
  }
  func.func @transform_6(%arg0: i32) -> (i32, i32, i32) {
    %c0_i32 = arith.constant 0 : i32
    %c0_i32_0 = arith.constant 0 : i32
    %c0_i32_1 = arith.constant 0 : i32
    return %arg0, %c0_i32, %c0_i32_0 : i32, i32, i32
  }
}

module attributes {stable_mosaic.version = 11 : i64} {
  func.func @_combine_affine_kernel(%arg0: i32, %arg1: memref<128x128xbf16, #tpu.memory_space<vmem>>, %arg2: memref<1x128xf32, #tpu.memory_space<vmem>>, %arg3: memref<1x128xf32, #tpu.memory_space<vmem>>, %arg4: memref<128x128xbf16, #tpu.memory_space<vmem>>, %arg5: memref<1x128xf32, #tpu.memory_space<vmem>>, %arg6: memref<1x128xf32, #tpu.memory_space<vmem>>, %arg7: memref<128x128xf32, #tpu.memory_space<vmem>>) attributes {dimension_semantics = [#tpu.dimension_semantics<parallel>], iteration_bounds = array<i64: 1>, scalar_prefetch = 0 : i64, scratch_operands = 0 : i64, tpu.core_type = #tpu.core_type<tc>, window_params = [{transform_indices = @transform_0, window_bounds = array<i64: 128, 128>}, {pipeline_mode = #tpu.pipeline_mode<synchronous>, transform_indices = @transform_1, window_bounds = array<i64: 1, 128>}, {pipeline_mode = #tpu.pipeline_mode<synchronous>, transform_indices = @transform_2, window_bounds = array<i64: 1, 128>}, {transform_indices = @transform_3, window_bounds = array<i64: 128, 128>}, {pipeline_mode = #tpu.pipeline_mode<synchronous>, transform_indices = @transform_4, window_bounds = array<i64: 1, 128>}, {pipeline_mode = #tpu.pipeline_mode<synchronous>, transform_indices = @transform_5, window_bounds = array<i64: 1, 128>}, {transform_indices = @transform_6, window_bounds = array<i64: 128, 128>}]} {
    %c0 = arith.constant 0 : index
    %c0_0 = arith.constant 0 : index
    %0 = vector.load %arg1[%c0, %c0_0] : memref<128x128xbf16, #tpu.memory_space<vmem>>, vector<128x128xbf16>
    %1 = arith.extf %0 : vector<128x128xbf16> to vector<128x128xf32>
    %c0_1 = arith.constant 0 : index
    %c0_2 = arith.constant 0 : index
    %2 = vector.load %arg2[%c0_1, %c0_2] : memref<1x128xf32, #tpu.memory_space<vmem>>, vector<1x128xf32>
    %3 = vector.broadcast %2 : vector<1x128xf32> to vector<128x128xf32>
    %4 = arith.mulf %1, %3 : vector<128x128xf32>
    %c0_3 = arith.constant 0 : index
    %c0_4 = arith.constant 0 : index
    %5 = vector.load %arg3[%c0_3, %c0_4] : memref<1x128xf32, #tpu.memory_space<vmem>>, vector<1x128xf32>
    %6 = vector.broadcast %5 : vector<1x128xf32> to vector<128x128xf32>
    %7 = arith.addf %4, %6 : vector<128x128xf32>
    %c0_5 = arith.constant 0 : index
    %c0_6 = arith.constant 0 : index
    %8 = vector.load %arg4[%c0_5, %c0_6] : memref<128x128xbf16, #tpu.memory_space<vmem>>, vector<128x128xbf16>
    %9 = arith.extf %8 : vector<128x128xbf16> to vector<128x128xf32>
    %c0_7 = arith.constant 0 : index
    %c0_8 = arith.constant 0 : index
    %10 = vector.load %arg5[%c0_7, %c0_8] : memref<1x128xf32, #tpu.memory_space<vmem>>, vector<1x128xf32>
    %11 = vector.broadcast %10 : vector<1x128xf32> to vector<128x128xf32>
    %12 = arith.mulf %9, %11 : vector<128x128xf32>
    %c0_9 = arith.constant 0 : index
    %c0_10 = arith.constant 0 : index
    %13 = vector.load %arg6[%c0_9, %c0_10] : memref<1x128xf32, #tpu.memory_space<vmem>>, vector<1x128xf32>
    %14 = vector.broadcast %13 : vector<1x128xf32> to vector<128x128xf32>
    %15 = arith.addf %12, %14 : vector<128x128xf32>
    %16 = arith.addf %7, %15 : vector<128x128xf32>
    %cst = arith.constant 0.000000e+00 : f32
    %17 = vector.broadcast %cst : f32 to vector<128x128xf32>
    %18 = arith.maximumf %16, %17 : vector<128x128xf32>
    %c0_11 = arith.constant 0 : index
    %c0_12 = arith.constant 0 : index
    %19 = vector.load %arg7[%c0_11, %c0_12] : memref<128x128xf32, #tpu.memory_space<vmem>>, vector<128x128xf32>
    tpu.vector_store %arg7[%c0_11, %c0_12], %18 {strides = array<i32>} : memref<128x128xf32, #tpu.memory_space<vmem>>, vector<128x128xf32>,
    return
  }
  func.func @transform_0(%arg0: i32) -> (i32, i32) {
    %c0_i32 = arith.constant 0 : i32
    %c0_i32_0 = arith.constant 0 : i32
    return %arg0, %c0_i32 : i32, i32
  }
  func.func @transform_1(%arg0: i32) -> (i32, i32) {
    %c0_i32 = arith.constant 0 : i32
    %c0_i32_0 = arith.constant 0 : i32
    %c0_i32_1 = arith.constant 0 : i32
    return %c0_i32, %c0_i32_0 : i32, i32
  }
  func.func @transform_2(%arg0: i32) -> (i32, i32) {
    %c0_i32 = arith.constant 0 : i32
    %c0_i32_0 = arith.constant 0 : i32
    %c0_i32_1 = arith.constant 0 : i32
    return %c0_i32, %c0_i32_0 : i32, i32
  }
  func.func @transform_3(%arg0: i32) -> (i32, i32) {
    %c0_i32 = arith.constant 0 : i32
    %c0_i32_0 = arith.constant 0 : i32
    return %arg0, %c0_i32 : i32, i32
  }
  func.func @transform_4(%arg0: i32) -> (i32, i32) {
    %c0_i32 = arith.constant 0 : i32
    %c0_i32_0 = arith.constant 0 : i32
    %c0_i32_1 = arith.constant 0 : i32
    return %c0_i32, %c0_i32_0 : i32, i32
  }
  func.func @transform_5(%arg0: i32) -> (i32, i32) {
    %c0_i32 = arith.constant 0 : i32
    %c0_i32_0 = arith.constant 0 : i32
    %c0_i32_1 = arith.constant 0 : i32
    return %c0_i32, %c0_i32_0 : i32, i32
  }
  func.func @transform_6(%arg0: i32) -> (i32, i32) {
    %c0_i32 = arith.constant 0 : i32
    %c0_i32_0 = arith.constant 0 : i32
    return %arg0, %c0_i32 : i32, i32
  }
}

</mosaic_0001>

<bundles_post_ra>
// kernel: bottleneck_forward.5
= control target key start
LH: loop header
LB: loop body
LE: loop exit
PB: predicated region body
PF: predicated region fallthrough
CT: control target
= control target key end

     0   :  { %s1797_s1 = inlined_call_operand.vmem [shape: bf16[128,128], index: 1, kind: input, shape index: {}]   ;;  %s1798_s0 = inlined_call_operand.vmem [shape: bf16[512,128], index: 0, kind: input, shape index: {}]   ;;  %s1799_s2 = inlined_call_operand.vmem [shape: bf16[512,128], index: 2, kind: output, shape index: {0}]   ;;  %s1800_s3 = inlined_call_operand.vmem [shape: f32[1,1,128], index: 3, kind: output, shape index: {1}]   ;;  %s1801_s4 = inlined_call_operand.vmem [shape: f32[1,1,128], index: 4, kind: output, shape index: {2}]  }
   0x1   :  { %v1046_v0 = vld [vmem:[%s1797_s1 + $0x38] sm:$0xff]  ;;  %v1045_v1 = vld [vmem:[%s1797_s1 + $0x30] sm:$0xff]  ;;  %v1044_v2 = vld [vmem:[%s1797_s1 + $0x28] sm:$0xff] }
   0x2   :  { %334 = vmatpush.bf16.msra.mxu0 %v1046_v0  ;;  %1238 = vmatpush.bf16.msra.mxu1 %v1046_v0  ;;  %v1043_v3 = vld [vmem:[%s1797_s1 + $0x20] sm:$0xff]  ;;  %v1042_v4 = vld [vmem:[%s1797_s1 + $0x18] sm:$0xff]  ;;  %v1041_v5 = vld [vmem:[%s1797_s1 + $0x10] sm:$0xff] }
   0x3   :  { %1239 = vmatpush.bf16.msra.mxu2 %v1046_v0  ;;  %1240 = vmatpush.bf16.msra.mxu3 %v1046_v0  ;;  %v1040_v6 = vld [vmem:[%s1797_s1 + $0x8] sm:$0xff]  ;;  %v1039_v7 = vld [vmem:[%s1797_s1] sm:$0xff]  ;;  %v1009_v13 = vld [vmem:[%s1798_s0 + $0x10] sm:$0xff] }
   0x4   :  { %v1007_v8 = vld [vmem:[%s1798_s0] sm:$0xff]  ;;  %v1008_v10 = vld [vmem:[%s1798_s0 + $0x8] sm:$0xff]  ;;  %v1017_v14 = vld [vmem:[%s1798_s0 + $0x50] sm:$0xff] }
   0x5   :  { %v1015_v9 = vld [vmem:[%s1798_s0 + $0x40] sm:$0xff]  ;;  %v1016_v11 = vld [vmem:[%s1798_s0 + $0x48] sm:$0xff]  ;;  %v1010_v16 = vld [vmem:[%s1798_s0 + $0x18] sm:$0xff] }
   0x6   :  { %335 = vmatpush.bf16.msra.mxu0 %v1045_v1  ;;  %1241 = vmatpush.bf16.msra.mxu1 %v1045_v1  ;;  %v1023_v12 = vld [vmem:[%s1798_s0 + $0x80] sm:$0xff]  ;;  %v1024_v15 = vld [vmem:[%s1798_s0 + $0x88] sm:$0xff]  ;;  %v1018_v17 = vld [vmem:[%s1798_s0 + $0x58] sm:$0xff] }
   0x7   :  { %1242 = vmatpush.bf16.msra.mxu2 %v1045_v1  ;;  %1243 = vmatpush.bf16.msra.mxu3 %v1045_v1  ;;  %v1025_v18 = vld [vmem:[%s1798_s0 + $0x90] sm:$0xff]  ;;  %v1031_v19 = vld [vmem:[%s1798_s0 + $0xc0] sm:$0xff]  ;;  %v1026_v22 = vld [vmem:[%s1798_s0 + $0x98] sm:$0xff] }
   0x8   :  { %v1011_v20 = vld [vmem:[%s1798_s0 + $0x20] sm:$0xff]  ;;  %v1032_v23 = vld [vmem:[%s1798_s0 + $0xc8] sm:$0xff]  ;;  %v1033_v27 = vld [vmem:[%s1798_s0 + $0xd0] sm:$0xff] }
   0x9   :  { %v1019_v21 = vld [vmem:[%s1798_s0 + $0x60] sm:$0xff]  ;;  %v1012_v24 = vld [vmem:[%s1798_s0 + $0x28] sm:$0xff]  ;;  %v1013_v28 = vld [vmem:[%s1798_s0 + $0x30] sm:$0xff] }
   0xa   :  { %336 = vmatpush.bf16.msra.mxu0 %v1044_v2  ;;  %1244 = vmatpush.bf16.msra.mxu1 %v1044_v2  ;;  %v1020_v25 = vld [vmem:[%s1798_s0 + $0x68] sm:$0xff]  ;;  %v1027_v26 = vld [vmem:[%s1798_s0 + $0xa0] sm:$0xff]  ;;  %v1021_v29 = vld [vmem:[%s1798_s0 + $0x70] sm:$0xff] }
   0xb   :  { %1245 = vmatpush.bf16.msra.mxu2 %v1044_v2  ;;  %1246 = vmatpush.bf16.msra.mxu3 %v1044_v2  ;;  %v1028_v30 = vld [vmem:[%s1798_s0 + $0xa8] sm:$0xff]  ;;  %v1034_v31 = vld [vmem:[%s1798_s0 + $0xd8] sm:$0xff]  ;;  %v1029_v34 = vld [vmem:[%s1798_s0 + $0xb0] sm:$0xff] }
   0xc   :  { %v1014_v32 = vld [vmem:[%s1798_s0 + $0x38] sm:$0xff]  ;;  %v1035_v35 = vld [vmem:[%s1798_s0 + $0xe0] sm:$0xff]  ;;  %v1036_v39 = vld [vmem:[%s1798_s0 + $0xe8] sm:$0xff] }
   0xd   :  { %v1022_v33 = vld [vmem:[%s1798_s0 + $0x78] sm:$0xff]  ;;  %v1037_v53 = vld [vmem:[%s1798_s0 + $0xf0] sm:$0xff] }
   0xe   :  { %337 = vmatpush.bf16.msra.mxu0 %v1043_v3  ;;  %1247 = vmatpush.bf16.msra.mxu1 %v1043_v3  ;;  %v1030_v38 = vld [vmem:[%s1798_s0 + $0xb8] sm:$0xff] }
   0xf   :  { %1248 = vmatpush.bf16.msra.mxu2 %v1043_v3  ;;  %1249 = vmatpush.bf16.msra.mxu3 %v1043_v3 }
  0x12   :  { %338 = vmatpush.bf16.msra.mxu0 %v1042_v4  ;;  %1250 = vmatpush.bf16.msra.mxu1 %v1042_v4 }
  0x13   :  { %1251 = vmatpush.bf16.msra.mxu2 %v1042_v4  ;;  %1252 = vmatpush.bf16.msra.mxu3 %v1042_v4 }
  0x16   :  { %339 = vmatpush.bf16.msra.mxu0 %v1041_v5  ;;  %1253 = vmatpush.bf16.msra.mxu1 %v1041_v5 }
  0x17   :  { %1254 = vmatpush.bf16.msra.mxu2 %v1041_v5  ;;  %1255 = vmatpush.bf16.msra.mxu3 %v1041_v5  ;;  %v1038_v5 = vld [vmem:[%s1798_s0 + $0xf8] sm:$0xff] }
  0x1a   :  { %340 = vmatpush.bf16.msra.mxu0 %v1040_v6  ;;  %1256 = vmatpush.bf16.msra.mxu1 %v1040_v6 }
  0x1b   :  { %1257 = vmatpush.bf16.msra.mxu2 %v1040_v6  ;;  %1258 = vmatpush.bf16.msra.mxu3 %v1040_v6 }
  0x1e   :  { %341 = vmatpush.bf16.msra.mxu0 %v1039_v7  ;;  %1259 = vmatpush.bf16.msra.mxu1 %v1039_v7 }
  0x1f   :  { %1260 = vmatpush.bf16.msra.mxu2 %v1039_v7  ;;  %1261 = vmatpush.bf16.msra.mxu3 %v1039_v7 }
  0x21   :  { %342 = vmatmul.bf16.vlgmr.msra.gmra.mxu0 %v1007_v8  ;;  %382 = vmatmul.bf16.vlgmr.msra.gmra.mxu1 %v1015_v9 }
  0x22   :  { %422 = vmatmul.bf16.vlgmr.msra.gmra.mxu2 %v1023_v12  ;;  %462 = vmatmul.bf16.vlgmr.msra.gmra.mxu3 %v1031_v19 }
  0x31   :  { %347 = vmatmul.bf16.gmra.mxu0 %v1008_v10  ;;  %387 = vmatmul.bf16.gmra.mxu1 %v1016_v11 }
  0x32   :  { %427 = vmatmul.bf16.gmra.mxu2 %v1024_v15  ;;  %467 = vmatmul.bf16.gmra.mxu3 %v1032_v23 }
  0x41   :  { %352 = vmatmul.bf16.gmra.mxu0 %v1009_v13  ;;  %392 = vmatmul.bf16.gmra.mxu1 %v1017_v14 }
  0x42   :  { %432 = vmatmul.bf16.gmra.mxu2 %v1025_v18  ;;  %472 = vmatmul.bf16.gmra.mxu3 %v1033_v27 }
  0x51   :  { %357 = vmatmul.bf16.gmra.mxu0 %v1010_v16  ;;  %397 = vmatmul.bf16.gmra.mxu1 %v1018_v17 }
  0x52   :  { %437 = vmatmul.bf16.gmra.mxu2 %v1026_v22  ;;  %477 = vmatmul.bf16.gmra.mxu3 %v1034_v31 }
  0x61   :  { %362 = vmatmul.bf16.gmra.mxu0 %v1011_v20  ;;  %402 = vmatmul.bf16.gmra.mxu1 %v1019_v21 }
  0x62   :  { %442 = vmatmul.bf16.gmra.mxu2 %v1027_v26  ;;  %482 = vmatmul.bf16.gmra.mxu3 %v1035_v35 }
  0x71   :  { %367 = vmatmul.bf16.gmra.mxu0 %v1012_v24  ;;  %407 = vmatmul.bf16.gmra.mxu1 %v1020_v25 }
  0x72   :  { %447 = vmatmul.bf16.gmra.mxu2 %v1028_v30  ;;  %487 = vmatmul.bf16.gmra.mxu3 %v1036_v39 }
  0x81   :  { %372 = vmatmul.bf16.gmra.mxu0 %v1013_v28  ;;  %412 = vmatmul.bf16.gmra.mxu1 %v1021_v29 }
  0x82   :  { %452 = vmatmul.bf16.gmra.mxu2 %v1029_v34  ;;  %492 = vmatmul.bf16.gmra.mxu3 %v1037_v53 }
  0x91   :  { %377 = vmatmul.bf16.gmra.mxu0 %v1014_v32  ;;  %417 = vmatmul.bf16.gmra.mxu1 %v1022_v33 }
  0x92   :  { %457 = vmatmul.bf16.gmra.mxu2 %v1030_v38  ;;  %497 = vmatmul.bf16.gmra.mxu3 %v1038_v5 }
  0x9e   :  { %v343_v36 = vpop.f32.mrf.mxu0  ;;  %v1395_v37 = vpop.f32.mrf.mxu1 }
  0x9f   :  { %v701_v40 = vmul.f32 %v343_v36, %v343_v36 }
  0xa5   :  { %v1422_v60 = vpop.f32.mrf.mxu2  ;;  %v1473_v20 = vpop.f32.mrf.mxu3 }
  0xa6   :  { %v345_v41 = vpop.f32.mrf.mxu0  ;;  %v1403_v42 = vpop.f32.mrf.mxu1 }
  0xa7   :  { %v1050_v43 = vpack.c.bf16 %v345_v41, %v343_v36  ;;  %v631_v44 = vadd.f32 %v345_v41, %v343_v36  ;;  %v702_v45 = vmul.f32 %v345_v41, %v345_v41  ;;  %v1090_v46 = vpack.c.bf16 %v1403_v42, %v1395_v37 }
  0xa9   :  { %1051 = vst [vmem:[%s1799_s2] sm:$0xff] %v1050_v43   ;;  %v765_v47 = vadd.f32 %v702_v45, %v701_v40 }
  0xaa   :  { %1214 = vst [vmem:[%s1799_s2 + $0x40] sm:$0xff] %v1090_v46  }
  0xad   :  { %v1434_v2 = vpop.f32.mrf.mxu2  ;;  %v1485_v24 = vpop.f32.mrf.mxu3 }
  0xae   :  { %v348_v48 = vpop.f32.mrf.mxu0  ;;  %v1413_v49 = vpop.f32.mrf.mxu1  ;;  %v1130_v3 = vpack.c.bf16 %v1434_v2, %v1422_v60  ;;  %v1170_v26 = vpack.c.bf16 %v1485_v24, %v1473_v20 }
  0xaf   :  { %v632_v50 = vadd.f32 %v631_v44, %v348_v48  ;;  %v703_v51 = vmul.f32 %v348_v48, %v348_v48 }
  0xb0   :  { %1222 = vst [vmem:[%s1799_s2 + $0x80] sm:$0xff] %v1130_v3  }
  0xb1   :  { %v766_v52 = vadd.f32 %v765_v47, %v703_v51  ;;  %1230 = vst [vmem:[%s1799_s2 + $0xc0] sm:$0xff] %v1170_v26  }
  0xb5   :  { %v1450_v10 = vpop.f32.mrf.mxu2  ;;  %v1503_v32 = vpop.f32.mrf.mxu3 }
  0xb6   :  { %v350_v54 = vpop.f32.mrf.mxu0  ;;  %v1418_v55 = vpop.f32.mrf.mxu1 }
  0xb7   :  { %v1055_v56 = vpack.c.bf16 %v350_v54, %v348_v48  ;;  %v633_v57 = vadd.f32 %v632_v50, %v350_v54  ;;  %v704_v58 = vmul.f32 %v350_v54, %v350_v54  ;;  %v1095_v59 = vpack.c.bf16 %v1418_v55, %v1413_v49 }
  0xb9   :  { %1207 = vst [vmem:[%s1799_s2 + $0x8] sm:$0xff] %v1055_v56   ;;  %v767_v61 = vadd.f32 %v766_v52, %v704_v58 }
  0xba   :  { %1215 = vst [vmem:[%s1799_s2 + $0x48] sm:$0xff] %v1095_v59  }
  0xbd   :  { %v1460_v13 = vpop.f32.mrf.mxu2  ;;  %v1515_v36 = vpop.f32.mrf.mxu3 }
  0xbe   :  { %v353_v62 = vpop.f32.mrf.mxu0  ;;  %v1430_v63 = vpop.f32.mrf.mxu1  ;;  %v1135_v14 = vpack.c.bf16 %v1460_v13, %v1450_v10  ;;  %v1175_v39 = vpack.c.bf16 %v1515_v36, %v1503_v32 }
  0xbf   :  { %v1432_v0 = vadd.f32 %v633_v57, %v353_v62  ;;  %v705_v1 = vmul.f32 %v353_v62, %v353_v62 }
  0xc0   :  { %1223 = vst [vmem:[%s1799_s2 + $0x88] sm:$0xff] %v1135_v14  }
  0xc1   :  { %v1438_v4 = vadd.f32 %v767_v61, %v705_v1  ;;  %1231 = vst [vmem:[%s1799_s2 + $0xc8] sm:$0xff] %v1175_v39  }
  0xc5   :  { %v1471_v19 = vpop.f32.mrf.mxu2  ;;  %v1533_v46 = vpop.f32.mrf.mxu3 }
  0xc6   :  { %v355_v6 = vpop.f32.mrf.mxu0  ;;  %v1446_v7 = vpop.f32.mrf.mxu1 }
  0xc7   :  { %v1060_v8 = vpack.c.bf16 %v355_v6, %v353_v62  ;;  %v1100_v9 = vpack.c.bf16 %v1446_v7, %v1430_v63  ;;  %v706_v52 = vmul.f32 %v355_v6, %v355_v6  ;;  %v635_v57 = vadd.f32 %v1432_v0, %v355_v6 }
  0xc9   :  { %1208 = vst [vmem:[%s1799_s2 + $0x10] sm:$0xff] %v1060_v8   ;;  %v769_v58 = vadd.f32 %v1438_v4, %v706_v52 }
  0xca   :  { %1216 = vst [vmem:[%s1799_s2 + $0x50] sm:$0xff] %v1100_v9  }
  0xcd   :  { %v1483_v23 = vpop.f32.mrf.mxu2  ;;  %v1545_v51 = vpop.f32.mrf.mxu3 }
  0xce   :  { %v358_v11 = vpop.f32.mrf.mxu0  ;;  %v1458_v12 = vpop.f32.mrf.mxu1  ;;  %v1140_v25 = vpack.c.bf16 %v1483_v23, %v1471_v19  ;;  %v1180_v54 = vpack.c.bf16 %v1545_v51, %v1533_v46 }
  0xcf   :  { %v707_v56 = vmul.f32 %v358_v11, %v358_v11  ;;  %v636_v61 = vadd.f32 %v635_v57, %v358_v11 }
  0xd0   :  { %1224 = vst [vmem:[%s1799_s2 + $0x90] sm:$0xff] %v1140_v25  }
  0xd1   :  { %1232 = vst [vmem:[%s1799_s2 + $0xd0] sm:$0xff] %v1180_v54   ;;  %v770_v62 = vadd.f32 %v769_v58, %v707_v56 }
  0xd5   :  { %v1501_v31 = vpop.f32.mrf.mxu2  ;;  %v1565_v0 = vpop.f32.mrf.mxu3 }
  0xd6   :  { %v360_v15 = vpop.f32.mrf.mxu0  ;;  %v1467_v16 = vpop.f32.mrf.mxu1 }
  0xd7   :  { %v1065_v17 = vpack.c.bf16 %v360_v15, %v358_v11  ;;  %v1105_v18 = vpack.c.bf16 %v1467_v16, %v1458_v12  ;;  %v708_v59 = vmul.f32 %v360_v15, %v360_v15  ;;  %v637_v8 = vadd.f32 %v636_v61, %v360_v15 }
  0xd9   :  { %1209 = vst [vmem:[%s1799_s2 + $0x18] sm:$0xff] %v1065_v17   ;;  %v771_v6 = vadd.f32 %v770_v62, %v708_v59 }
  0xda   :  { %1217 = vst [vmem:[%s1799_s2 + $0x58] sm:$0xff] %v1105_v18  }
  0xdd   :  { %v1513_v35 = vpop.f32.mrf.mxu2 }
  0xde   :  { %v363_v21 = vpop.f32.mrf.mxu0  ;;  %v1481_v22 = vpop.f32.mrf.mxu1  ;;  %v1145_v38 = vpack.c.bf16 %v1513_v35, %v1501_v31 }
  0xdf   :  { %v709_v1 = vmul.f32 %v363_v21, %v363_v21  ;;  %v638_v25 = vadd.f32 %v637_v8, %v363_v21 }
  0xe0   :  { %1225 = vst [vmem:[%s1799_s2 + $0x98] sm:$0xff] %v1145_v38  }
  0xe1   :  { %v772_v4 = vadd.f32 %v771_v6, %v709_v1 }
  0xe5   :  { %v1531_v45 = vpop.f32.mrf.mxu2 }
  0xe6   :  { %v365_v27 = vpop.f32.mrf.mxu0  ;;  %v1497_v28 = vpop.f32.mrf.mxu1 }
  0xe7   :  { %v1070_v29 = vpack.c.bf16 %v365_v27, %v363_v21  ;;  %v1110_v30 = vpack.c.bf16 %v1497_v28, %v1481_v22  ;;  %v710_v18 = vmul.f32 %v365_v27, %v365_v27  ;;  %v639_v15 = vadd.f32 %v638_v25, %v365_v27 }
  0xe9   :  { %1210 = vst [vmem:[%s1799_s2 + $0x20] sm:$0xff] %v1070_v29   ;;  %v773_v26 = vadd.f32 %v772_v4, %v710_v18 }
  0xea   :  { %1218 = vst [vmem:[%s1799_s2 + $0x60] sm:$0xff] %v1110_v30  }
  0xed   :  { %v1543_v50 = vpop.f32.mrf.mxu2 }
  0xee   :  { %v368_v33 = vpop.f32.mrf.mxu0  ;;  %v1511_v34 = vpop.f32.mrf.mxu1  ;;  %v1150_v53 = vpack.c.bf16 %v1543_v50, %v1531_v45 }
  0xef   :  { %v711_v11 = vmul.f32 %v368_v33, %v368_v33  ;;  %v640_v30 = vadd.f32 %v639_v15, %v368_v33 }
  0xf0   :  { %1226 = vst [vmem:[%s1799_s2 + $0xa0] sm:$0xff] %v1150_v53   ;;  %v1577_v53 = vpop.f32.mrf.mxu3 }
  0xf1   :  { %v774_v38 = vadd.f32 %v773_v26, %v711_v11  ;;  %v1185_v27 = vpack.c.bf16 %v1577_v53, %v1565_v0  ;;  %v718_v26 = vmul.f32 %v1403_v42, %v1403_v42 }
  0xf3   :  { %1233 = vst [vmem:[%s1799_s2 + $0xd8] sm:$0xff] %v1185_v27  }
  0xf5   :  { %v1563_v17 = vpop.f32.mrf.mxu2 }
  0xf6   :  { %v370_v40 = vpop.f32.mrf.mxu0  ;;  %v1527_v41 = vpop.f32.mrf.mxu1 }
  0xf7   :  { %v1075_v43 = vpack.c.bf16 %v370_v40, %v368_v33  ;;  %v1115_v44 = vpack.c.bf16 %v1527_v41, %v1511_v34  ;;  %v712_v29 = vmul.f32 %v370_v40, %v370_v40  ;;  %v641_v21 = vadd.f32 %v640_v30, %v370_v40 }
  0xf8   :  { %v1595_v4 = vpop.f32.mrf.mxu3 }
  0xf9   :  { %1211 = vst [vmem:[%s1799_s2 + $0x28] sm:$0xff] %v1075_v43   ;;  %v775_v54 = vadd.f32 %v774_v38, %v712_v29  ;;  %v719_v38 = vmul.f32 %v1413_v49, %v1413_v49 }
  0xfa   :  { %1219 = vst [vmem:[%s1799_s2 + $0x68] sm:$0xff] %v1115_v44  }
  0xfd   :  { %v1575_v52 = vpop.f32.mrf.mxu2 }
  0xfe   :  { %v373_v47 = vpop.f32.mrf.mxu0  ;;  %v1541_v48 = vpop.f32.mrf.mxu1  ;;  %v1155_v57 = vpack.c.bf16 %v1575_v52, %v1563_v17 }
  0xff   :  { %v713_v39 = vmul.f32 %v373_v47, %v373_v47  ;;  %v642_v58 = vadd.f32 %v641_v21, %v373_v47 }
 0x100   :  { %1227 = vst [vmem:[%s1799_s2 + $0xa8] sm:$0xff] %v1155_v57   ;;  %v1617_v57 = vpop.f32.mrf.mxu3 }
 0x101   :  { %v776_v33 = vadd.f32 %v775_v54, %v713_v39  ;;  %v1190_v27 = vpack.c.bf16 %v1617_v57, %v1595_v4 }
 0x103   :  { %1234 = vst [vmem:[%s1799_s2 + $0xe0] sm:$0xff] %v1190_v27  }
 0x105   :  { %v1593_v25 = vpop.f32.mrf.mxu2 }
 0x106   :  { %v375_v3 = vpop.f32.mrf.mxu0  ;;  %v1559_v5 = vpop.f32.mrf.mxu1 }
 0x107   :  { %v1080_v9 = vpack.c.bf16 %v375_v3, %v373_v47  ;;  %v1120_v14 = vpack.c.bf16 %v1559_v5, %v1541_v48  ;;  %v714_v56 = vmul.f32 %v375_v3, %v375_v3  ;;  %v643_v40 = vadd.f32 %v642_v58, %v375_v3 }
 0x108   :  { %v717_v3 = vmul.f32 %v1395_v37, %v1395_v37  ;;  %v730_v27 = vmul.f32 %v1559_v5, %v1559_v5 }
 0x109   :  { %1212 = vst [vmem:[%s1799_s2 + $0x30] sm:$0xff] %v1080_v9   ;;  %v777_v61 = vadd.f32 %v776_v33, %v714_v56 }
 0x10a   :  { %1220 = vst [vmem:[%s1799_s2 + $0x70] sm:$0xff] %v1120_v14  }
 0x10d   :  { %v1615_v56 = vpop.f32.mrf.mxu2 }
 0x10e   :  { %v378_v43 = vpop.f32.mrf.mxu0  ;;  %v1573_v44 = vpop.f32.mrf.mxu1 }
 0x10f   :  { %v715_v59 = vmul.f32 %v378_v43, %v378_v43  ;;  %v644_v62 = vadd.f32 %v643_v40, %v378_v43 }
 0x111   :  { %v778_v1 = vadd.f32 %v777_v61, %v715_v59  ;;  %v723_v61 = vmul.f32 %v1458_v12, %v1458_v12 }
 0x116   :  { %v380_v8 = vpop.f32.mrf.mxu0  ;;  %v1589_v9 = vpop.f32.mrf.mxu1 }
 0x117   :  { %v1085_v14 = vpack.c.bf16 %v380_v8, %v378_v43  ;;  %v645_v6 = vadd.f32 %v644_v62, %v380_v8  ;;  %v716_v47 = vmul.f32 %v380_v8, %v380_v8  ;;  %v1125_v18 = vpack.c.bf16 %v1589_v9, %v1573_v44 }
 0x119   :  { %1213 = vst [vmem:[%s1799_s2 + $0x38] sm:$0xff] %v1085_v14   ;;  %v646_v11 = vadd.f32 %v645_v6, %v1395_v37  ;;  %v779_v15 = vadd.f32 %v778_v1, %v716_v47  ;;  %v720_v37 = vmul.f32 %v1418_v55, %v1418_v55  ;;  %v724_v1 = vmul.f32 %v1467_v16, %v1467_v16  ;;  %v1641_v6 = vpop.f32.mrf.mxu2 }
 0x11a   :  { %1221 = vst [vmem:[%s1799_s2 + $0x78] sm:$0xff] %v1125_v18   ;;  %v725_v47 = vmul.f32 %v1481_v22, %v1481_v22 }
 0x11b   :  { %v647_v29 = vadd.f32 %v646_v11, %v1403_v42  ;;  %v780_v30 = vadd.f32 %v779_v15, %v717_v3  ;;  %v1160_v42 = vpack.c.bf16 %v1615_v56, %v1593_v25  ;;  %v726_v11 = vmul.f32 %v1497_v28, %v1497_v28 }
 0x11d   :  { %v648_v39 = vadd.f32 %v647_v29, %v1413_v49  ;;  %v781_v43 = vadd.f32 %v780_v30, %v718_v26  ;;  %v721_v49 = vmul.f32 %v1430_v63, %v1430_v63  ;;  %1228 = vst [vmem:[%s1799_s2 + $0xb0] sm:$0xff] %v1160_v42   ;;  %v728_v30 = vmul.f32 %v1527_v41, %v1527_v41 }
 0x11f   :  { %v649_v21 = vadd.f32 %v648_v39, %v1418_v55  ;;  %v782_v54 = vadd.f32 %v781_v43, %v719_v38  ;;  %v722_v55 = vmul.f32 %v1446_v7, %v1446_v7 }
 0x121   :  { %v650_v58 = vadd.f32 %v649_v21, %v1430_v63  ;;  %v783_v33 = vadd.f32 %v782_v54, %v720_v37 }
 0x123   :  { %v651_v59 = vadd.f32 %v650_v58, %v1446_v7  ;;  %v784_v40 = vadd.f32 %v783_v33, %v721_v49  ;;  %v1643_v7 = vpop.f32.mrf.mxu3 }
 0x125   :  { %v785_v62 = vadd.f32 %v784_v40, %v722_v55  ;;  %v652_v63 = vadd.f32 %v651_v59, %v1458_v12  ;;  %v732_v59 = vmul.f32 %v1589_v9, %v1589_v9 }
 0x127   :  { %v653_v8 = vadd.f32 %v652_v63, %v1467_v16  ;;  %v786_v14 = vadd.f32 %v785_v62, %v723_v61  ;;  %v727_v16 = vmul.f32 %v1511_v34, %v1511_v34  ;;  %v734_v63 = vmul.f32 %v1434_v2, %v1434_v2 }
 0x129   :  { %v654_v18 = vadd.f32 %v653_v8, %v1481_v22  ;;  %v787_v3 = vadd.f32 %v786_v14, %v724_v1  ;;  %v1657_v22 = vpop.f32.mrf.mxu2  ;;  %v735_v8 = vmul.f32 %v1450_v10, %v1450_v10 }
 0x12b   :  { %v655_v12 = vadd.f32 %v654_v18, %v1497_v28  ;;  %v788_v15 = vadd.f32 %v787_v3, %v725_v47  ;;  %v1659_v43 = vpop.f32.mrf.mxu3  ;;  %v1165_v28 = vpack.c.bf16 %v1657_v22, %v1641_v6  ;;  %v736_v47 = vmul.f32 %v1460_v13, %v1460_v13 }
 0x12c   :  { %v1195_v37 = vpack.c.bf16 %v1659_v43, %v1643_v7 }
 0x12d   :  { %v656_v26 = vadd.f32 %v655_v12, %v1511_v34  ;;  %v789_v29 = vadd.f32 %v788_v15, %v726_v11  ;;  %v729_v34 = vmul.f32 %v1541_v48, %v1541_v48  ;;  %1229 = vst [vmem:[%s1799_s2 + $0xb8] sm:$0xff] %v1165_v28  }
 0x12e   :  { %1235 = vst [vmem:[%s1799_s2 + $0xe8] sm:$0xff] %v1195_v37   ;;  %v741_v37 = vmul.f32 %v1531_v45, %v1531_v45 }
 0x12f   :  { %v657_v38 = vadd.f32 %v656_v26, %v1527_v41  ;;  %v790_v39 = vadd.f32 %v789_v29, %v727_v16  ;;  %v739_v26 = vmul.f32 %v1501_v31, %v1501_v31 }
 0x131   :  { %v658_v21 = vadd.f32 %v657_v38, %v1541_v48  ;;  %v791_v54 = vadd.f32 %v790_v39, %v728_v30  ;;  %v731_v48 = vmul.f32 %v1573_v44, %v1573_v44 }
 0x133   :  { %v792_v41 = vadd.f32 %v791_v54, %v729_v34  ;;  %v659_v42 = vadd.f32 %v658_v21, %v1559_v5  ;;  %v1683_v40 = vpop.f32.mrf.mxu3  ;;  %v733_v5 = vmul.f32 %v1422_v60, %v1422_v60  ;;  %v742_v34 = vmul.f32 %v1543_v50, %v1543_v50 }
 0x135   :  { %v793_v49 = vadd.f32 %v792_v41, %v730_v27  ;;  %v660_v58 = vadd.f32 %v659_v42, %v1573_v44  ;;  %v743_v41 = vmul.f32 %v1563_v17, %v1563_v17 }
 0x137   :  { %v794_v33 = vadd.f32 %v793_v49, %v731_v48  ;;  %v661_v55 = vadd.f32 %v660_v58, %v1589_v9  ;;  %v744_v49 = vmul.f32 %v1575_v52, %v1575_v52 }
 0x139   :  { %v662_v61 = vadd.f32 %v661_v55, %v1422_v60  ;;  %v795_v62 = vadd.f32 %v794_v33, %v732_v59 }
 0x13b   :  { %v663_v1 = vadd.f32 %v662_v61, %v1434_v2  ;;  %v796_v44 = vadd.f32 %v795_v62, %v733_v5  ;;  %v1697_v60 = vpop.f32.mrf.mxu3  ;;  %v737_v2 = vmul.f32 %v1471_v19, %v1471_v19  ;;  %v747_v62 = vmul.f32 %v1641_v6, %v1641_v6 }
 0x13c   :  { %v1200_v11 = vpack.c.bf16 %v1697_v60, %v1683_v40 }
 0x13d   :  { %v664_v14 = vadd.f32 %v663_v1, %v1450_v10  ;;  %v797_v9 = vadd.f32 %v796_v44, %v734_v63  ;;  %v738_v10 = vmul.f32 %v1483_v23, %v1483_v23  ;;  %v749_v44 = vmul.f32 %v1473_v20, %v1473_v20 }
 0x13e   :  { %1236 = vst [vmem:[%s1799_s2 + $0xf0] sm:$0xff] %v1200_v11  }
 0x13f   :  { %v665_v18 = vadd.f32 %v664_v14, %v1460_v13  ;;  %v798_v3 = vadd.f32 %v797_v9, %v735_v8 }
 0x141   :  { %v666_v12 = vadd.f32 %v665_v18, %v1471_v19  ;;  %v799_v15 = vadd.f32 %v798_v3, %v736_v47  ;;  %v740_v19 = vmul.f32 %v1513_v35, %v1513_v35 }
 0x143   :  { %v667_v13 = vadd.f32 %v666_v12, %v1483_v23  ;;  %v800_v16 = vadd.f32 %v799_v15, %v737_v2  ;;  %v1716_v28 = vpop.f32.mrf.mxu3 }
 0x145   :  { %v801_v29 = vadd.f32 %v800_v16, %v738_v10  ;;  %v668_v30 = vadd.f32 %v667_v13, %v1501_v31 }
 0x147   :  { %v669_v38 = vadd.f32 %v668_v30, %v1513_v35  ;;  %v802_v39 = vadd.f32 %v801_v29, %v739_v26 }
 0x149   :  { %v670_v23 = vadd.f32 %v669_v38, %v1531_v45  ;;  %v803_v21 = vadd.f32 %v802_v39, %v740_v19 }
 0x14b   :  { %v671_v54 = vadd.f32 %v670_v23, %v1543_v50  ;;  %v804_v31 = vadd.f32 %v803_v21, %v741_v37  ;;  %v500_v45 = vpop.f32.mrf.mxu3  ;;  %v745_v50 = vmul.f32 %v1593_v25, %v1593_v25 }
 0x14c   :  { %v1205_v48 = vpack.c.bf16 %v500_v45, %v1716_v28 }
 0x14d   :  { %v672_v35 = vadd.f32 %v671_v54, %v1563_v17  ;;  %v805_v42 = vadd.f32 %v804_v31, %v742_v34  ;;  %v760_v34 = vmul.f32 %v1659_v43, %v1659_v43 }
 0x14e   :  { %1237 = vst [vmem:[%s1799_s2 + $0xf8] sm:$0xff] %v1205_v48   ;;  %v764_v48 = vmul.f32 %v500_v45, %v500_v45 }
 0x14f   :  { %v673_v27 = vadd.f32 %v672_v35, %v1575_v52  ;;  %v806_v58 = vadd.f32 %v805_v42, %v743_v41  ;;  %v746_v52 = vmul.f32 %v1615_v56, %v1615_v56  ;;  %v761_v41 = vmul.f32 %v1683_v40, %v1683_v40 }
 0x150   :  { %v762_v42 = vmul.f32 %v1697_v60, %v1697_v60 }
 0x151   :  { %v807_v33 = vadd.f32 %v806_v58, %v744_v49  ;;  %v674_v55 = vadd.f32 %v673_v27, %v1593_v25  ;;  %v748_v25 = vmul.f32 %v1657_v22, %v1657_v22  ;;  %v763_v49 = vmul.f32 %v1716_v28, %v1716_v28 }
 0x153   :  { %v808_v17 = vadd.f32 %v807_v33, %v745_v50  ;;  %v675_v59 = vadd.f32 %v674_v55, %v1615_v56  ;;  %v750_v56 = vmul.f32 %v1485_v24, %v1485_v24 }
 0x155   :  { %v809_v5 = vadd.f32 %v808_v17, %v746_v52  ;;  %v676_v61 = vadd.f32 %v675_v59, %v1641_v6  ;;  %v751_v6 = vmul.f32 %v1503_v32, %v1503_v32 }
 0x157   :  { %v810_v63 = vadd.f32 %v809_v5, %v747_v62  ;;  %v677_v1 = vadd.f32 %v676_v61, %v1657_v22  ;;  %v752_v22 = vmul.f32 %v1515_v36, %v1515_v36 }
 0x159   :  { %v678_v8 = vadd.f32 %v677_v1, %v1473_v20  ;;  %v811_v14 = vadd.f32 %v810_v63, %v748_v25  ;;  %v753_v20 = vmul.f32 %v1533_v46, %v1533_v46 }
 0x15b   :  { %v679_v9 = vadd.f32 %v678_v8, %v1485_v24  ;;  %v812_v47 = vadd.f32 %v811_v14, %v749_v44  ;;  %v754_v24 = vmul.f32 %v1545_v51, %v1545_v51 }
 0x15d   :  { %v680_v18 = vadd.f32 %v679_v9, %v1503_v32  ;;  %v813_v3 = vadd.f32 %v812_v47, %v750_v56  ;;  %v755_v32 = vmul.f32 %v1565_v0, %v1565_v0 }
 0x15f   :  { %v681_v11 = vadd.f32 %v680_v18, %v1515_v36  ;;  %v814_v2 = vadd.f32 %v813_v3, %v751_v6  ;;  %v756_v36 = vmul.f32 %v1577_v53, %v1577_v53 }
 0x161   :  { %v682_v12 = vadd.f32 %v681_v11, %v1533_v46  ;;  %v815_v15 = vadd.f32 %v814_v2, %v752_v22  ;;  %v757_v46 = vmul.f32 %v1595_v4, %v1595_v4 }
 0x163   :  { %v683_v10 = vadd.f32 %v682_v12, %v1545_v51  ;;  %v816_v13 = vadd.f32 %v815_v15, %v753_v20  ;;  %v758_v51 = vmul.f32 %v1617_v57, %v1617_v57 }
 0x165   :  { %v817_v16 = vadd.f32 %v816_v13, %v754_v24  ;;  %v684_v26 = vadd.f32 %v683_v10, %v1565_v0  ;;  %v759_v0 = vmul.f32 %v1643_v7, %v1643_v7 }
 0x167   :  { %v685_v29 = vadd.f32 %v684_v26, %v1577_v53  ;;  %v818_v30 = vadd.f32 %v817_v16, %v755_v32 }
 0x169   :  { %v686_v19 = vadd.f32 %v685_v29, %v1595_v4  ;;  %v819_v38 = vadd.f32 %v818_v30, %v756_v36 }
 0x16b   :  { %v687_v39 = vadd.f32 %v686_v19, %v1617_v57  ;;  %v820_v37 = vadd.f32 %v819_v38, %v757_v46 }
 0x16d   :  { %v688_v23 = vadd.f32 %v687_v39, %v1643_v7  ;;  %v821_v21 = vadd.f32 %v820_v37, %v758_v51 }
 0x16f   :  { %v689_v53 = vadd.f32 %v688_v23, %v1659_v43  ;;  %v822_v54 = vadd.f32 %v821_v21, %v759_v0 }
 0x171   :  { %v823_v4 = vadd.f32 %v822_v54, %v760_v34  ;;  %v690_v31 = vadd.f32 %v689_v53, %v1683_v40 }
 0x173   :  { %v824_v57 = vadd.f32 %v823_v4, %v761_v41  ;;  %v691_v35 = vadd.f32 %v690_v31, %v1697_v60 }
 0x175   :  { %v825_v7 = vadd.f32 %v824_v57, %v762_v42  ;;  %v692_v27 = vadd.f32 %v691_v35, %v1716_v28 }
 0x177   :  { %v826_v43 = vadd.f32 %v825_v7, %v763_v49  ;;  %v693_v58 = vadd.f32 %v692_v27, %v500_v45 }
 0x179   :  { %v694_v33 = vrot.slane %v693_v58, 4  ;;  %v827_v55 = vadd.f32 %v826_v43, %v764_v48 }
 0x17b   :  { %v695_v50 = vadd.f32 %v694_v33, %v693_v58  ;;  %v828_v17 = vrot.slane %v827_v55, 4 }
 0x17d   :  { %v696_v40 = vrot.slane %v695_v50, 2  ;;  %v829_v59 = vadd.f32 %v828_v17, %v827_v55 }
 0x17f   :  { %v697_v52 = vadd.f32 %v696_v40, %v695_v50  ;;  %v830_v5 = vrot.slane %v829_v59, 2 }
 0x181   :  { %v698_v61 = vrot.slane %v697_v52, 1  ;;  %v831_v62 = vadd.f32 %v830_v5, %v829_v59 }
 0x183   :  { %v699_v60 = vadd.f32 %v698_v61, %v697_v52  ;;  %v832_v63 = vrot.slane %v831_v62, 1 }
 0x185   :  { %700 = vst [vmem:[%s1800_s3] sm:$0x1] %v699_v60  ;;  %v833_v28 = vadd.f32 %v832_v63, %v831_v62 }
 0x187   :  { %834 = vst [vmem:[%s1801_s4] sm:$0x1] %v833_v28 }

// kernel: bottleneck_forward.8
= control target key start
LH: loop header
LB: loop body
LE: loop exit
PB: predicated region body
PF: predicated region fallthrough
CT: control target
= control target key end

     0   :  { %s923_s15 = smov 0   ;;  %s925_s16 = smov 0   ;;  %s1060_s0 = inlined_call_operand.vmem [shape: bf16[2,8,2,8,256], index: 0, kind: input, shape index: {}]   ;;  %s1061_s1 = inlined_call_operand.vmem [shape: bf16[256,128], index: 1, kind: input, shape index: {}]   ;;  %s1062_s2 = inlined_call_operand.vmem [shape: bf16[2,64,128], index: 2, kind: output, shape index: {0}]   ;;  %s1063_s3 = inlined_call_operand.vmem [shape: f32[2,1,128], index: 3, kind: output, shape index: {1}]   ;;  %s1064_s4 = inlined_call_operand.vmem [shape: f32[2,1,128], index: 4, kind: output, shape index: {2}]  }
   0x1   :  { %s927_s17 = smov 0  }
   0x2 LB: > { %s676_s18 = sadd.s32 4294967295, %s896_s17   ;;  %s940_s19 = sadd.s32 1, %s896_s17   ;;  %s896_s17 = sphi %s927_s17, %s1067_s17   ;;  %s892_s16 = sphi %s925_s16, %s1066_s16   ;;  %s888_s15 = sphi %s923_s15, %s1065_s15  }
   0x3   : > { %s19_s20 = ssub.s32 %s896_s17, %s940_s19  ;;  %s22_s21 = sadd.s32 1, %s892_s16 }
   0x4   : > { %p20_p0 = scmp.eq.s32.totalorder %s19_s20, 0  ;;  %p29_p1 = scmp.ne.s32.totalorder %s892_s16, %s888_s15 }
   0x5   : > { %p30_p2 = scmp.eq.s32.totalorder %s896_s17, 0  ;;  %p679_p4 = scmp.ge.s32.totalorder %s896_s17, 2 }
   0x6   : > { %s949_s22 = scalar_select %p20_p0, %s892_s16, %s22_s21  }
   0x7   : > { %p31_p3 = por %p30_p2, %p29_p1  ;;  %157 = sbr.rel (%p679_p4) target bundleno = 24 (0x18), region = 20 }
   0xc   : > { %160 = sbr.rel (!%p31_p3) target bundleno = 24 (0x18), region = 24  ;;  %s162_s23 = sand.u32 (%p31_p3), 1, %s892_s16  }
   0xd   : > { %s785_s24 = sshll.u32 (%p31_p3), %s896_s17, 7  ;;  %s680_s25 = sshll.u32 (%p31_p3), %s162_s23, 6 }
   0xe   : > { %s167_s28 = scalar_lea.vmem (%p31_p3), %s1060_s0, %s785_s24  ;;  %s164_s29 = scalar_lea.vmem (%p31_p3), [#allocation2], %s680_s25 }
   0xf   : > { %v210_v0 = vld [vmem:[%s167_s28] sm:$0xff] (%p31_p3)  ;;  %v212_v1 = vld [vmem:[%s167_s28 + $0x10] sm:$0xff] (%p31_p3) }
  0x10   : > { %v214_v2 = vld [vmem:[%s167_s28 + $0x20] sm:$0xff] (%p31_p3)  ;;  %211 = vst [vmem:[%s164_s29] sm:$0xff] (%p31_p3), %v210_v0  ;;  %v216_v3 = vld [vmem:[%s167_s28 + $0x30] sm:$0xff] (%p31_p3) }
  0x11   : > { %213 = vst [vmem:[%s164_s29 + $0x8] sm:$0xff] %v212_v1  ;;  %v218_v4 = vld [vmem:[%s167_s28 + $0x40] sm:$0xff]  ;;  %v220_v5 = vld [vmem:[%s167_s28 + $0x50] sm:$0xff] }
  0x12   : > { %215 = vst [vmem:[%s164_s29 + $0x10] sm:$0xff] %v214_v2  ;;  %v222_v6 = vld [vmem:[%s167_s28 + $0x60] sm:$0xff]  ;;  %v224_v7 = vld [vmem:[%s167_s28 + $0x70] sm:$0xff] }
  0x13   : > { %217 = vst [vmem:[%s164_s29 + $0x18] sm:$0xff] %v216_v3 }
  0x14   : > { %219 = vst [vmem:[%s164_s29 + $0x20] sm:$0xff] %v218_v4 }
  0x15   : > { %221 = vst [vmem:[%s164_s29 + $0x28] sm:$0xff] %v220_v5 }
  0x16   : > { %223 = vst [vmem:[%s164_s29 + $0x30] sm:$0xff] %v222_v6 }
  0x17   : > { %225 = vst [vmem:[%s164_s29 + $0x38] sm:$0xff] %v224_v7 }
  0x18 PF: > { %p683_p5 = scmp.ge.s32.totalorder %s896_s17, 1  ;;  %p230_p6 = scmp.lt.s32.totalorder %s896_s17, 3 }
  0x1a   : > { %p231_p7 = pnand %p683_p5, %p230_p6 }
  0x1b   : > { %s237_s30 = sand.u32 (!%p231_p7), 1, %s888_s15   ;;  %p268_p8 = scmp.lt.s32.totalorder (!%p231_p7), %s676_s18, 1 }
  0x1c   : > { %234 = sbr.rel (%p231_p7) target bundleno = 243 (0xf3), region = 62  ;;  %s684_s9 = sshll.u32 (!%p231_p7), %s237_s30, 6 }
  0x1d   : > { %s1008_s23 = scalar_lea.vmem (!%p231_p7), [#allocation2], %s684_s9 }
  0x21   : > { %v802_v8 = vld [vmem:[%s1061_s1 + $0x38] sm:$0xff]  ;;  %v801_v10 = vld [vmem:[%s1061_s1 + $0x30] sm:$0xff]  ;;  %v800_v12 = vld [vmem:[%s1061_s1 + $0x28] sm:$0xff]  ;;  %s1069_s18 = smov (!%p268_p8, %s676_s18), 1 }
  0x22   : > { %v810_v9 = vld [vmem:[%s1061_s1 + $0x78] sm:$0xff]  ;;  %455 = vmatpush.bf16.msra.mxu0 %v802_v8  ;;  %834 = vmatpush.bf16.msra.mxu2 %v802_v8  ;;  %v809_v11 = vld [vmem:[%s1061_s1 + $0x70] sm:$0xff]  ;;  %v808_v13 = vld [vmem:[%s1061_s1 + $0x68] sm:$0xff]  ;;  %s786_s24 = sshll.u32 %s1069_s18, 5  ;;  %s275_s29 = scalar_lea.vmem %s1063_s3, %s1069_s18 }
  0x23   : > { %484 = vmatpush.bf16.msra.mxu1 %v810_v9  ;;  %842 = vmatpush.bf16.msra.mxu3 %v810_v9  ;;  %v799_v14 = vld [vmem:[%s1061_s1 + $0x20] sm:$0xff]  ;;  %v798_v16 = vld [vmem:[%s1061_s1 + $0x18] sm:$0xff]  ;;  %v797_v18 = vld [vmem:[%s1061_s1 + $0x10] sm:$0xff]  ;;  %s1036_s27 = scalar_lea.vmem %s1062_s2, %s786_s24  ;;  %s278_s6 = scalar_lea.vmem %s1064_s4, %s1069_s18 }
  0x24   : > { %v807_v15 = vld [vmem:[%s1061_s1 + $0x60] sm:$0xff]  ;;  %v806_v17 = vld [vmem:[%s1061_s1 + $0x58] sm:$0xff]  ;;  %v805_v19 = vld [vmem:[%s1061_s1 + $0x50] sm:$0xff] }
  0x25   : > { %v796_v20 = vld [vmem:[%s1061_s1 + $0x8] sm:$0xff]  ;;  %v795_v22 = vld [vmem:[%s1061_s1] sm:$0xff]  ;;  %v697_v36 = vld [vmem:[%s1008_s23 + $0x10] sm:$0xf] }
  0x26   : > { %456 = vmatpush.bf16.msra.mxu0 %v801_v10  ;;  %835 = vmatpush.bf16.msra.mxu2 %v801_v10  ;;  %v804_v21 = vld [vmem:[%s1061_s1 + $0x48] sm:$0xff]  ;;  %v803_v23 = vld [vmem:[%s1061_s1 + $0x40] sm:$0xff]  ;;  %v790_v37 = vld [vmem:[%s1008_s23 + $0x14] sm:$0xf0] }
  0x27   : > { %485 = vmatpush.bf16.msra.mxu1 %v809_v11  ;;  %843 = vmatpush.bf16.msra.mxu3 %v809_v11  ;;  %v689_v24 = vld [vmem:[%s1008_s23] sm:$0xf]  ;;  %v788_v25 = vld [vmem:[%s1008_s23 + $0x4] sm:$0xf0]  ;;  %v787_v28 = vld [vmem:[%s1008_s23 + $0x4] sm:$0xf]  ;;  %v698_v44 = vor.u32 %v790_v37, %v697_v36 }
  0x28   : > { %v705_v26 = vld [vmem:[%s1008_s23 + $0x20] sm:$0xf]  ;;  %v792_v27 = vld [vmem:[%s1008_s23 + $0x24] sm:$0xf0]  ;;  %v691_v29 = vld [vmem:[%s1008_s23 + $0x8] sm:$0xf0]  ;;  %v690_v32 = vor.u32 %v788_v25, %v689_v24 }
  0x29   : > { %v791_v30 = vld [vmem:[%s1008_s23 + $0x24] sm:$0xf]  ;;  %v707_v31 = vld [vmem:[%s1008_s23 + $0x28] sm:$0xf0]  ;;  %v706_v33 = vor.u32 %v792_v27, %v705_v26  ;;  %v694_v34 = vor.u32 %v787_v28, %v691_v29  ;;  %v713_v38 = vld [vmem:[%s1008_s23 + $0x30] sm:$0xf] }
  0x2a   : > { %457 = vmatpush.bf16.msra.mxu0 %v800_v12  ;;  %836 = vmatpush.bf16.msra.mxu2 %v800_v12  ;;  %v710_v35 = vor.u32 %v791_v30, %v707_v31  ;;  %v794_v39 = vld [vmem:[%s1008_s23 + $0x34] sm:$0xf0]  ;;  %v789_v40 = vld [vmem:[%s1008_s23 + $0x14] sm:$0xf]  ;;  %v699_v41 = vld [vmem:[%s1008_s23 + $0x18] sm:$0xf0] }
  0x2b   : > { %486 = vmatpush.bf16.msra.mxu1 %v808_v13  ;;  %844 = vmatpush.bf16.msra.mxu3 %v808_v13  ;;  %v793_v42 = vld [vmem:[%s1008_s23 + $0x34] sm:$0xf]  ;;  %v715_v43 = vld [vmem:[%s1008_s23 + $0x38] sm:$0xf0]  ;;  %v714_v45 = vor.u32 %v794_v39, %v713_v38  ;;  %v702_v46 = vor.u32 %v789_v40, %v699_v41 }
  0x2c   : > { %v718_v47 = vor.u32 %v793_v42, %v715_v43 }
  0x2e   : > { %458 = vmatpush.bf16.msra.mxu0 %v799_v14  ;;  %837 = vmatpush.bf16.msra.mxu2 %v799_v14 }
  0x2f   : > { %487 = vmatpush.bf16.msra.mxu1 %v807_v15  ;;  %845 = vmatpush.bf16.msra.mxu3 %v807_v15 }
  0x32   : > { %459 = vmatpush.bf16.msra.mxu0 %v798_v16  ;;  %838 = vmatpush.bf16.msra.mxu2 %v798_v16 }
  0x33   : > { %488 = vmatpush.bf16.msra.mxu1 %v806_v17  ;;  %846 = vmatpush.bf16.msra.mxu3 %v806_v17 }
  0x36   : > { %460 = vmatpush.bf16.msra.mxu0 %v797_v18  ;;  %839 = vmatpush.bf16.msra.mxu2 %v797_v18 }
  0x37   : > { %489 = vmatpush.bf16.msra.mxu1 %v805_v19  ;;  %847 = vmatpush.bf16.msra.mxu3 %v805_v19 }
  0x3a   : > { %461 = vmatpush.bf16.msra.mxu0 %v796_v20  ;;  %840 = vmatpush.bf16.msra.mxu2 %v796_v20 }
  0x3b   : > { %490 = vmatpush.bf16.msra.mxu1 %v804_v21  ;;  %848 = vmatpush.bf16.msra.mxu3 %v804_v21 }
  0x3e   : > { %462 = vmatpush.bf16.msra.mxu0 %v795_v22  ;;  %841 = vmatpush.bf16.msra.mxu2 %v795_v22 }
  0x3f   : > { %491 = vmatpush.bf16.msra.mxu1 %v803_v23  ;;  %849 = vmatpush.bf16.msra.mxu3 %v803_v23 }
  0x41   : > { %463 = vmatmul.bf16.vlgmr.msra.gmra.mxu0 %v690_v32  ;;  %473 = vmatmul.bf16.vlgmr.msra.gmra.mxu2 %v706_v33 }
  0x42   : > { %492 = vmatmul.bf16.vlgmr.msra.gmra.mxu1 %v694_v34  ;;  %502 = vmatmul.bf16.vlgmr.msra.gmra.mxu3 %v710_v35 }
  0x51   : > { %468 = vmatmul.bf16.gmra.mxu0 %v698_v44  ;;  %478 = vmatmul.bf16.gmra.mxu2 %v714_v45 }
  0x52   : > { %497 = vmatmul.bf16.gmra.mxu1 %v702_v46  ;;  %507 = vmatmul.bf16.gmra.mxu3 %v718_v47 }
  0xbe   : > { %v464_v48 = vpop.f32.mrf.mxu0 }
  0xbf   : > { %v493_v49 = vpop.f32.mrf.mxu1 }
  0xc0   : > { %v494_v54 = vadd.f32 %v493_v49, %v464_v48 }
  0xc2   : > { %v543_v4 = vmul.f32 %v494_v54, %v494_v54 }
  0xc4   : > { %v474_v50 = vpop.f32.mrf.mxu2 }
  0xc5   : > { %v503_v51 = vpop.f32.mrf.mxu3 }
  0xc6   : > { %v466_v52 = vpop.f32.mrf.mxu0  ;;  %v504_v59 = vadd.f32 %v503_v51, %v474_v50 }
  0xc7   : > { %v495_v53 = vpop.f32.mrf.mxu1 }
  0xc8   : > { %v496_v55 = vadd.f32 %v495_v53, %v466_v52  ;;  %v547_v16 = vmul.f32 %v504_v59, %v504_v59 }
  0xca   : > { %v814_v56 = vpack.c.bf16 %v496_v55, %v494_v54  ;;  %v544_v1 = vmul.f32 %v496_v55, %v496_v55  ;;  %v529_v5 = vadd.f32 %v496_v55, %v494_v54 }
  0xcc   : > { %815 = vst [vmem:[%s1036_s27] sm:$0xff] %v814_v56   ;;  %v476_v57 = vpop.f32.mrf.mxu2  ;;  %v551_v9 = vadd.f32 %v544_v1, %v543_v4 }
  0xcd   : > { %v505_v58 = vpop.f32.mrf.mxu3 }
  0xce   : > { %v506_v60 = vadd.f32 %v505_v58, %v476_v57  ;;  %v469_v61 = vpop.f32.mrf.mxu0 }
  0xcf   : > { %v498_v62 = vpop.f32.mrf.mxu1 }
  0xd0   : > { %v824_v63 = vpack.c.bf16 %v506_v60, %v504_v59  ;;  %v499_v0 = vadd.f32 %v498_v62, %v469_v61  ;;  %v548_v22 = vmul.f32 %v506_v60, %v506_v60 }
  0xd2   : > { %832 = vst [vmem:[%s1036_s27 + $0x10] sm:$0xff] %v824_v63   ;;  %v545_v6 = vmul.f32 %v499_v0, %v499_v0  ;;  %v530_v10 = vadd.f32 %v529_v5, %v499_v0 }
  0xd4   : > { %v479_v2 = vpop.f32.mrf.mxu2  ;;  %v552_v12 = vadd.f32 %v551_v9, %v545_v6 }
  0xd5   : > { %v508_v3 = vpop.f32.mrf.mxu3 }
  0xd6   : > { %v471_v7 = vpop.f32.mrf.mxu0  ;;  %v509_v17 = vadd.f32 %v508_v3, %v479_v2 }
  0xd7   : > { %v500_v8 = vpop.f32.mrf.mxu1 }
  0xd8   : > { %v501_v11 = vadd.f32 %v500_v8, %v471_v7  ;;  %v549_v26 = vmul.f32 %v509_v17, %v509_v17 }
  0xda   : > { %v819_v13 = vpack.c.bf16 %v501_v11, %v499_v0  ;;  %v531_v14 = vadd.f32 %v530_v10, %v501_v11  ;;  %v546_v15 = vmul.f32 %v501_v11, %v501_v11 }
  0xdc   : > { %831 = vst [vmem:[%s1036_s27 + $0x8] sm:$0xff] %v819_v13   ;;  %v532_v18 = vadd.f32 %v531_v14, %v504_v59  ;;  %v553_v19 = vadd.f32 %v552_v12, %v546_v15  ;;  %v481_v20 = vpop.f32.mrf.mxu2 }
  0xdd   : > { %v510_v21 = vpop.f32.mrf.mxu3 }
  0xde   : > { %v554_v23 = vadd.f32 %v553_v19, %v547_v16  ;;  %v511_v24 = vadd.f32 %v510_v21, %v481_v20  ;;  %v533_v25 = vadd.f32 %v532_v18, %v506_v60 }
  0xe0   : > { %v829_v27 = vpack.c.bf16 %v511_v24, %v509_v17  ;;  %v534_v28 = vadd.f32 %v533_v25, %v509_v17  ;;  %v555_v29 = vadd.f32 %v554_v23, %v548_v22  ;;  %v550_v31 = vmul.f32 %v511_v24, %v511_v24 }
  0xe2   : > { %833 = vst [vmem:[%s1036_s27 + $0x18] sm:$0xff] %v829_v27   ;;  %v535_v30 = vadd.f32 %v534_v28, %v511_v24  ;;  %v556_v32 = vadd.f32 %v555_v29, %v549_v26 }
  0xe4   : > { %v536_v33 = vrot.slane %v535_v30, 4  ;;  %v557_v34 = vadd.f32 %v556_v32, %v550_v31 }
  0xe6   : > { %v537_v35 = vadd.f32 %v536_v33, %v535_v30  ;;  %v558_v36 = vrot.slane %v557_v34, 4 }
  0xe8   : > { %v538_v37 = vrot.slane %v537_v35, 2  ;;  %v559_v38 = vadd.f32 %v558_v36, %v557_v34 }
  0xea   : > { %v539_v39 = vadd.f32 %v538_v37, %v537_v35  ;;  %v560_v40 = vrot.slane %v559_v38, 2 }
  0xec   : > { %v540_v41 = vrot.slane %v539_v39, 1  ;;  %v561_v42 = vadd.f32 %v560_v40, %v559_v38 }
  0xee   : > { %v541_v43 = vadd.f32 %v540_v41, %v539_v39  ;;  %v562_v44 = vrot.slane %v561_v42, 1 }
  0xf0   : > { %542 = vst [vmem:[%s275_s29] sm:$0x1] %v541_v43  ;;  %v563_v45 = vadd.f32 %v562_v44, %v561_v42 }
  0xf2   : > { %564 = vst [vmem:[%s278_s6] sm:$0x1] %v563_v45 }
  0xf3 PF: > { %p12_p9 = scmp.ge.s32.totalorder %s940_s19, 4   ;;  %s1065_s15 = smov %s892_s16 }
  0xf4   : > { %s1066_s16 = smov %s949_s22  ;;  %s1067_s17 = smov %s940_s19 }
  0xf5   :  { %14 = sbr.rel (!%p12_p9) target bundleno = 2 (0x2), region = 125 }

// kernel: bottleneck_forward.7
= control target key start
LH: loop header
LB: loop body
LE: loop exit
PB: predicated region body
PF: predicated region fallthrough
CT: control target
= control target key end

     0   :  { %s646_s3 = inlined_call_operand.vmem [shape: bf16[128,128], index: 3, kind: input, shape index: {}]   ;;  %s647_s1 = inlined_call_operand.vmem [shape: f32[1,128], index: 1, kind: input, shape index: {}]   ;;  %s648_s2 = inlined_call_operand.vmem [shape: f32[1,128], index: 2, kind: input, shape index: {}]   ;;  %s649_s0 = inlined_call_operand.vmem [shape: bf16[128,128], index: 0, kind: input, shape index: {}]   ;;  %s650_s4 = inlined_call_operand.vmem [shape: bf16[128,128], index: 4, kind: output, shape index: {0}]   ;;  %s651_s5 = inlined_call_operand.vmem [shape: f32[1,1,128], index: 5, kind: output, shape index: {1}]   ;;  %s652_s6 = inlined_call_operand.vmem [shape: f32[1,1,128], index: 6, kind: output, shape index: {2}]  }
   0x1   :  { %v372_v0 = vld [vmem:[%s646_s3 + $0x38] sm:$0xff]  ;;  %v371_v1 = vld [vmem:[%s646_s3 + $0x30] sm:$0xff]  ;;  %v370_v2 = vld [vmem:[%s646_s3 + $0x28] sm:$0xff] }
   0x2   :  { %180 = vmatpush.bf16.msra.mxu0 %v372_v0  ;;  %459 = vmatpush.bf16.msra.mxu1 %v372_v0  ;;  %v374_v3 = vld [vmem:[%s649_s0] sm:$0xff]   ;;  %v446_v5 = vld [vmem:[%s649_s0 + $0x10] sm:$0xff]   ;;  %v368_v15 = vld [vmem:[%s646_s3 + $0x18] sm:$0xff] }
   0x3   :  { %460 = vmatpush.bf16.msra.mxu2 %v372_v0  ;;  %461 = vmatpush.bf16.msra.mxu3 %v372_v0  ;;  %v369_v4 = vld [vmem:[%s646_s3 + $0x20] sm:$0xff]  ;;  %v450_v7 = vld [vmem:[%s649_s0 + $0x30] sm:$0xff]   ;;  %v375_v8 = vunpack.c.l.bf16 %v374_v3  ;;  %v376_v9 = vunpack.c.h.bf16 %v374_v3  ;;  %v383_v11 = vunpack.c.l.bf16 %v446_v5  ;;  %v384_v12 = vunpack.c.h.bf16 %v446_v5  ;;  %v366_v34 = vld [vmem:[%s646_s3 + $0x8] sm:$0xff] }
   0x4   :  { %v448_v6 = vld [vmem:[%s649_s0 + $0x20] sm:$0xff]   ;;  %v399_v16 = vunpack.c.l.bf16 %v450_v7  ;;  %v400_v17 = vunpack.c.h.bf16 %v450_v7  ;;  %v367_v25 = vld [vmem:[%s646_s3 + $0x10] sm:$0xff]  ;;  %v445_v43 = vld [vmem:[%s649_s0 + $0x8] sm:$0xff]  }
   0x5   :  { %v547_v10 = vld [vmem:[%s647_s1] ss:$0 sm:$0xff]  ;;  %v391_v13 = vunpack.c.l.bf16 %v448_v6  ;;  %v392_v14 = vunpack.c.h.bf16 %v448_v6  ;;  %v447_v44 = vld [vmem:[%s649_s0 + $0x18] sm:$0xff]   ;;  %v449_v48 = vld [vmem:[%s649_s0 + $0x28] sm:$0xff]   ;;  %v379_v51 = vunpack.c.l.bf16 %v445_v43  ;;  %v380_v52 = vunpack.c.h.bf16 %v445_v43 }
   0x6   :  { %181 = vmatpush.bf16.msra.mxu0 %v371_v1  ;;  %462 = vmatpush.bf16.msra.mxu1 %v371_v1  ;;  %v56_v18 = vmul.f32 %v547_v10, %v375_v8  ;;  %v57_v19 = vmul.f32 %v547_v10, %v376_v9  ;;  %v557_v20 = vld [vmem:[%s648_s2] ss:$0 sm:$0xff]  ;;  %v60_v21 = vmul.f32 %v547_v10, %v383_v11  ;;  %v451_v49 = vld [vmem:[%s649_s0 + $0x38] sm:$0xff]   ;;  %v387_v53 = vunpack.c.l.bf16 %v447_v44 }
   0x7   :  { %463 = vmatpush.bf16.msra.mxu2 %v371_v1  ;;  %464 = vmatpush.bf16.msra.mxu3 %v371_v1  ;;  %v61_v22 = vmul.f32 %v547_v10, %v384_v12  ;;  %v64_v23 = vmul.f32 %v547_v10, %v391_v13  ;;  %v65_v24 = vmul.f32 %v547_v10, %v392_v14  ;;  %v365_v45 = vld [vmem:[%s646_s3] sm:$0xff]  ;;  %v388_v56 = vunpack.c.h.bf16 %v447_v44 }
   0x8   :  { %v68_v26 = vmul.f32 %v547_v10, %v399_v16  ;;  %v69_v27 = vmul.f32 %v547_v10, %v400_v17  ;;  %v76_v28 = vadd.f32 %v557_v20, %v56_v18  ;;  %v77_v29 = vadd.f32 %v557_v20, %v57_v19 }
   0x9   :  { %v80_v30 = vadd.f32 %v557_v20, %v60_v21  ;;  %v81_v31 = vadd.f32 %v557_v20, %v61_v22  ;;  %v84_v32 = vadd.f32 %v557_v20, %v64_v23  ;;  %v85_v33 = vadd.f32 %v557_v20, %v65_v24 }
   0xa   :  { %182 = vmatpush.bf16.msra.mxu0 %v370_v2  ;;  %465 = vmatpush.bf16.msra.mxu1 %v370_v2  ;;  %v88_v35 = vadd.f32 %v557_v20, %v68_v26  ;;  %v89_v36 = vadd.f32 %v557_v20, %v69_v27  ;;  %v92_v37 = vmax.f32 %v76_v28, 0.0  ;;  %v93_v38 = vmax.f32 %v77_v29, 0.0 }
   0xb   :  { %466 = vmatpush.bf16.msra.mxu2 %v370_v2  ;;  %467 = vmatpush.bf16.msra.mxu3 %v370_v2  ;;  %v96_v39 = vmax.f32 %v80_v30, 0.0  ;;  %v97_v40 = vmax.f32 %v81_v31, 0.0  ;;  %v100_v41 = vmax.f32 %v84_v32, 0.0  ;;  %v101_v42 = vmax.f32 %v85_v33, 0.0 }
   0xc   :  { %v104_v46 = vmax.f32 %v88_v35, 0.0  ;;  %v105_v47 = vmax.f32 %v89_v36, 0.0  ;;  %v108_v50 = vpack.c.bf16 %v93_v38, %v92_v37  ;;  %v395_v57 = vunpack.c.l.bf16 %v449_v48 }
   0xd   :  { %v110_v54 = vpack.c.bf16 %v97_v40, %v96_v39  ;;  %v112_v55 = vpack.c.bf16 %v101_v42, %v100_v41  ;;  %v396_v59 = vunpack.c.h.bf16 %v449_v48  ;;  %v403_v60 = vunpack.c.l.bf16 %v451_v49 }
   0xe   :  { %183 = vmatpush.bf16.msra.mxu0 %v369_v4  ;;  %468 = vmatpush.bf16.msra.mxu1 %v369_v4  ;;  %v114_v58 = vpack.c.bf16 %v105_v47, %v104_v46  ;;  %v404_v61 = vunpack.c.h.bf16 %v451_v49  ;;  %v58_v62 = vmul.f32 %v547_v10, %v379_v51  ;;  %v59_v63 = vmul.f32 %v547_v10, %v380_v52 }
   0xf   :  { %469 = vmatpush.bf16.msra.mxu2 %v369_v4  ;;  %470 = vmatpush.bf16.msra.mxu3 %v369_v4  ;;  %v62_v0 = vmul.f32 %v547_v10, %v387_v53  ;;  %v63_v1 = vmul.f32 %v547_v10, %v388_v56  ;;  %v66_v2 = vmul.f32 %v547_v10, %v395_v57 }
  0x10   :  { %v67_v3 = vmul.f32 %v547_v10, %v396_v59  ;;  %v70_v4 = vmul.f32 %v547_v10, %v403_v60  ;;  %v71_v5 = vmul.f32 %v547_v10, %v404_v61  ;;  %v78_v6 = vadd.f32 %v557_v20, %v58_v62 }
  0x11   :  { %v79_v7 = vadd.f32 %v557_v20, %v59_v63  ;;  %v82_v8 = vadd.f32 %v557_v20, %v62_v0  ;;  %v83_v9 = vadd.f32 %v557_v20, %v63_v1  ;;  %v86_v11 = vadd.f32 %v557_v20, %v66_v2 }
  0x12   :  { %184 = vmatpush.bf16.msra.mxu0 %v368_v15  ;;  %471 = vmatpush.bf16.msra.mxu1 %v368_v15  ;;  %v87_v12 = vadd.f32 %v557_v20, %v67_v3  ;;  %v90_v13 = vadd.f32 %v557_v20, %v70_v4  ;;  %v91_v14 = vadd.f32 %v557_v20, %v71_v5 }
  0x13   :  { %472 = vmatpush.bf16.msra.mxu2 %v368_v15  ;;  %473 = vmatpush.bf16.msra.mxu3 %v368_v15  ;;  %v94_v15 = vmax.f32 %v78_v6, 0.0  ;;  %v95_v16 = vmax.f32 %v79_v7, 0.0  ;;  %v98_v17 = vmax.f32 %v82_v8, 0.0  ;;  %v99_v10 = vmax.f32 %v83_v9, 0.0 }
  0x14   :  { %v102_v18 = vmax.f32 %v86_v11, 0.0  ;;  %v103_v19 = vmax.f32 %v87_v12, 0.0  ;;  %v106_v21 = vmax.f32 %v90_v13, 0.0  ;;  %v107_v22 = vmax.f32 %v91_v14, 0.0 }
  0x15   :  { %v109_v23 = vpack.c.bf16 %v95_v16, %v94_v15  ;;  %v111_v24 = vpack.c.bf16 %v99_v10, %v98_v17 }
  0x16   :  { %185 = vmatpush.bf16.msra.mxu0 %v367_v25  ;;  %474 = vmatpush.bf16.msra.mxu1 %v367_v25  ;;  %v115_v26 = vpack.c.bf16 %v107_v22, %v106_v21 }
  0x17   :  { %475 = vmatpush.bf16.msra.mxu2 %v367_v25  ;;  %476 = vmatpush.bf16.msra.mxu3 %v367_v25  ;;  %v113_v25 = vpack.c.bf16 %v103_v19, %v102_v18 }
  0x1a   :  { %186 = vmatpush.bf16.msra.mxu0 %v366_v34  ;;  %477 = vmatpush.bf16.msra.mxu1 %v366_v34 }
  0x1b   :  { %478 = vmatpush.bf16.msra.mxu2 %v366_v34  ;;  %479 = vmatpush.bf16.msra.mxu3 %v366_v34 }
  0x1e   :  { %187 = vmatpush.bf16.msra.mxu0 %v365_v45  ;;  %480 = vmatpush.bf16.msra.mxu1 %v365_v45 }
  0x1f   :  { %481 = vmatpush.bf16.msra.mxu2 %v365_v45  ;;  %482 = vmatpush.bf16.msra.mxu3 %v365_v45 }
  0x21   :  { %188 = vmatmul.bf16.vlgmr.msra.gmra.mxu0 %v108_v50  ;;  %198 = vmatmul.bf16.vlgmr.msra.gmra.mxu1 %v110_v54 }
  0x22   :  { %208 = vmatmul.bf16.vlgmr.msra.gmra.mxu2 %v112_v55  ;;  %218 = vmatmul.bf16.vlgmr.msra.gmra.mxu3 %v114_v58 }
  0x31   :  { %193 = vmatmul.bf16.gmra.mxu0 %v109_v23  ;;  %203 = vmatmul.bf16.gmra.mxu1 %v111_v24 }
  0x32   :  { %213 = vmatmul.bf16.gmra.mxu2 %v113_v25  ;;  %223 = vmatmul.bf16.gmra.mxu3 %v115_v26 }
  0x9e   :  { %v189_v27 = vpop.f32.mrf.mxu0  ;;  %v199_v28 = vpop.f32.mrf.mxu1 }
  0x9f   :  { %v283_v41 = vmul.f32 %v189_v27, %v189_v27  ;;  %v287_v55 = vmul.f32 %v199_v28, %v199_v28 }
  0xa5   :  { %v209_v29 = vpop.f32.mrf.mxu2  ;;  %v610_v20 = vpop.f32.mrf.mxu3 }
  0xa6   :  { %v191_v30 = vpop.f32.mrf.mxu0  ;;  %v201_v31 = vpop.f32.mrf.mxu1  ;;  %v291_v7 = vmul.f32 %v209_v29, %v209_v29  ;;  %v295_v19 = vmul.f32 %v610_v20, %v610_v20 }
  0xa7   :  { %v408_v32 = vpack.c.bf16 %v191_v30, %v189_v27  ;;  %v418_v33 = vpack.c.bf16 %v201_v31, %v199_v28  ;;  %v284_v40 = vmul.f32 %v191_v30, %v191_v30  ;;  %v261_v43 = vadd.f32 %v191_v30, %v189_v27 }
  0xa8   :  { %v288_v58 = vmul.f32 %v201_v31, %v201_v31 }
  0xa9   :  { %409 = vst [vmem:[%s650_s4] sm:$0xff] %v408_v32   ;;  %v299_v44 = vadd.f32 %v284_v40, %v283_v41 }
  0xaa   :  { %453 = vst [vmem:[%s650_s4 + $0x10] sm:$0xff] %v418_v33  }
  0xad   :  { %v211_v34 = vpop.f32.mrf.mxu2  ;;  %v221_v35 = vpop.f32.mrf.mxu3 }
  0xae   :  { %v194_v36 = vpop.f32.mrf.mxu0  ;;  %v204_v37 = vpop.f32.mrf.mxu1  ;;  %v428_v38 = vpack.c.bf16 %v211_v34, %v209_v29  ;;  %v438_v39 = vpack.c.bf16 %v221_v35, %v610_v20  ;;  %v292_v11 = vmul.f32 %v211_v34, %v211_v34  ;;  %v296_v23 = vmul.f32 %v221_v35, %v221_v35 }
  0xaf   :  { %v285_v42 = vmul.f32 %v194_v36, %v194_v36  ;;  %v262_v45 = vadd.f32 %v261_v43, %v194_v36  ;;  %v289_v61 = vmul.f32 %v204_v37, %v204_v37 }
  0xb0   :  { %455 = vst [vmem:[%s650_s4 + $0x20] sm:$0xff] %v428_v38  }
  0xb1   :  { %457 = vst [vmem:[%s650_s4 + $0x30] sm:$0xff] %v438_v39   ;;  %v300_v48 = vadd.f32 %v299_v44, %v285_v42 }
  0xb5   :  { %v214_v46 = vpop.f32.mrf.mxu2  ;;  %v224_v47 = vpop.f32.mrf.mxu3 }
  0xb6   :  { %v196_v49 = vpop.f32.mrf.mxu0  ;;  %v206_v50 = vpop.f32.mrf.mxu1  ;;  %v293_v15 = vmul.f32 %v214_v46, %v214_v46  ;;  %v297_v27 = vmul.f32 %v224_v47, %v224_v47 }
  0xb7   :  { %v413_v51 = vpack.c.bf16 %v196_v49, %v194_v36  ;;  %v263_v52 = vadd.f32 %v262_v45, %v196_v49  ;;  %v286_v53 = vmul.f32 %v196_v49, %v196_v49  ;;  %v423_v54 = vpack.c.bf16 %v206_v50, %v204_v37 }
  0xb8   :  { %v290_v5 = vmul.f32 %v206_v50, %v206_v50 }
  0xb9   :  { %452 = vst [vmem:[%s650_s4 + $0x8] sm:$0xff] %v413_v51   ;;  %v264_v56 = vadd.f32 %v263_v52, %v199_v28  ;;  %v301_v57 = vadd.f32 %v300_v48, %v286_v53 }
  0xba   :  { %454 = vst [vmem:[%s650_s4 + $0x18] sm:$0xff] %v423_v54  }
  0xbb   :  { %v302_v59 = vadd.f32 %v301_v57, %v287_v55  ;;  %v265_v60 = vadd.f32 %v264_v56, %v201_v31 }
  0xbd   :  { %v266_v62 = vadd.f32 %v265_v60, %v204_v37  ;;  %v303_v63 = vadd.f32 %v302_v59, %v288_v58  ;;  %v216_v0 = vpop.f32.mrf.mxu2  ;;  %v226_v1 = vpop.f32.mrf.mxu3 }
  0xbe   :  { %v433_v2 = vpack.c.bf16 %v216_v0, %v214_v46  ;;  %v443_v3 = vpack.c.bf16 %v226_v1, %v224_v47  ;;  %v294_v18 = vmul.f32 %v216_v0, %v216_v0  ;;  %v298_v31 = vmul.f32 %v226_v1, %v226_v1 }
  0xbf   :  { %v267_v4 = vadd.f32 %v266_v62, %v206_v50  ;;  %v304_v6 = vadd.f32 %v303_v63, %v289_v61 }
  0xc0   :  { %456 = vst [vmem:[%s650_s4 + $0x28] sm:$0xff] %v433_v2  }
  0xc1   :  { %v268_v8 = vadd.f32 %v267_v4, %v209_v29  ;;  %v305_v9 = vadd.f32 %v304_v6, %v290_v5  ;;  %458 = vst [vmem:[%s650_s4 + $0x38] sm:$0xff] %v443_v3  }
  0xc3   :  { %v306_v12 = vadd.f32 %v305_v9, %v291_v7  ;;  %v269_v13 = vadd.f32 %v268_v8, %v211_v34 }
  0xc5   :  { %v270_v14 = vadd.f32 %v269_v13, %v214_v46  ;;  %v307_v16 = vadd.f32 %v306_v12, %v292_v11 }
  0xc7   :  { %v308_v17 = vadd.f32 %v307_v16, %v293_v15  ;;  %v271_v10 = vadd.f32 %v270_v14, %v216_v0 }
  0xc9   :  { %v272_v21 = vadd.f32 %v271_v10, %v610_v20  ;;  %v309_v22 = vadd.f32 %v308_v17, %v294_v18 }
  0xcb   :  { %v310_v24 = vadd.f32 %v309_v22, %v295_v19  ;;  %v273_v25 = vadd.f32 %v272_v21, %v221_v35 }
  0xcd   :  { %v274_v26 = vadd.f32 %v273_v25, %v224_v47  ;;  %v311_v28 = vadd.f32 %v310_v24, %v296_v23 }
  0xcf   :  { %v312_v29 = vadd.f32 %v311_v28, %v297_v27  ;;  %v275_v30 = vadd.f32 %v274_v26, %v226_v1 }
  0xd1   :  { %v276_v32 = vrot.slane %v275_v30, 4  ;;  %v313_v33 = vadd.f32 %v312_v29, %v298_v31 }
  0xd3   :  { %v277_v34 = vadd.f32 %v276_v32, %v275_v30  ;;  %v314_v36 = vrot.slane %v313_v33, 4 }
  0xd5   :  { %v278_v37 = vrot.slane %v277_v34, 2  ;;  %v315_v38 = vadd.f32 %v314_v36, %v313_v33 }
  0xd7   :  { %v279_v39 = vadd.f32 %v278_v37, %v277_v34  ;;  %v316_v40 = vrot.slane %v315_v38, 2 }
  0xd9   :  { %v280_v41 = vrot.slane %v279_v39, 1  ;;  %v317_v20 = vadd.f32 %v316_v40, %v315_v38 }
  0xdb   :  { %v281_v42 = vadd.f32 %v280_v41, %v279_v39  ;;  %v318_v43 = vrot.slane %v317_v20, 1 }
  0xdd   :  { %282 = vst [vmem:[%s651_s5] sm:$0x1] %v281_v42  ;;  %v319_v35 = vadd.f32 %v318_v43, %v317_v20 }
  0xdf   :  { %320 = vst [vmem:[%s652_s6] sm:$0x1] %v319_v35 }

// kernel: bottleneck_forward.9
= control target key start
LH: loop header
LB: loop body
LE: loop exit
PB: predicated region body
PF: predicated region fallthrough
CT: control target
= control target key end

     0   :  { %s516_s0 = inlined_call_operand.vmem [shape: bf16[128,128], index: 0, kind: input, shape index: {}]   ;;  %s517_s1 = inlined_call_operand.vmem [shape: f32[1,128], index: 1, kind: input, shape index: {}]   ;;  %s518_s2 = inlined_call_operand.vmem [shape: f32[1,128], index: 2, kind: input, shape index: {}]   ;;  %s519_s3 = inlined_call_operand.vmem [shape: bf16[128,128], index: 3, kind: input, shape index: {}]   ;;  %s520_s4 = inlined_call_operand.vmem [shape: f32[1,128], index: 4, kind: input, shape index: {}]   ;;  %s521_s5 = inlined_call_operand.vmem [shape: f32[1,128], index: 5, kind: input, shape index: {}]   ;;  %s522_s6 = inlined_call_operand.vmem [shape: f32[128,128], index: 6, kind: output, shape index: {}]  }
   0x1   :  { %v220_v0 = vld [vmem:[%s516_s0] sm:$0xff]   ;;  %v283_v12 = vld [vmem:[%s516_s0 + $0x8] sm:$0xff]   ;;  %v284_v18 = vld [vmem:[%s516_s0 + $0x10] sm:$0xff]  }
   0x2   :  { %v342_v1 = vld [vmem:[%s517_s1] ss:$0 sm:$0xff]  ;;  %v221_v2 = vunpack.c.l.bf16 %v220_v0  ;;  %v222_v5 = vunpack.c.h.bf16 %v220_v0  ;;  %v290_v13 = vld [vmem:[%s519_s3 + $0x8] sm:$0xff]   ;;  %v225_v16 = vunpack.c.l.bf16 %v283_v12  ;;  %v291_v19 = vld [vmem:[%s519_s3 + $0x10] sm:$0xff]   ;;  %v226_v22 = vunpack.c.h.bf16 %v283_v12 }
   0x3   :  { %v347_v3 = vld [vmem:[%s518_s2] ss:$0 sm:$0xff]  ;;  %v257_v17 = vunpack.c.l.bf16 %v290_v13  ;;  %v258_v23 = vunpack.c.h.bf16 %v290_v13  ;;  %v229_v30 = vunpack.c.l.bf16 %v284_v18  ;;  %v261_v31 = vunpack.c.l.bf16 %v291_v19  ;;  %v285_v40 = vld [vmem:[%s516_s0 + $0x18] sm:$0xff]   ;;  %v287_v12 = vld [vmem:[%s516_s0 + $0x28] sm:$0xff]  }
   0x4   :  { %v252_v4 = vld [vmem:[%s519_s3] sm:$0xff]   ;;  %v59_v9 = vmul.f32 %v342_v1, %v221_v2  ;;  %v60_v11 = vmul.f32 %v342_v1, %v222_v5  ;;  %v61_v26 = vmul.f32 %v342_v1, %v225_v16  ;;  %v62_v28 = vmul.f32 %v342_v1, %v226_v22  ;;  %v292_v41 = vld [vmem:[%s519_s3 + $0x18] sm:$0xff]  }
   0x5   :  { %v253_v6 = vunpack.c.l.bf16 %v252_v4  ;;  %v355_v7 = vld [vmem:[%s520_s4] ss:$0 sm:$0xff]  ;;  %v254_v8 = vunpack.c.h.bf16 %v252_v4  ;;  %v63_v38 = vmul.f32 %v342_v1, %v229_v30  ;;  %v230_v45 = vunpack.c.h.bf16 %v284_v18  ;;  %v288_v30 = vld [vmem:[%s516_s0 + $0x30] sm:$0xff]  }
   0x6   :  { %v361_v10 = vld [vmem:[%s521_s5] ss:$0 sm:$0xff]  ;;  %v79_v20 = vadd.f32 %v347_v3, %v59_v9  ;;  %v80_v21 = vadd.f32 %v347_v3, %v60_v11  ;;  %v133_v27 = vmul.f32 %v355_v7, %v257_v17  ;;  %v134_v29 = vmul.f32 %v355_v7, %v258_v23 }
   0x7   :  { %v131_v14 = vmul.f32 %v355_v7, %v253_v6  ;;  %v132_v15 = vmul.f32 %v355_v7, %v254_v8  ;;  %v81_v34 = vadd.f32 %v347_v3, %v61_v26  ;;  %v82_v36 = vadd.f32 %v347_v3, %v62_v28  ;;  %v286_v54 = vld [vmem:[%s516_s0 + $0x20] sm:$0xff]  }
   0x8   :  { %v153_v35 = vadd.f32 %v361_v10, %v133_v27  ;;  %v154_v37 = vadd.f32 %v361_v10, %v134_v29  ;;  %v135_v39 = vmul.f32 %v355_v7, %v261_v31  ;;  %v83_v47 = vadd.f32 %v347_v3, %v63_v38  ;;  %v293_v59 = vld [vmem:[%s519_s3 + $0x20] sm:$0xff]  }
   0x9   :  { %v151_v24 = vadd.f32 %v361_v10, %v131_v14  ;;  %v152_v25 = vadd.f32 %v361_v10, %v132_v15  ;;  %v262_v49 = vunpack.c.h.bf16 %v291_v19  ;;  %v64_v51 = vmul.f32 %v342_v1, %v230_v45 }
   0xa   :  { %v169_v44 = vadd.f32 %v153_v35, %v81_v34  ;;  %v170_v46 = vadd.f32 %v154_v37, %v82_v36  ;;  %v155_v48 = vadd.f32 %v361_v10, %v135_v39  ;;  %v233_v52 = vunpack.c.l.bf16 %v285_v40  ;;  %v295_v35 = vld [vmem:[%s519_s3 + $0x30] sm:$0xff]  }
   0xb   :  { %v167_v32 = vadd.f32 %v151_v24, %v79_v20  ;;  %v168_v33 = vadd.f32 %v152_v25, %v80_v21  ;;  %v265_v53 = vunpack.c.l.bf16 %v292_v41  ;;  %v136_v57 = vmul.f32 %v355_v7, %v262_v49  ;;  %v294_v21 = vld [vmem:[%s519_s3 + $0x28] sm:$0xff]  }
   0xc   :  { %v185_v50 = vmax.f32 %v169_v44, 0.0  ;;  %v186_v55 = vmax.f32 %v170_v46, 0.0  ;;  %v171_v56 = vadd.f32 %v155_v48, %v83_v47  ;;  %v234_v58 = vunpack.c.h.bf16 %v285_v40  ;;  %v289_v48 = vld [vmem:[%s516_s0 + $0x38] sm:$0xff]  }
   0xd   :  { %v183_v42 = vmax.f32 %v167_v32, 0.0  ;;  %v184_v43 = vmax.f32 %v168_v33, 0.0  ;;  %v84_v60 = vadd.f32 %v347_v3, %v64_v51  ;;  %v65_v61 = vmul.f32 %v342_v1, %v233_v52 }
   0xe   :  { %201 = vst [vmem:[%s522_s6 + $0x10] sm:$0xff] %v185_v50  ;;  %v137_v62 = vmul.f32 %v355_v7, %v265_v53  ;;  %v266_v63 = vunpack.c.h.bf16 %v292_v41  ;;  %v187_v0 = vmax.f32 %v171_v56, 0.0  ;;  %v156_v2 = vadd.f32 %v361_v10, %v136_v57  ;;  %v296_v53 = vld [vmem:[%s519_s3 + $0x38] sm:$0xff]  }
   0xf   :  { %199 = vst [vmem:[%s522_s6] sm:$0xff] %v183_v42  ;;  %v66_v4 = vmul.f32 %v342_v1, %v234_v58  ;;  %v237_v5 = vunpack.c.l.bf16 %v286_v54  ;;  %v85_v6 = vadd.f32 %v347_v3, %v65_v61  ;;  %v269_v11 = vunpack.c.l.bf16 %v293_v59 }
  0x10   :  { %200 = vst [vmem:[%s522_s6 + $0x8] sm:$0xff] %v184_v43  ;;  %v157_v8 = vadd.f32 %v361_v10, %v137_v62  ;;  %v138_v9 = vmul.f32 %v355_v7, %v266_v63  ;;  %v172_v13 = vadd.f32 %v156_v2, %v84_v60  ;;  %v238_v16 = vunpack.c.h.bf16 %v286_v54 }
  0x11   :  { %202 = vst [vmem:[%s522_s6 + $0x18] sm:$0xff] %v186_v55  ;;  %v86_v14 = vadd.f32 %v347_v3, %v66_v4  ;;  %v67_v15 = vmul.f32 %v342_v1, %v237_v5  ;;  %v139_v19 = vmul.f32 %v355_v7, %v269_v11  ;;  %v270_v20 = vunpack.c.h.bf16 %v293_v59 }
  0x12   :  { %203 = vst [vmem:[%s522_s6 + $0x20] sm:$0xff] %v187_v0  ;;  %v173_v17 = vadd.f32 %v157_v8, %v85_v6  ;;  %v158_v18 = vadd.f32 %v361_v10, %v138_v9  ;;  %v188_v22 = vmax.f32 %v172_v13, 0.0  ;;  %v68_v24 = vmul.f32 %v342_v1, %v238_v16 }
  0x13   :  { %v87_v23 = vadd.f32 %v347_v3, %v67_v15  ;;  %v241_v25 = vunpack.c.l.bf16 %v287_v12  ;;  %v159_v28 = vadd.f32 %v361_v10, %v139_v19  ;;  %v140_v29 = vmul.f32 %v355_v7, %v270_v20 }
  0x14   :  { %v189_v26 = vmax.f32 %v173_v17, 0.0  ;;  %v174_v27 = vadd.f32 %v158_v18, %v86_v14  ;;  %204 = vst [vmem:[%s522_s6 + $0x28] sm:$0xff] %v188_v22  ;;  %v88_v31 = vadd.f32 %v347_v3, %v68_v24  ;;  %v273_v33 = vunpack.c.l.bf16 %v294_v21 }
  0x15   :  { %v69_v32 = vmul.f32 %v342_v1, %v241_v25  ;;  %v242_v34 = vunpack.c.h.bf16 %v287_v12  ;;  %v175_v37 = vadd.f32 %v159_v28, %v87_v23  ;;  %v160_v38 = vadd.f32 %v361_v10, %v140_v29 }
  0x16   :  { %205 = vst [vmem:[%s522_s6 + $0x30] sm:$0xff] %v189_v26  ;;  %v190_v36 = vmax.f32 %v174_v27, 0.0  ;;  %v274_v39 = vunpack.c.h.bf16 %v294_v21  ;;  %v141_v41 = vmul.f32 %v355_v7, %v273_v33  ;;  %v245_v43 = vunpack.c.l.bf16 %v288_v30 }
  0x17   :  { %v89_v40 = vadd.f32 %v347_v3, %v69_v32  ;;  %v70_v42 = vmul.f32 %v342_v1, %v242_v34  ;;  %v191_v44 = vmax.f32 %v175_v37, 0.0  ;;  %v176_v45 = vadd.f32 %v160_v38, %v88_v31 }
  0x18   :  { %206 = vst [vmem:[%s522_s6 + $0x38] sm:$0xff] %v190_v36  ;;  %v142_v46 = vmul.f32 %v355_v7, %v274_v39  ;;  %v277_v47 = vunpack.c.l.bf16 %v295_v35  ;;  %v161_v49 = vadd.f32 %v361_v10, %v141_v41  ;;  %v71_v51 = vmul.f32 %v342_v1, %v245_v43 }
  0x19   :  { %v90_v50 = vadd.f32 %v347_v3, %v70_v42  ;;  %v246_v52 = vunpack.c.h.bf16 %v288_v30  ;;  %207 = vst [vmem:[%s522_s6 + $0x40] sm:$0xff] %v191_v44  ;;  %v192_v54 = vmax.f32 %v176_v45, 0.0  ;;  %v278_v57 = vunpack.c.h.bf16 %v295_v35 }
  0x1a   :  { %v162_v55 = vadd.f32 %v361_v10, %v142_v46  ;;  %v143_v56 = vmul.f32 %v355_v7, %v277_v47  ;;  %v177_v58 = vadd.f32 %v161_v49, %v89_v40  ;;  %v91_v59 = vadd.f32 %v347_v3, %v71_v51 }
  0x1b   :  { %v72_v60 = vmul.f32 %v342_v1, %v246_v52  ;;  %v249_v61 = vunpack.c.l.bf16 %v289_v48  ;;  %208 = vst [vmem:[%s522_s6 + $0x48] sm:$0xff] %v192_v54  ;;  %v144_v0 = vmul.f32 %v355_v7, %v278_v57  ;;  %v281_v2 = vunpack.c.l.bf16 %v296_v53 }
  0x1c   :  { %v178_v62 = vadd.f32 %v162_v55, %v90_v50  ;;  %v163_v63 = vadd.f32 %v361_v10, %v143_v56  ;;  %v193_v4 = vmax.f32 %v177_v58, 0.0  ;;  %v250_v8 = vunpack.c.h.bf16 %v289_v48 }
  0x1d   :  { %v92_v5 = vadd.f32 %v347_v3, %v72_v60  ;;  %v73_v6 = vmul.f32 %v342_v1, %v249_v61  ;;  %v164_v12 = vadd.f32 %v361_v10, %v144_v0  ;;  %v145_v13 = vmul.f32 %v355_v7, %v281_v2 }
  0x1e   :  { %v194_v9 = vmax.f32 %v178_v62, 0.0  ;;  %v179_v11 = vadd.f32 %v163_v63, %v91_v59  ;;  %209 = vst [vmem:[%s522_s6 + $0x50] sm:$0xff] %v193_v4  ;;  %v74_v15 = vmul.f32 %v342_v1, %v250_v8  ;;  %v282_v16 = vunpack.c.h.bf16 %v296_v53 }
  0x1f   :  { %v93_v14 = vadd.f32 %v347_v3, %v73_v6  ;;  %v180_v18 = vadd.f32 %v164_v12, %v92_v5  ;;  %v165_v19 = vadd.f32 %v361_v10, %v145_v13 }
  0x20   :  { %210 = vst [vmem:[%s522_s6 + $0x58] sm:$0xff] %v194_v9  ;;  %v195_v17 = vmax.f32 %v179_v11, 0.0  ;;  %v94_v20 = vadd.f32 %v347_v3, %v74_v15  ;;  %v146_v21 = vmul.f32 %v355_v7, %v282_v16 }
  0x21   :  { %v196_v22 = vmax.f32 %v180_v18, 0.0  ;;  %v181_v23 = vadd.f32 %v165_v19, %v93_v14 }
  0x22   :  { %211 = vst [vmem:[%s522_s6 + $0x60] sm:$0xff] %v195_v17  ;;  %v166_v1 = vadd.f32 %v361_v10, %v146_v21 }
  0x23   :  { %212 = vst [vmem:[%s522_s6 + $0x68] sm:$0xff] %v196_v22  ;;  %v197_v24 = vmax.f32 %v181_v23, 0.0 }
  0x24   :  { %v182_v25 = vadd.f32 %v166_v1, %v94_v20 }
  0x25   :  { %213 = vst [vmem:[%s522_s6 + $0x70] sm:$0xff] %v197_v24 }
  0x26   :  { %v198_v3 = vmax.f32 %v182_v25, 0.0 }
  0x28   :  { %214 = vst [vmem:[%s522_s6 + $0x78] sm:$0xff] %v198_v3 }

// kernel: bottleneck_forward.6
= control target key start
LH: loop header
LB: loop body
LE: loop exit
PB: predicated region body
PF: predicated region fallthrough
CT: control target
= control target key end

     0   :  { %s2277_s15 = smov 0   ;;  %s2654_s0 = inlined_call_operand.vmem [shape: bf16[2,2,9,8,384], index: 0, kind: input, shape index: {}]   ;;  %s2655_s1 = inlined_call_operand.vmem [shape: bf16[3,384,128], index: 1, kind: input, shape index: {}]   ;;  %s2656_s2 = inlined_call_operand.vmem [shape: bf16[2,64,128], index: 2, kind: output, shape index: {0}]   ;;  %s2657_s3 = inlined_call_operand.vmem [shape: f32[2,1,128], index: 3, kind: output, shape index: {1}]   ;;  %s2658_s4 = inlined_call_operand.vmem [shape: f32[2,1,128], index: 4, kind: output, shape index: {2}]  }
   0x1 LB: > { %s1517_s16 = sadd.s32 4294967295, %s2250_s15   ;;  %p1521_p0 = scmp.ge.s32.totalorder %s2250_s15, 1  ;;  %s2250_s15 = sphi %s2277_s15, %s15_s15  }
   0x2   : > { %p167_p1 = scmp.lt.s32.totalorder %s2250_s15, 3 }
   0x4   : > { %p168_p2 = pnand %p1521_p0, %p167_p1 }
   0x5   : > { %p199_p3 = scmp.lt.s32.totalorder (!%p168_p2), %s1517_s16, 1 }
   0x6   : > { %171 = sbr.rel (%p168_p2) target bundleno = 345 (0x159), region = 28 }
   0xb   : > { %v2107_v0 = vld [vmem:[%s2655_s1 + $0x38] sm:$0xff]  ;;  %v2106_v3 = vld [vmem:[%s2655_s1 + $0x30] sm:$0xff]  ;;  %v2105_v6 = vld [vmem:[%s2655_s1 + $0x28] sm:$0xff]  ;;  %s2660_s16 = smov (!%p199_p3, %s1517_s16), 1 }
   0xc   : > { %v2123_v1 = vld [vmem:[%s2655_s1 + $0xb8] sm:$0xff]  ;;  %487 = vmatpush.bf16.msra.mxu0 %v2107_v0  ;;  %2219 = vmatpush.bf16.msra.mxu1 %v2107_v0  ;;  %v2122_v4 = vld [vmem:[%s2655_s1 + $0xb0] sm:$0xff]  ;;  %v2121_v7 = vld [vmem:[%s2655_s1 + $0xa8] sm:$0xff]  ;;  %s2235_s25 = smul.u32 216, %s2660_s16  ;;  %s211_s30 = scalar_lea.vmem %s2657_s3, %s2660_s16 }
   0xd   : > { %v2143_v2 = vld [vmem:[%s2655_s1 + $0xf8] sm:$0xff]  ;;  %545 = vmatpush.bf16.msra.mxu2 %v2123_v1  ;;  %v2142_v5 = vld [vmem:[%s2655_s1 + $0xf0] sm:$0xff]  ;;  %v2141_v8 = vld [vmem:[%s2655_s1 + $0xe8] sm:$0xff]  ;;  %s214_s7 = scalar_lea.vmem %s2658_s4, %s2660_s16 }
   0xe   : > { %856 = vmatpush.bf16.msra.mxu3 %v2143_v2  ;;  %v2104_v9 = vld [vmem:[%s2655_s1 + $0x20] sm:$0xff]  ;;  %v2103_v12 = vld [vmem:[%s2655_s1 + $0x18] sm:$0xff]  ;;  %v2102_v15 = vld [vmem:[%s2655_s1 + $0x10] sm:$0xff]  ;;  %s2352_s8 = scalar_lea.vmem %s2654_s0, %s2235_s25 }
   0xf   : > { %v2120_v10 = vld [vmem:[%s2655_s1 + $0xa0] sm:$0xff]  ;;  %v2119_v13 = vld [vmem:[%s2655_s1 + $0x98] sm:$0xff]  ;;  %v2118_v16 = vld [vmem:[%s2655_s1 + $0x90] sm:$0xff] }
  0x10   : > { %488 = vmatpush.bf16.msra.mxu0 %v2106_v3  ;;  %2220 = vmatpush.bf16.msra.mxu1 %v2106_v3  ;;  %v2140_v11 = vld [vmem:[%s2655_s1 + $0xe0] sm:$0xff]  ;;  %v2139_v14 = vld [vmem:[%s2655_s1 + $0xd8] sm:$0xff]  ;;  %v2138_v17 = vld [vmem:[%s2655_s1 + $0xd0] sm:$0xff] }
  0x11   : > { %546 = vmatpush.bf16.msra.mxu2 %v2122_v4  ;;  %v2101_v18 = vld [vmem:[%s2655_s1 + $0x8] sm:$0xff]  ;;  %v2100_v21 = vld [vmem:[%s2655_s1] sm:$0xff]  ;;  %v1551_v25 = vld [vmem:[%s2352_s8 + $0x30] sm:$0xf] }
  0x12   : > { %857 = vmatpush.bf16.msra.mxu3 %v2142_v5  ;;  %v2117_v19 = vld [vmem:[%s2655_s1 + $0x88] sm:$0xff]  ;;  %v2116_v22 = vld [vmem:[%s2655_s1 + $0x80] sm:$0xff]  ;;  %v2095_v26 = vld [vmem:[%s2352_s8 + $0x38] sm:$0xf0] }
  0x13   : > { %v2137_v20 = vld [vmem:[%s2655_s1 + $0xc8] sm:$0xff]  ;;  %v1527_v23 = vld [vmem:[%s2352_s8] sm:$0xf]  ;;  %v2115_v27 = vld [vmem:[%s2655_s1 + $0x78] sm:$0xff]  ;;  %v1552_v35 = vor.u32 %v2095_v26, %v1551_v25 }
  0x14   : > { %489 = vmatpush.bf16.msra.mxu0 %v2105_v6  ;;  %2221 = vmatpush.bf16.msra.mxu1 %v2105_v6  ;;  %v2089_v24 = vld [vmem:[%s2352_s8 + $0x8] sm:$0xf0]  ;;  %v1535_v28 = vld [vmem:[%s2352_s8 + $0x8] sm:$0xf]  ;;  %v2090_v29 = vld [vmem:[%s2352_s8 + $0x10] sm:$0xf0] }
  0x15   : > { %547 = vmatpush.bf16.msra.mxu2 %v2121_v7  ;;  %v2136_v30 = vld [vmem:[%s2655_s1 + $0xc0] sm:$0xff]  ;;  %v2151_v31 = vld [vmem:[%s2655_s1 + $0x138] sm:$0xff]  ;;  %v1735_v32 = vld [vmem:[%s2352_s8 + $0x6c] sm:$0xf]  ;;  %v1528_v34 = vor.u32 %v2089_v24, %v1527_v23  ;;  %v1536_v36 = vor.u32 %v2090_v29, %v1535_v28 }
  0x16   : > { %858 = vmatpush.bf16.msra.mxu3 %v2141_v8  ;;  %v2125_v33 = vld [vmem:[%s2352_s8 + $0x74] sm:$0xf0]  ;;  %v2114_v38 = vld [vmem:[%s2655_s1 + $0x70] sm:$0xff]  ;;  %v2113_v43 = vld [vmem:[%s2655_s1 + $0x68] sm:$0xff] }
  0x17   : > { %v2187_v37 = vld [vmem:[%s2655_s1 + $0x1f8] sm:$0xff]  ;;  %v1736_v39 = vor.u32 %v2125_v33, %v1735_v32  ;;  %v2150_v40 = vld [vmem:[%s2655_s1 + $0x130] sm:$0xff]  ;;  %v2149_v44 = vld [vmem:[%s2655_s1 + $0x128] sm:$0xff] }
  0x18   : > { %490 = vmatpush.bf16.msra.mxu0 %v2104_v9  ;;  %2222 = vmatpush.bf16.msra.mxu1 %v2104_v9  ;;  %v2179_v41 = vld [vmem:[%s2655_s1 + $0x1b8] sm:$0xff]  ;;  %v2186_v42 = vld [vmem:[%s2655_s1 + $0x1f0] sm:$0xff]  ;;  %v2185_v46 = vld [vmem:[%s2655_s1 + $0x1e8] sm:$0xff] }
  0x19   : > { %548 = vmatpush.bf16.msra.mxu2 %v2120_v10  ;;  %v2178_v45 = vld [vmem:[%s2655_s1 + $0x1b0] sm:$0xff]  ;;  %v2112_v47 = vld [vmem:[%s2655_s1 + $0x60] sm:$0xff]  ;;  %v2177_v49 = vld [vmem:[%s2655_s1 + $0x1a8] sm:$0xff] }
  0x1a   : > { %859 = vmatpush.bf16.msra.mxu3 %v2140_v11  ;;  %v2148_v48 = vld [vmem:[%s2655_s1 + $0x120] sm:$0xff]  ;;  %v1539_v50 = vld [vmem:[%s2352_s8 + $0x18] sm:$0xf]  ;;  %v1563_v52 = vld [vmem:[%s2352_s8 + $0x48] sm:$0xf] }
  0x1b   : > { %v2092_v51 = vld [vmem:[%s2352_s8 + $0x20] sm:$0xf0]  ;;  %v2098_v53 = vld [vmem:[%s2352_s8 + $0x50] sm:$0xf0]  ;;  %v1547_v54 = vld [vmem:[%s2352_s8 + $0x20] sm:$0xf] }
  0x1c   : > { %491 = vmatpush.bf16.msra.mxu0 %v2103_v12  ;;  %2223 = vmatpush.bf16.msra.mxu1 %v2103_v12  ;;  %v2111_v55 = vld [vmem:[%s2655_s1 + $0x58] sm:$0xff]  ;;  %v2093_v56 = vld [vmem:[%s2352_s8 + $0x28] sm:$0xf0]  ;;  %v1747_v58 = vld [vmem:[%s2352_s8 + $0x84] sm:$0xf]  ;;  %v1540_v61 = vor.u32 %v2092_v51, %v1539_v50  ;;  %v1564_v62 = vor.u32 %v2098_v53, %v1563_v52 }
  0x1d   : > { %549 = vmatpush.bf16.msra.mxu2 %v2119_v13  ;;  %v2147_v57 = vld [vmem:[%s2655_s1 + $0x118] sm:$0xff]  ;;  %v2128_v59 = vld [vmem:[%s2352_s8 + $0x8c] sm:$0xf0]  ;;  %v2176_v60 = vld [vmem:[%s2655_s1 + $0x1a0] sm:$0xff]  ;;  %v1548_v63 = vor.u32 %v2093_v56, %v1547_v54 }
  0x1e   : > { %860 = vmatpush.bf16.msra.mxu3 %v2139_v14  ;;  %v2110_v0 = vld [vmem:[%s2655_s1 + $0x50] sm:$0xff]  ;;  %v1748_v1 = vor.u32 %v2128_v59, %v1747_v58  ;;  %v2175_v3 = vld [vmem:[%s2655_s1 + $0x198] sm:$0xff]  ;;  %v2184_v4 = vld [vmem:[%s2655_s1 + $0x1e0] sm:$0xff] }
  0x1f   : > { %v2146_v2 = vld [vmem:[%s2655_s1 + $0x110] sm:$0xff]  ;;  %v2109_v5 = vld [vmem:[%s2655_s1 + $0x48] sm:$0xff]  ;;  %v2183_v8 = vld [vmem:[%s2655_s1 + $0x1d8] sm:$0xff] }
  0x20   : > { %492 = vmatpush.bf16.msra.mxu0 %v2102_v15  ;;  %2224 = vmatpush.bf16.msra.mxu1 %v2102_v15  ;;  %v2145_v6 = vld [vmem:[%s2655_s1 + $0x108] sm:$0xff]  ;;  %v2174_v7 = vld [vmem:[%s2655_s1 + $0x190] sm:$0xff]  ;;  %v2108_v9 = vld [vmem:[%s2655_s1 + $0x40] sm:$0xff] }
  0x21   : > { %550 = vmatpush.bf16.msra.mxu2 %v2118_v16  ;;  %v2144_v10 = vld [vmem:[%s2655_s1 + $0x100] sm:$0xff]  ;;  %v2159_v12 = vld [vmem:[%s2655_s1 + $0x178] sm:$0xff]  ;;  %v1529_v13 = vld [vmem:[%s2352_s8 + $0xc] sm:$0xf0] }
  0x22   : > { %861 = vmatpush.bf16.msra.mxu3 %v2138_v17  ;;  %v2088_v11 = vld [vmem:[%s2352_s8 + $0x4] sm:$0xf]  ;;  %v2195_v14 = vld [vmem:[%s2655_s1 + $0x238] sm:$0xff]  ;;  %v2173_v15 = vld [vmem:[%s2655_s1 + $0x188] sm:$0xff] }
  0x23   : > { %v2124_v16 = vld [vmem:[%s2352_s8 + $0x70] sm:$0xf]  ;;  %v1737_v17 = vld [vmem:[%s2352_s8 + $0x78] sm:$0xf0]  ;;  %v1532_v24 = vor.u32 %v2088_v11, %v1529_v13  ;;  %v2172_v29 = vld [vmem:[%s2655_s1 + $0x180] sm:$0xff] }
  0x24   : > { %493 = vmatpush.bf16.msra.mxu0 %v2101_v18  ;;  %2225 = vmatpush.bf16.msra.mxu1 %v2101_v18  ;;  %v2182_v18 = vld [vmem:[%s2655_s1 + $0x1d0] sm:$0xff]  ;;  %v1740_v25 = vor.u32 %v2124_v16, %v1737_v17  ;;  %v2193_v32 = vld [vmem:[%s2655_s1 + $0x228] sm:$0xff]  ;;  %v2156_v33 = vld [vmem:[%s2655_s1 + $0x160] sm:$0xff] }
  0x25   : > { %551 = vmatpush.bf16.msra.mxu2 %v2117_v19  ;;  %v1559_v19 = vld [vmem:[%s2352_s8 + $0x38] sm:$0xf]  ;;  %v2158_v23 = vld [vmem:[%s2655_s1 + $0x170] sm:$0xff]  ;;  %v2153_v51 = vld [vmem:[%s2655_s1 + $0x148] sm:$0xff] }
  0x26   : > { %862 = vmatpush.bf16.msra.mxu3 %v2137_v20  ;;  %v2096_v20 = vld [vmem:[%s2352_s8 + $0x40] sm:$0xf0]  ;;  %v2190_v52 = vld [vmem:[%s2655_s1 + $0x210] sm:$0xff]  ;;  %v2189_v54 = vld [vmem:[%s2655_s1 + $0x208] sm:$0xff] }
  0x27   : > { %v1560_v26 = vor.u32 %v2096_v20, %v1559_v19  ;;  %v2152_v53 = vld [vmem:[%s2655_s1 + $0x140] sm:$0xff]  ;;  %v1761_v59 = vld [vmem:[%s2352_s8 + $0xa8] sm:$0xf0]  ;;  %v1957_v11 = vld [vmem:[%s2352_s8 + $0x30] sm:$0xf0] }
  0x28   : > { %494 = vmatpush.bf16.msra.mxu0 %v2100_v21  ;;  %2226 = vmatpush.bf16.msra.mxu1 %v2100_v21  ;;  %v1759_v21 = vld [vmem:[%s2352_s8 + $0x9c] sm:$0xf]  ;;  %v2188_v56 = vld [vmem:[%s2655_s1 + $0x200] sm:$0xff]  ;;  %v1743_v16 = vld [vmem:[%s2352_s8 + $0x74] sm:$0xf] }
  0x29   : > { %552 = vmatpush.bf16.msra.mxu2 %v2116_v22  ;;  %v2131_v22 = vld [vmem:[%s2352_s8 + $0xa4] sm:$0xf0]  ;;  %v2130_v58 = vld [vmem:[%s2352_s8 + $0xa0] sm:$0xf]  ;;  %v1967_v20 = vld [vmem:[%s2352_s8 + $0x3c] sm:$0xf] }
  0x2a   : > { %863 = vmatpush.bf16.msra.mxu3 %v2136_v30  ;;  %v1760_v28 = vor.u32 %v2131_v22, %v1759_v21  ;;  %v2157_v30 = vld [vmem:[%s2655_s1 + $0x168] sm:$0xff]  ;;  %v2126_v17 = vld [vmem:[%s2352_s8 + $0x7c] sm:$0xf0] }
  0x2b   : > { %495 = vmatmul.bf16.vlgmr.msra.gmra.mxu0 %v1528_v34  ;;  %505 = vmatmul.bf16.vlgmr.msra.gmra.mxu1 %v1552_v35  ;;  %v2180_v34 = vld [vmem:[%s2655_s1 + $0x1c0] sm:$0xff]  ;;  %v2167_v21 = vld [vmem:[%s2352_s8 + $0x44] sm:$0xf0] }
  0x2c   : > { %516 = vmatpush.bf16.msrb.mxu1 %v2115_v27  ;;  %885 = vmatpush.bf16.msrb.mxu0 %v2151_v31  ;;  %v2194_v27 = vld [vmem:[%s2655_s1 + $0x230] sm:$0xff]  ;;  %v2181_v31 = vld [vmem:[%s2655_s1 + $0x1c8] sm:$0xff]  ;;  %v2192_v35 = vld [vmem:[%s2655_s1 + $0x220] sm:$0xff] }
  0x2d   : > { %553 = vmatmul.bf16.vlgmr.msra.gmra.mxu2 %v1536_v36  ;;  %864 = vmatmul.bf16.vlgmr.msra.gmra.mxu3 %v1736_v39  ;;  %v2155_v36 = vld [vmem:[%s2655_s1 + $0x158] sm:$0xff]  ;;  %v2127_v39 = vld [vmem:[%s2352_s8 + $0x88] sm:$0xf]  ;;  %v2162_v19 = vld [vmem:[%s2352_s8 + $0x1c] sm:$0xf0] }
  0x2e   : > { %1270 = vmatpush.bf16.msrb.mxu3 %v2187_v37  ;;  %1241 = vmatpush.bf16.msrb.mxu2 %v2179_v41  ;;  %v2091_v37 = vld [vmem:[%s2352_s8 + $0x1c] sm:$0xf]  ;;  %v2166_v22 = vld [vmem:[%s2352_s8 + $0x40] sm:$0xf] }
  0x2f   : > { %v2191_v41 = vld [vmem:[%s2655_s1 + $0x218] sm:$0xff] }
  0x30   : > { %517 = vmatpush.bf16.msrb.mxu1 %v2114_v38  ;;  %886 = vmatpush.bf16.msrb.mxu0 %v2150_v40  ;;  %v1541_v38 = vld [vmem:[%s2352_s8 + $0x24] sm:$0xf0]  ;;  %v1749_v40 = vld [vmem:[%s2352_s8 + $0x90] sm:$0xf0] }
  0x32   : > { %1271 = vmatpush.bf16.msrb.mxu3 %v2186_v42  ;;  %1242 = vmatpush.bf16.msrb.mxu2 %v2178_v45  ;;  %v1571_v42 = vld [vmem:[%s2352_s8 + $0x50] sm:$0xf]  ;;  %v2134_v45 = vld [vmem:[%s2352_s8 + $0xbc] sm:$0xf0] }
  0x34   : > { %518 = vmatpush.bf16.msrb.mxu1 %v2113_v43  ;;  %887 = vmatpush.bf16.msrb.mxu0 %v2149_v44  ;;  %v2099_v43 = vld [vmem:[%s2352_s8 + $0x58] sm:$0xf0]  ;;  %v1771_v44 = vld [vmem:[%s2352_s8 + $0xb4] sm:$0xf] }
  0x35   : > { %v1772_v50 = vor.u32 %v2134_v45, %v1771_v44  ;;  %v1987_v44 = vld [vmem:[%s2352_s8 + $0x5c] sm:$0xf]  ;;  %v2171_v45 = vld [vmem:[%s2352_s8 + $0x64] sm:$0xf0] }
  0x36   : > { %1272 = vmatpush.bf16.msrb.mxu3 %v2185_v46  ;;  %1243 = vmatpush.bf16.msrb.mxu2 %v2177_v49  ;;  %v2154_v46 = vld [vmem:[%s2655_s1 + $0x150] sm:$0xff]  ;;  %v1572_v49 = vor.u32 %v2099_v43, %v1571_v42  ;;  %v1975_v42 = vld [vmem:[%s2352_s8 + $0x44] sm:$0xf] }
  0x37   : > { %v2168_v43 = vld [vmem:[%s2352_s8 + $0x4c] sm:$0xf0] }
  0x38   : > { %519 = vmatpush.bf16.msrb.mxu1 %v2112_v47  ;;  %888 = vmatpush.bf16.msrb.mxu0 %v2148_v48  ;;  %v1544_v47 = vor.u32 %v2091_v37, %v1541_v38  ;;  %v1752_v48 = vor.u32 %v2127_v39, %v1749_v40  ;;  %v1767_v40 = vld [vmem:[%s2352_s8 + $0xa4] sm:$0xf] }
  0x3a   : > { %1244 = vmatpush.bf16.msrb.mxu2 %v2176_v60  ;;  %1273 = vmatpush.bf16.msrb.mxu3 %v2184_v4  ;;  %v1943_v60 = vld [vmem:[%s2352_s8 + $0xc] sm:$0xf] }
  0x3b   : > { %500 = vmatmul.bf16.gmra.mxu0 %v1540_v61  ;;  %510 = vmatmul.bf16.gmra.mxu1 %v1564_v62  ;;  %v2161_v61 = vld [vmem:[%s2352_s8 + $0x14] sm:$0xf0]  ;;  %v2160_v62 = vld [vmem:[%s2352_s8 + $0x10] sm:$0xf]  ;;  %v2097_v4 = vld [vmem:[%s2352_s8 + $0x4c] sm:$0xf] }
  0x3c   : > { %520 = vmatpush.bf16.msrb.mxu1 %v2111_v55  ;;  %889 = vmatpush.bf16.msrb.mxu0 %v2147_v57  ;;  %v2094_v55 = vld [vmem:[%s2352_s8 + $0x34] sm:$0xf]  ;;  %v1553_v57 = vld [vmem:[%s2352_s8 + $0x3c] sm:$0xf0] }
  0x3d   : > { %558 = vmatmul.bf16.gmra.mxu2 %v1548_v63  ;;  %869 = vmatmul.bf16.gmra.mxu3 %v1748_v1  ;;  %v1945_v63 = vld [vmem:[%s2352_s8 + $0x18] sm:$0xf0]  ;;  %v1764_v1 = vor.u32 %v2130_v58, %v1761_v59 }
  0x3e   : > { %1245 = vmatpush.bf16.msrb.mxu2 %v2175_v3  ;;  %1274 = vmatpush.bf16.msrb.mxu3 %v2183_v8  ;;  %v1948_v3 = vor.u32 %v2160_v62, %v1945_v63  ;;  %v1955_v8 = vld [vmem:[%s2352_s8 + $0x24] sm:$0xf] }
  0x40   : > { %521 = vmatpush.bf16.msrb.mxu1 %v2110_v0  ;;  %890 = vmatpush.bf16.msrb.mxu0 %v2146_v2  ;;  %v1556_v0 = vor.u32 %v2094_v55, %v1553_v57  ;;  %v1944_v2 = vor.u32 %v2161_v61, %v1943_v60  ;;  %v1779_v55 = vld [vmem:[%s2352_s8 + $0xbc] sm:$0xf] }
  0x42   : > { %1246 = vmatpush.bf16.msrb.mxu2 %v2174_v7  ;;  %1275 = vmatpush.bf16.msrb.mxu3 %v2182_v18  ;;  %v1773_v7 = vld [vmem:[%s2352_s8 + $0xc0] sm:$0xf0]  ;;  %v1951_v18 = vld [vmem:[%s2352_s8 + $0x14] sm:$0xf] }
  0x44   : > { %522 = vmatpush.bf16.msrb.mxu1 %v2109_v5  ;;  %891 = vmatpush.bf16.msrb.mxu0 %v2145_v6  ;;  %v1565_v5 = vld [vmem:[%s2352_s8 + $0x54] sm:$0xf0] }
  0x45   : > { %v2133_v6 = vld [vmem:[%s2352_s8 + $0xb8] sm:$0xf] }
  0x46   : > { %1247 = vmatpush.bf16.msrb.mxu2 %v2173_v15  ;;  %1276 = vmatpush.bf16.msrb.mxu3 %v2181_v31  ;;  %v1776_v13 = vor.u32 %v2133_v6, %v1773_v7  ;;  %v2165_v31 = vld [vmem:[%s2352_s8 + $0x34] sm:$0xf0] }
  0x48   : > { %523 = vmatpush.bf16.msrb.mxu1 %v2108_v9  ;;  %892 = vmatpush.bf16.msrb.mxu0 %v2144_v10  ;;  %v2164_v9 = vld [vmem:[%s2352_s8 + $0x2c] sm:$0xf0]  ;;  %v2163_v10 = vld [vmem:[%s2352_s8 + $0x28] sm:$0xf] }
  0x49   : > { %v1960_v15 = vor.u32 %v2163_v10, %v1957_v11 }
  0x4a   : > { %1248 = vmatpush.bf16.msrb.mxu2 %v2172_v29  ;;  %1277 = vmatpush.bf16.msrb.mxu3 %v2180_v34  ;;  %v2129_v29 = vld [vmem:[%s2352_s8 + $0x94] sm:$0xf0] }
  0x4b   : > { %524 = vmatmul.bf16.vlgmr.msrb.gmra.mxu1 %v1532_v24  ;;  %893 = vmatmul.bf16.vlgmr.msrb.gmra.mxu0 %v1740_v25  ;;  %v1744_v24 = vor.u32 %v2126_v17, %v1743_v16  ;;  %v1952_v25 = vor.u32 %v2162_v19, %v1951_v18  ;;  %v2169_v34 = vld [vmem:[%s2352_s8 + $0x58] sm:$0xf] }
  0x4c   : > { %914 = vmatpush.bf16.msra.mxu1 %v2159_v12  ;;  %1299 = vmatpush.bf16.msra.mxu0 %v2195_v14  ;;  %v1568_v12 = vor.u32 %v2097_v4, %v1565_v5 }
  0x4d   : > { %563 = vmatmul.bf16.gmra.mxu2 %v1560_v26  ;;  %874 = vmatmul.bf16.gmra.mxu3 %v1760_v28  ;;  %v1968_v26 = vor.u32 %v2167_v21, %v1967_v20  ;;  %v1755_v28 = vld [vmem:[%s2352_s8 + $0x8c] sm:$0xf] }
  0x4e   : > { %2227 = vmatpush.bf16.msra.mxu2 %v2195_v14  ;;  %v1956_v14 = vor.u32 %v2164_v9, %v1955_v8 }
  0x50   : > { %915 = vmatpush.bf16.msra.mxu1 %v2158_v23  ;;  %1300 = vmatpush.bf16.msra.mxu0 %v2194_v27  ;;  %v1969_v23 = vld [vmem:[%s2352_s8 + $0x48] sm:$0xf0] }
  0x52   : > { %2228 = vmatpush.bf16.msra.mxu2 %v2194_v27  ;;  %v1972_v27 = vor.u32 %v2166_v22, %v1969_v23 }
  0x54   : > { %916 = vmatpush.bf16.msra.mxu1 %v2157_v30  ;;  %1301 = vmatpush.bf16.msra.mxu0 %v2193_v32  ;;  %v1963_v30 = vld [vmem:[%s2352_s8 + $0x2c] sm:$0xf] }
  0x55   : > { %v1964_v37 = vor.u32 %v2165_v31, %v1963_v30 }
  0x56   : > { %2229 = vmatpush.bf16.msra.mxu2 %v2193_v32  ;;  %v1979_v32 = vld [vmem:[%s2352_s8 + $0x54] sm:$0xf] }
  0x58   : > { %917 = vmatpush.bf16.msra.mxu1 %v2156_v33  ;;  %1302 = vmatpush.bf16.msra.mxu0 %v2192_v35  ;;  %v2170_v33 = vld [vmem:[%s2352_s8 + $0x5c] sm:$0xf0] }
  0x59   : > { %v1980_v38 = vor.u32 %v2170_v33, %v1979_v32 }
  0x5a   : > { %2230 = vmatpush.bf16.msra.mxu2 %v2192_v35  ;;  %v1981_v35 = vld [vmem:[%s2352_s8 + $0x60] sm:$0xf0] }
  0x5b   : > { %529 = vmatmul.bf16.gmra.mxu1 %v1544_v47  ;;  %898 = vmatmul.bf16.gmra.mxu0 %v1752_v48  ;;  %v1984_v39 = vor.u32 %v2169_v34, %v1981_v35  ;;  %v1976_v47 = vor.u32 %v2168_v43, %v1975_v42 }
  0x5c   : > { %918 = vmatpush.bf16.msra.mxu1 %v2155_v36  ;;  %1303 = vmatpush.bf16.msra.mxu0 %v2191_v41  ;;  %v1756_v36 = vor.u32 %v2129_v29, %v1755_v28 }
  0x5d   : > { %568 = vmatmul.bf16.gmra.mxu2 %v1572_v49  ;;  %879 = vmatmul.bf16.gmra.mxu3 %v1772_v50  ;;  %v1988_v50 = vor.u32 %v2171_v45, %v1987_v44 }
  0x5e   : > { %2231 = vmatpush.bf16.msra.mxu2 %v2191_v41  ;;  %v2132_v41 = vld [vmem:[%s2352_s8 + $0xac] sm:$0xf0] }
  0x60   : > { %919 = vmatpush.bf16.msra.mxu1 %v2154_v46  ;;  %1304 = vmatpush.bf16.msra.mxu0 %v2190_v52  ;;  %v1768_v46 = vor.u32 %v2132_v41, %v1767_v40 }
  0x62   : > { %2232 = vmatpush.bf16.msra.mxu2 %v2190_v52 }
  0x64   : > { %920 = vmatpush.bf16.msra.mxu1 %v2153_v51  ;;  %1305 = vmatpush.bf16.msra.mxu0 %v2189_v54 }
  0x66   : > { %2233 = vmatpush.bf16.msra.mxu2 %v2189_v54 }
  0x68   : > { %921 = vmatpush.bf16.msra.mxu1 %v2152_v53  ;;  %1306 = vmatpush.bf16.msra.mxu0 %v2188_v56 }
  0x6a   : > { %2234 = vmatpush.bf16.msra.mxu2 %v2188_v56  ;;  %v2135_v56 = vld [vmem:[%s2352_s8 + $0xc4] sm:$0xf0]  ;;  %s2087_s8 = sshll.u32 %s2660_s16, 5 }
  0x6b   : > { %534 = vmatmul.bf16.gmra.mxu1 %v1556_v0  ;;  %903 = vmatmul.bf16.gmra.mxu0 %v1764_v1  ;;  %v1780_v58 = vor.u32 %v2135_v56, %v1779_v55  ;;  %s2622_s27 = scalar_lea.vmem %s2656_s2, %s2087_s8 }
  0x6d   : > { %1249 = vmatmul.bf16.vlgmr.msrb.gmra.mxu2 %v1944_v2  ;;  %1278 = vmatmul.bf16.vlgmr.msrb.gmra.mxu3 %v1948_v3 }
  0x7b   : > { %539 = vmatmul.bf16.gmra.mxu1 %v1568_v12  ;;  %908 = vmatmul.bf16.gmra.mxu0 %v1776_v13 }
  0x7d   : > { %1254 = vmatmul.bf16.gmra.mxu2 %v1956_v14  ;;  %1283 = vmatmul.bf16.gmra.mxu3 %v1960_v15 }
  0x8b   : > { %922 = vmatmul.bf16.vlgmr.msra.gmra.mxu1 %v1744_v24  ;;  %1307 = vmatmul.bf16.vlgmr.msra.gmra.mxu0 %v1952_v25 }
  0x8d   : > { %1259 = vmatmul.bf16.gmra.mxu2 %v1968_v26  ;;  %1288 = vmatmul.bf16.gmra.mxu3 %v1972_v27 }
  0x9b   : > { %927 = vmatmul.bf16.gmra.mxu1 %v1756_v36  ;;  %1312 = vmatmul.bf16.gmra.mxu0 %v1964_v37 }
  0x9d   : > { %1264 = vmatmul.bf16.gmra.mxu2 %v1980_v38  ;;  %1293 = vmatmul.bf16.gmra.mxu3 %v1984_v39 }
  0xa8   : > { %v496_v48 = vpop.f32.mrf.mxu0  ;;  %v506_v49 = vpop.f32.mrf.mxu1 }
  0xab   : > { %932 = vmatmul.bf16.gmra.mxu1 %v1768_v46  ;;  %1317 = vmatmul.bf16.gmra.mxu0 %v1976_v47 }
  0xad   : > { %1322 = vmatmul.bf16.vlgmr.msra.gmra.mxu2 %v1988_v50 }
  0xb0   : > { %v554_v51 = vpop.f32.mrf.mxu2  ;;  %v498_v52 = vpop.f32.mrf.mxu0 }
  0xb1   : > { %v508_v53 = vpop.f32.mrf.mxu1  ;;  %v865_v54 = vpop.f32.mrf.mxu3 }
  0xb8   : > { %v556_v57 = vpop.f32.mrf.mxu2  ;;  %v501_v59 = vpop.f32.mrf.mxu0 }
  0xb9   : > { %v511_v60 = vpop.f32.mrf.mxu1  ;;  %v2585_v61 = vpop.f32.mrf.mxu3 }
  0xbb   : > { %937 = vmatmul.bf16.gmra.mxu1 %v1780_v58 }
  0xc0   : > { %v559_v62 = vpop.f32.mrf.mxu2  ;;  %v503_v63 = vpop.f32.mrf.mxu0 }
  0xc1   : > { %v513_v0 = vpop.f32.mrf.mxu1  ;;  %v870_v1 = vpop.f32.mrf.mxu3 }
  0xc8   : > { %v561_v2 = vpop.f32.mrf.mxu2  ;;  %v894_v4 = vpop.f32.mrf.mxu0 }
  0xc9   : > { %v525_v3 = vpop.f32.mrf.mxu1  ;;  %v895_v6 = vadd.f32 %v894_v4, %v865_v54  ;;  %v2587_v7 = vpop.f32.mrf.mxu3 }
  0xca   : > { %v526_v5 = vadd.f32 %v525_v3, %v496_v48 }
  0xcc   : > { %v555_v8 = vadd.f32 %v554_v51, %v526_v5 }
  0xd0   : > { %v564_v9 = vpop.f32.mrf.mxu2  ;;  %v896_v11 = vpop.f32.mrf.mxu0 }
  0xd1   : > { %v527_v10 = vpop.f32.mrf.mxu1  ;;  %v875_v13 = vpop.f32.mrf.mxu3 }
  0xd2   : > { %v528_v12 = vadd.f32 %v527_v10, %v498_v52 }
  0xd4   : > { %v557_v14 = vadd.f32 %v556_v57, %v528_v12 }
  0xd8   : > { %v566_v15 = vpop.f32.mrf.mxu2  ;;  %v899_v17 = vpop.f32.mrf.mxu0 }
  0xd9   : > { %v530_v16 = vpop.f32.mrf.mxu1  ;;  %v2589_v19 = vadd.f32 %v899_v17, %v870_v1  ;;  %v2591_v20 = vpop.f32.mrf.mxu3 }
  0xda   : > { %v531_v18 = vadd.f32 %v530_v16, %v501_v59  ;;  %v897_v59 = vadd.f32 %v896_v11, %v2585_v61 }
  0xdc   : > { %v2593_v21 = vadd.f32 %v559_v62, %v531_v18 }
  0xe0   : > { %v569_v22 = vpop.f32.mrf.mxu2  ;;  %v2595_v24 = vpop.f32.mrf.mxu0 }
  0xe1   : > { %v532_v23 = vpop.f32.mrf.mxu1  ;;  %v880_v27 = vpop.f32.mrf.mxu3 }
  0xe2   : > { %v533_v25 = vadd.f32 %v532_v23, %v503_v63 }
  0xe4   : > { %v2597_v26 = vadd.f32 %v561_v2, %v533_v25 }
  0xe8   : > { %v571_v28 = vpop.f32.mrf.mxu2  ;;  %v904_v30 = vpop.f32.mrf.mxu0 }
  0xe9   : > { %v535_v29 = vpop.f32.mrf.mxu1  ;;  %v2599_v32 = vadd.f32 %v904_v30, %v875_v13  ;;  %v2603_v34 = vpop.f32.mrf.mxu3 }
  0xea   : > { %v536_v31 = vadd.f32 %v535_v29, %v506_v49 }
  0xec   : > { %v2601_v33 = vadd.f32 %v564_v9, %v536_v31 }
  0xf0   : > { %v1250_v35 = vpop.f32.mrf.mxu2  ;;  %v2605_v37 = vpop.f32.mrf.mxu0 }
  0xf1   : > { %v537_v36 = vpop.f32.mrf.mxu1  ;;  %v1279_v40 = vpop.f32.mrf.mxu3 }
  0xf2   : > { %v538_v38 = vadd.f32 %v537_v36, %v508_v53 }
  0xf4   : > { %v2607_v39 = vadd.f32 %v566_v15, %v538_v38 }
  0xf8   : > { %v1252_v41 = vpop.f32.mrf.mxu2  ;;  %v909_v43 = vpop.f32.mrf.mxu0 }
  0xf9   : > { %v540_v42 = vpop.f32.mrf.mxu1  ;;  %v2609_v45 = vadd.f32 %v909_v43, %v880_v27  ;;  %v1281_v50 = vpop.f32.mrf.mxu3  ;;  %v902_v27 = vadd.f32 %v2595_v24, %v2587_v7 }
  0xfa   : > { %v541_v44 = vadd.f32 %v540_v42, %v511_v60  ;;  %v1280_v60 = vadd.f32 %v1279_v40, %v1250_v35  ;;  %v1282_v2 = vadd.f32 %v1281_v50, %v1252_v41 }
  0xfc   : > { %v2611_v46 = vadd.f32 %v569_v22, %v541_v44 }
 0x100   : > { %v1255_v47 = vpop.f32.mrf.mxu2  ;;  %v2613_v49 = vpop.f32.mrf.mxu0 }
 0x101   : > { %v542_v48 = vpop.f32.mrf.mxu1  ;;  %v1284_v57 = vpop.f32.mrf.mxu3 }
 0x102   : > { %v543_v51 = vadd.f32 %v542_v48, %v513_v0  ;;  %v1285_v17 = vadd.f32 %v1284_v57, %v1255_v47 }
 0x104   : > { %v2615_v52 = vadd.f32 %v571_v28, %v543_v51 }
 0x108   : > { %v1257_v53 = vpop.f32.mrf.mxu2  ;;  %v1308_v55 = vpop.f32.mrf.mxu0 }
 0x109   : > { %v923_v54 = vpop.f32.mrf.mxu1  ;;  %v1309_v3 = vadd.f32 %v1308_v55, %v1280_v60  ;;  %v1286_v10 = vpop.f32.mrf.mxu3 }
 0x10a   : > { %v924_v56 = vadd.f32 %v923_v54, %v895_v6  ;;  %v1287_v36 = vadd.f32 %v1286_v10, %v1257_v53 }
 0x10c   : > { %v951_v58 = vadd.f32 %v924_v56, %v555_v8 }
 0x10e   : > { %v1336_v5 = vadd.f32 %v1309_v3, %v951_v58 }
 0x110   : > { %v1260_v62 = vpop.f32.mrf.mxu2  ;;  %v1310_v1 = vpop.f32.mrf.mxu0  ;;  %v1390_v61 = vmul.f32 %v1336_v5, %v1336_v5 }
 0x111   : > { %v925_v63 = vpop.f32.mrf.mxu1  ;;  %v1311_v9 = vadd.f32 %v1310_v1, %v1282_v2  ;;  %v1289_v28 = vpop.f32.mrf.mxu3 }
 0x112   : > { %v926_v4 = vadd.f32 %v925_v63, %v897_v59  ;;  %v1290_v7 = vadd.f32 %v1289_v28, %v1260_v62 }
 0x114   : > { %v952_v0 = vadd.f32 %v926_v4, %v557_v14 }
 0x116   : > { %v1337_v12 = vadd.f32 %v1311_v9, %v952_v0 }
 0x118   : > { %v2199_v6 = vpack.c.bf16 %v1337_v12, %v1336_v5  ;;  %v1376_v8 = vadd.f32 %v1337_v12, %v1336_v5  ;;  %v1391_v11 = vmul.f32 %v1337_v12, %v1337_v12  ;;  %v1262_v13 = vpop.f32.mrf.mxu2  ;;  %v1313_v16 = vpop.f32.mrf.mxu0 }
 0x119   : > { %v928_v15 = vpop.f32.mrf.mxu1  ;;  %v1314_v23 = vadd.f32 %v1313_v16, %v1285_v17  ;;  %v1291_v54 = vpop.f32.mrf.mxu3 }
 0x11a   : > { %2200 = vst [vmem:[%s2622_s27] sm:$0xff] %v2199_v6   ;;  %v1398_v14 = vadd.f32 %v1391_v11, %v1390_v61  ;;  %v929_v18 = vadd.f32 %v928_v15, %v2589_v19  ;;  %v1292_v1 = vadd.f32 %v1291_v54, %v1262_v13 }
 0x11c   : > { %v953_v22 = vadd.f32 %v929_v18, %v2593_v21 }
 0x11e   : > { %v1338_v25 = vadd.f32 %v1314_v23, %v953_v22 }
 0x120   : > { %v1377_v29 = vadd.f32 %v1376_v8, %v1338_v25  ;;  %v1392_v30 = vmul.f32 %v1338_v25, %v1338_v25  ;;  %v1315_v35 = vpop.f32.mrf.mxu0  ;;  %v1265_v41 = vpop.f32.mrf.mxu2 }
 0x121   : > { %v930_v31 = vpop.f32.mrf.mxu1  ;;  %v1316_v19 = vadd.f32 %v1315_v35, %v1287_v36  ;;  %v1294_v4 = vpop.f32.mrf.mxu3 }
 0x122   : > { %v1399_v38 = vadd.f32 %v1398_v14, %v1392_v30  ;;  %v931_v40 = vadd.f32 %v930_v31, %v902_v27  ;;  %v1295_v61 = vadd.f32 %v1294_v4, %v1265_v41 }
 0x124   : > { %v954_v42 = vadd.f32 %v931_v40, %v2597_v26  ;;  %v907_v26 = vadd.f32 %v2605_v37, %v2591_v20 }
 0x126   : > { %v1339_v43 = vadd.f32 %v1316_v19, %v954_v42 }
 0x128   : > { %v2204_v21 = vpack.c.bf16 %v1339_v43, %v1338_v25  ;;  %v1378_v44 = vadd.f32 %v1377_v29, %v1339_v43  ;;  %v1393_v47 = vmul.f32 %v1339_v43, %v1339_v43  ;;  %v1318_v50 = vpop.f32.mrf.mxu0  ;;  %v1267_v56 = vpop.f32.mrf.mxu2 }
 0x129   : > { %v933_v48 = vpop.f32.mrf.mxu1  ;;  %v1319_v55 = vadd.f32 %v1318_v50, %v1290_v7  ;;  %v1296_v13 = vpop.f32.mrf.mxu3 }
 0x12a   : > { %2216 = vst [vmem:[%s2622_s27 + $0x8] sm:$0xff] %v2204_v21   ;;  %v1400_v24 = vadd.f32 %v1399_v38, %v1393_v47  ;;  %v934_v51 = vadd.f32 %v933_v48, %v2599_v32  ;;  %v1297_v18 = vadd.f32 %v1296_v13, %v1267_v56 }
 0x12c   : > { %v955_v53 = vadd.f32 %v934_v51, %v2601_v33 }
 0x12e   : > { %v1340_v57 = vadd.f32 %v1319_v55, %v955_v53 }
 0x130   : > { %v1379_v58 = vadd.f32 %v1378_v44, %v1340_v57  ;;  %v1394_v59 = vmul.f32 %v1340_v57, %v1340_v57  ;;  %v1320_v63 = vpop.f32.mrf.mxu0  ;;  %v1323_v33 = vpop.f32.mrf.mxu2 }
 0x131   : > { %v935_v60 = vpop.f32.mrf.mxu1  ;;  %v1321_v32 = vadd.f32 %v1320_v63, %v1292_v1  ;;  %v1324_v6 = vadd.f32 %v1323_v33, %v1295_v61 }
 0x132   : > { %v1401_v62 = vadd.f32 %v1400_v24, %v1394_v59  ;;  %v936_v2 = vadd.f32 %v935_v60, %v907_v26 }
 0x134   : > { %v956_v3 = vadd.f32 %v936_v2, %v2607_v39  ;;  %v912_v39 = vadd.f32 %v2613_v49, %v2603_v34 }
 0x136   : > { %v1341_v5 = vadd.f32 %v1321_v32, %v956_v3 }
 0x138   : > { %v2209_v0 = vpack.c.bf16 %v1341_v5, %v1340_v57  ;;  %v1380_v9 = vadd.f32 %v1379_v58, %v1341_v5  ;;  %v1395_v10 = vmul.f32 %v1341_v5, %v1341_v5  ;;  %v1325_v17 = vpop.f32.mrf.mxu2 }
 0x139   : > { %v938_v12 = vpop.f32.mrf.mxu1  ;;  %v1326_v25 = vadd.f32 %v1325_v17, %v1297_v18 }
 0x13a   : > { %2217 = vst [vmem:[%s2622_s27 + $0x10] sm:$0xff] %v2209_v0   ;;  %v1402_v20 = vadd.f32 %v1401_v62, %v1395_v10  ;;  %v939_v37 = vadd.f32 %v938_v12, %v2609_v45 }
 0x13c   : > { %v957_v8 = vadd.f32 %v939_v37, %v2611_v46 }
 0x13e   : > { %v1342_v11 = vadd.f32 %v1324_v6, %v957_v8 }
 0x140   : > { %v1381_v15 = vadd.f32 %v1380_v9, %v1342_v11  ;;  %v1396_v16 = vmul.f32 %v1342_v11, %v1342_v11 }
 0x141   : > { %v940_v14 = vpop.f32.mrf.mxu1 }
 0x142   : > { %v1403_v22 = vadd.f32 %v1402_v20, %v1396_v16  ;;  %v941_v23 = vadd.f32 %v940_v14, %v912_v39 }
 0x144   : > { %v958_v27 = vadd.f32 %v941_v23, %v2615_v52 }
 0x146   : > { %v1343_v45 = vadd.f32 %v1326_v25, %v958_v27 }
 0x148   : > { %v2214_v28 = vpack.c.bf16 %v1343_v45, %v1342_v11  ;;  %v1382_v46 = vadd.f32 %v1381_v15, %v1343_v45  ;;  %v1397_v29 = vmul.f32 %v1343_v45, %v1343_v45 }
 0x14a   : > { %2218 = vst [vmem:[%s2622_s27 + $0x18] sm:$0xff] %v2214_v28   ;;  %v1383_v30 = vrot.slane %v1382_v46, 4  ;;  %v1404_v31 = vadd.f32 %v1403_v22, %v1397_v29 }
 0x14c   : > { %v1384_v34 = vadd.f32 %v1383_v30, %v1382_v46  ;;  %v1405_v49 = vrot.slane %v1404_v31, 4 }
 0x14e   : > { %v1385_v35 = vrot.slane %v1384_v34, 2  ;;  %v1406_v36 = vadd.f32 %v1405_v49, %v1404_v31 }
 0x150   : > { %v1386_v38 = vadd.f32 %v1385_v35, %v1384_v34  ;;  %v1407_v40 = vrot.slane %v1406_v36, 2 }
 0x152   : > { %v1387_v41 = vrot.slane %v1386_v38, 1  ;;  %v1408_v42 = vadd.f32 %v1407_v40, %v1406_v36 }
 0x154   : > { %v1388_v52 = vadd.f32 %v1387_v41, %v1386_v38  ;;  %v1409_v19 = vrot.slane %v1408_v42, 1 }
 0x156   : > { %1389 = vst [vmem:[%s211_s30] sm:$0x1] %v1388_v52  ;;  %v1410_v43 = vadd.f32 %v1409_v19, %v1408_v42 }
 0x158   : > { %1411 = vst [vmem:[%s214_s7] sm:$0x1] %v1410_v43 }
 0x159 PF: > { %s15_s15 = sadd.s32 1, %s2250_s15  }
 0x15a   : > { %p12_p4 = scmp.ge.s32.totalorder %s15_s15, 4  }
 0x15c   :  { %14 = sbr.rel (!%p12_p4) target bundleno = 1 (0x1), region = 86 }

</bundles_post_ra>
